<compile_context>
chip_gen: v5e
topology: v5e:2x2
jax: 0.10.0
libtpu: 0.0.40
codegen_flags: <defaults>
</compile_context>

<pallas_src>
import functools

import jax
import jax.numpy as jnp
from jax import lax
from jax.experimental import pallas as pl
from jax.experimental.pallas import tpu as pltpu


# ---------------------------------------------------------------------------
# Kernels
# ---------------------------------------------------------------------------
def _accumulate(x_ref, w_ref, acc_ref):
    @pl.when(pl.program_id(2) == 0)
    def _():
        acc_ref[...] = jnp.zeros_like(acc_ref)

    # x: (tm, tk), w: (tn, tk)  [PyTorch (Out, In) layout]  ->  (tm, tn)
    acc_ref[...] += lax.dot_general(
        x_ref[...], w_ref[...],
        dimension_numbers=(((1,), (1,)), ((), ())),
        preferred_element_type=jnp.float32,
    )


def _dense_kernel(x_ref, w_ref, b_ref, o_ref, acc_ref, *, relu):
    _accumulate(x_ref, w_ref, acc_ref)

    @pl.when(pl.program_id(2) == pl.num_programs(2) - 1)
    def _():
        y = acc_ref[...] + b_ref[...]
        if relu:
            y = jnp.maximum(y, 0.0)
        o_ref[...] = y.astype(o_ref.dtype)


def _dense_dropout_kernel(x_ref, w_ref, b_ref, m_ref, o_ref, acc_ref, *,
                          relu, scale):
    _accumulate(x_ref, w_ref, acc_ref)

    @pl.when(pl.program_id(2) == pl.num_programs(2) - 1)
    def _():
        y = acc_ref[...] + b_ref[...]
        if relu:
            y = jnp.maximum(y, 0.0)
        y = y * (m_ref[...].astype(jnp.float32) * scale)
        o_ref[...] = y.astype(o_ref.dtype)


# ---------------------------------------------------------------------------
# Glue
# ---------------------------------------------------------------------------
def _pick_tile(dim, preferred, quantum):
    """Largest tile <= preferred that divides dim and is a multiple of quantum.

    Falls back to the full dim (always a legal BlockSpec block size)."""
    if dim <= preferred or dim % quantum != 0:
        return dim
    t = (min(preferred, dim) // quantum) * quantum
    while t > 0 and dim % t != 0:
        t -= quantum
    return t if t > 0 else dim


# ~4 MiB per weight block: big enough to amortize per-grid-step overhead
# (~0.35 us) against ~2-4 us of weight DMA, small enough that the
# double-buffered block (8 MiB) fits every chip's scoped-VMEM budget.
_WEIGHT_BLOCK_BUDGET = 4 << 20


def pallas_linear(x, w, b, *, relu, dropout_mask=None, dropout_p=0.5,
                  out_dtype=jnp.float32):
    """y = [dropout](relu)(x @ w.T + b) with w in PyTorch (Out, In) layout."""
    M, K = x.shape
    N, K2 = w.shape
    assert K == K2, (x.shape, w.shape)

    w_itemsize = jnp.dtype(w.dtype).itemsize
    # Compute dtype follows the stored weight dtype (bf16 by default).
    xc = x.astype(w.dtype)
    b2 = b.reshape(1, N).astype(jnp.float32)

    tm = _pick_tile(M, 256, 8)       # batch tile (full dim for tiny batches)
    tn = _pick_tile(N, 1024, 128)    # lane-dense output tile
    # Reduction tile sized so tn*tk*itemsize stays within the weight-block budget.
    tk_pref = max(512, (_WEIGHT_BLOCK_BUDGET // (tn * w_itemsize)) // 128 * 128)
    tk = _pick_tile(K, min(2048, tk_pref), 128)
    grid = (M // tm, N // tn, K // tk)

    in_specs = [
        pl.BlockSpec((tm, tk), lambda i, j, k: (i, k)),   # x
        pl.BlockSpec((tn, tk), lambda i, j, k: (j, k)),   # w (Out, In) — no transpose
        pl.BlockSpec((1, tn), lambda i, j, k: (0, j)),    # bias
    ]
    args = [xc, w, b2]

    if dropout_mask is None:
        kernel = functools.partial(_dense_kernel, relu=relu)
    else:
        in_specs.append(pl.BlockSpec((tm, tn), lambda i, j, k: (i, j)))
        args.append(dropout_mask.astype(jnp.float32))
        kernel = functools.partial(_dense_dropout_kernel, relu=relu,
                                   scale=1.0 / (1.0 - dropout_p))

    # VMEM budget: double-buffered inputs/outputs + f32 accumulator scratch.
    out_itemsize = jnp.dtype(out_dtype).itemsize
    x_itemsize = jnp.dtype(xc.dtype).itemsize
    vmem_need = (
        2 * (tm * tk * x_itemsize            # x block
             + tn * tk * w_itemsize          # weight block (dominant)
             + tn * 4                        # bias block
             + (tm * tn * 4 if dropout_mask is not None else 0)   # mask block
             + tm * tn * out_itemsize)       # output block
        + tm * tn * 4                        # accumulator scratch
    )
    vmem_limit = min(64 << 20, max(32 << 20, 2 * int(vmem_need)))

    flops = 2 * M * N * K
    bytes_accessed = int(
        xc.size * x_itemsize
        + w.size * w_itemsize
        + b2.size * 4
        + (dropout_mask.size * 4 if dropout_mask is not None else 0)
        + M * N * out_itemsize
    )

    return pl.pallas_call(
        kernel,
        out_shape=jax.ShapeDtypeStruct((M, N), out_dtype),
        grid_spec=pltpu.PrefetchScalarGridSpec(
            num_scalar_prefetch=0,
            grid=grid,
            in_specs=in_specs,
            out_specs=pl.BlockSpec((tm, tn), lambda i, j, k: (i, j)),
            scratch_shapes=[pltpu.VMEM((tm, tn), jnp.float32)],
        ),
        compiler_params=pltpu.CompilerParams(
            dimension_semantics=("parallel", "parallel", "arbitrary"),
            vmem_limit_bytes=vmem_limit),
        cost_estimate=pl.CostEstimate(flops=flops, transcendentals=0,
                                      bytes_accessed=bytes_accessed),
    )(*args)


def alex_output_block(x, params, *, dropout_masks=None):
    """AlexOutputBlock.forward.

    params = ((w1, b1), (w2, b2), (w3, b3)) with weights in (Out, In) layout.
    dropout_masks = None (eval: dropout == identity) or a pair of {0,1}
    keep-masks of shape (B, 4096) (training: survivors scaled by 2).
    """
    (w1, b1), (w2, b2), (w3, b3) = params
    m1, m2 = (None, None) if dropout_masks is None else dropout_masks
    # Hidden activations are emitted in the next layer's compute dtype (bf16)
    # so they are consumed without an extra cast op.
    h = pallas_linear(x, w1, b1, relu=True, dropout_mask=m1,
                      out_dtype=w2.dtype)                         # fc1: AlexDense
    h = pallas_linear(h, w2, b2, relu=True, dropout_mask=m2,
                      out_dtype=w3.dtype)                         # fc2: AlexDense
    y = pallas_linear(h, w3, b3, relu=False,
                      out_dtype=jnp.float32)                      # fc3: plain Linear
    return y


def init_linear_params(key, in_features, out_features, param_dtype=jnp.bfloat16):
    """PyTorch nn.Linear default init: U(-k, k), k = 1/sqrt(in_features)."""
    kw, kb = jax.random.split(key)
    bound = 1.0 / float(in_features) ** 0.5
    w = jax.random.uniform(kw, (out_features, in_features), jnp.float32,
                           -bound, bound)
    b = jax.random.uniform(kb, (out_features,), jnp.float32, -bound, bound)
    # Weights stored in bf16 (halves the weight-HBM stream); bias stays f32.
    return w.astype(param_dtype), b


# ---------------------------------------------------------------------------
# Reference (pure JAX) and demo
# ---------------------------------------------------------------------------
def _ref_linear(x, w, b, relu):
    xc = x.astype(w.dtype).astype(jnp.float32)
    wc = w.astype(jnp.float32)
    y = xc @ wc.T + b
    return jnp.maximum(y, 0.0) if relu else y


def _ref_block(x, params, dropout_masks=None):
    (w1, b1), (w2, b2), (w3, b3) = params
    m1, m2 = (None, None) if dropout_masks is None else dropout_masks
    h = _ref_linear(x, w1, b1, True)
    if m1 is not None:
        h = h * m1 * 2.0
    h = _ref_linear(h, w2, b2, True)
    if m2 is not None:
        h = h * m2 * 2.0
    return _ref_linear(h, w3, b3, False)


def _rel_err(a, b):
    return float(jnp.max(jnp.abs(a - b)) / (jnp.max(jnp.abs(b)) + 1e-6))


if __name__ == "__main__":
    B = 2
    in_channels = 1024     # small stand-in for AlexNet's 256*6*6 = 9216
    classes = 256          # small, lane-dense stand-in for 1000 classes
    mid_channels = 4096    # fixed by the module spec

    key = jax.random.PRNGKey(0)
    kx, k1, k2, k3, km = jax.random.split(key, 5)
    x = jax.random.normal(kx, (B, in_channels), jnp.float32)
    params = (
        init_linear_params(k1, in_channels, mid_channels),
        init_linear_params(k2, mid_channels, mid_channels),
        init_linear_params(k3, mid_channels, classes),
    )

    # Inference path (dropout == identity).
    y_eval = jax.block_until_ready(alex_output_block(x, params))
    y_ref = _ref_block(x, params)
    assert y_eval.shape == (B, classes)
    assert _rel_err(y_eval, y_ref) < 2e-2, _rel_err(y_eval, y_ref)

    # Training path: precomputed keep-masks fused into the tiled epilogue.
    km1, km2 = jax.random.split(km)
    m1 = jax.random.bernoulli(km1, 0.5, (B, mid_channels)).astype(jnp.float32)
    m2 = jax.random.bernoulli(km2, 0.5, (B, mid_channels)).astype(jnp.float32)
    y_train = jax.block_until_ready(
        alex_output_block(x, params, dropout_masks=(m1, m2)))
    y_train_ref = _ref_block(x, params, dropout_masks=(m1, m2))
    assert y_train.shape == (B, classes)
    assert bool(jnp.all(jnp.isfinite(y_train)))
    assert _rel_err(y_train, y_train_ref) < 2e-2, _rel_err(y_train, y_train_ref)

    print("KERNEL_OK")
</pallas_src>

<mosaic_0001>
module attributes {stable_mosaic.version = 11 : i64} {
  func.func @_dense_kernel(%arg0: i32, %arg1: i32, %arg2: i32, %arg3: memref<2x1024xbf16, #tpu.memory_space<vmem>>, %arg4: memref<1024x1024xbf16, #tpu.memory_space<vmem>>, %arg5: memref<1x1024xf32, #tpu.memory_space<vmem>>, %arg6: memref<2x1024xbf16, #tpu.memory_space<vmem>>, %arg7: memref<2x1024xf32, #tpu.memory_space<vmem>>) attributes {dimension_semantics = [#tpu.dimension_semantics<parallel>, #tpu.dimension_semantics<parallel>, #tpu.dimension_semantics<arbitrary>], iteration_bounds = array<i64: 1, 4, 1>, scalar_prefetch = 0 : i64, scratch_operands = 1 : i64, tpu.core_type = #tpu.core_type<tc>, window_params = [{transform_indices = @transform_0, window_bounds = array<i64: 2, 1024>}, {transform_indices = @transform_1, window_bounds = array<i64: 1024, 1024>}, {transform_indices = @transform_2, window_bounds = array<i64: 1, 1024>}, {transform_indices = @transform_3, window_bounds = array<i64: 2, 1024>}]} {
    %c0_i32 = arith.constant 0 : i32
    %0 = arith.cmpi eq, %arg2, %c0_i32 : i32
    %1 = arith.extui %0 : i1 to i32
    %c0_i32_0 = arith.constant 0 : i32
    %2 = arith.cmpi ne, %1, %c0_i32_0 : i32
    scf.if %2 {
      %cst_10 = arith.constant 0.000000e+00 : f32
      %12 = vector.broadcast %cst_10 : f32 to vector<2x1024xf32>
      %c0_11 = arith.constant 0 : index
      %c0_12 = arith.constant 0 : index
      %13 = vector.load %arg7[%c0_11, %c0_12] : memref<2x1024xf32, #tpu.memory_space<vmem>>, vector<2x1024xf32>
      tpu.vector_store %arg7[%c0_11, %c0_12], %12 {strides = array<i32>} : memref<2x1024xf32, #tpu.memory_space<vmem>>, vector<2x1024xf32>,
    } else {
    }
    %c0 = arith.constant 0 : index
    %c0_1 = arith.constant 0 : index
    %3 = vector.load %arg7[%c0, %c0_1] : memref<2x1024xf32, #tpu.memory_space<vmem>>, vector<2x1024xf32>
    %c0_2 = arith.constant 0 : index
    %c0_3 = arith.constant 0 : index
    %4 = vector.load %arg3[%c0_2, %c0_3] : memref<2x1024xbf16, #tpu.memory_space<vmem>>, vector<2x1024xbf16>
    %c0_4 = arith.constant 0 : index
    %c0_5 = arith.constant 0 : index
    %5 = vector.load %arg4[%c0_4, %c0_5] : memref<1024x1024xbf16, #tpu.memory_space<vmem>>, vector<1024x1024xbf16>
    %cst = arith.constant dense<0.000000e+00> : vector<2x1024xf32>
    %6 = tpu.matmul %4, %5, %cst {dimension_numbers = #tpu.dot_dimension_numbers<[1], [1], [0], [0], [0, 0, 1, 0], [], []>} : vector<2x1024xbf16>, vector<1024x1024xbf16>, vector<2x1024xf32> -> vector<2x1024xf32>
    %7 = arith.addf %3, %6 : vector<2x1024xf32>
    %c0_6 = arith.constant 0 : index
    %c0_7 = arith.constant 0 : index
    %8 = vector.load %arg7[%c0_6, %c0_7] : memref<2x1024xf32, #tpu.memory_space<vmem>>, vector<2x1024xf32>
    tpu.vector_store %arg7[%c0_6, %c0_7], %7 {strides = array<i32>} : memref<2x1024xf32, #tpu.memory_space<vmem>>, vector<2x1024xf32>,
    %c0_i32_8 = arith.constant 0 : i32
    %9 = arith.cmpi eq, %arg2, %c0_i32_8 : i32
    %10 = arith.extui %9 : i1 to i32
    %c0_i32_9 = arith.constant 0 : i32
    %11 = arith.cmpi ne, %10, %c0_i32_9 : i32
    scf.if %11 {
      %c0_10 = arith.constant 0 : index
      %c0_11 = arith.constant 0 : index
      %12 = vector.load %arg7[%c0_10, %c0_11] : memref<2x1024xf32, #tpu.memory_space<vmem>>, vector<2x1024xf32>
      %c0_12 = arith.constant 0 : index
      %c0_13 = arith.constant 0 : index
      %13 = vector.load %arg5[%c0_12, %c0_13] : memref<1x1024xf32, #tpu.memory_space<vmem>>, vector<1x1024xf32>
      %14 = vector.broadcast %13 : vector<1x1024xf32> to vector<2x1024xf32>
      %15 = arith.addf %12, %14 : vector<2x1024xf32>
      %cst_14 = arith.constant 0.000000e+00 : f32
      %16 = vector.broadcast %cst_14 : f32 to vector<2x1024xf32>
      %17 = arith.maximumf %15, %16 : vector<2x1024xf32>
      %18 = arith.truncf %17 : vector<2x1024xf32> to vector<2x1024xbf16>
      %c0_15 = arith.constant 0 : index
      %c0_16 = arith.constant 0 : index
      %19 = vector.load %arg6[%c0_15, %c0_16] : memref<2x1024xbf16, #tpu.memory_space<vmem>>, vector<2x1024xbf16>
      tpu.vector_store %arg6[%c0_15, %c0_16], %18 {strides = array<i32>} : memref<2x1024xbf16, #tpu.memory_space<vmem>>, vector<2x1024xbf16>,
    } else {
    }
    return
  }
  func.func @transform_0(%arg0: i32, %arg1: i32, %arg2: i32) -> (i32, i32) {
    %c0_i32 = arith.constant 0 : i32
    return %arg0, %arg2 : i32, i32
  }
  func.func @transform_1(%arg0: i32, %arg1: i32, %arg2: i32) -> (i32, i32) {
    %c0_i32 = arith.constant 0 : i32
    return %arg1, %arg2 : i32, i32
  }
  func.func @transform_2(%arg0: i32, %arg1: i32, %arg2: i32) -> (i32, i32) {
    %c0_i32 = arith.constant 0 : i32
    %c0_i32_0 = arith.constant 0 : i32
    return %c0_i32, %arg1 : i32, i32
  }
  func.func @transform_3(%arg0: i32, %arg1: i32, %arg2: i32) -> (i32, i32) {
    %c0_i32 = arith.constant 0 : i32
    return %arg0, %arg1 : i32, i32
  }
}

</mosaic_0001>

<bundles_post_ra>
// kernel: tpu_custom_call.1
= control target key start
LH: loop header
LB: loop body
LE: loop exit
PB: predicated region body
PF: predicated region fallthrough
CT: control target
= control target key end

     0   :  { %8 = vsyncpa [#allocation4], 0  ;;  %s8737_s0 = inlined_call_operand.hbm [shape: bf16[2,1024], index: 0, kind: input, shape index: {}]   ;;  %s8738_s1 = inlined_call_operand.hbm [shape: bf16[4096,1024], index: 1, kind: input, shape index: {}]   ;;  %s8739_s2 = inlined_call_operand.hbm [shape: f32[1,4096], index: 2, kind: input, shape index: {}]   ;;  %s8740_s3 = inlined_call_operand.hbm [shape: bf16[2,4096], index: 3, kind: output, shape index: {}]  }
   0x1   :  { %9 = vsyncpa [#allocation7], 0 }
   0x2   :  { %11 = vsyncpa [#allocation7 + $0x1], 0 }
   0x3   :  { %12 = vsyncpa [#allocation5], 0 }
   0x4   :  { %14 = vsyncpa [#allocation5 + $0x1], 0  ;;  %s7358_s12 = smov 0   ;;  %s7360_s13 = smov 0  }
   0x5   :  { %s7362_s14 = smov 0   ;;  %s7364_s15 = smov 0  }
   0x6   :  { %s7366_s16 = smov 0   ;;  %s7368_s17 = smov 0  }
   0x7 LB: > { %s35_s18 = sadd.s32 1, %s7329_s16  ;;  %s76_s19 = sadd.s32 1, %s7321_s14  ;;  %s7333_s17 = sphi %s7368_s17, %s20_s17   ;;  %s7329_s16 = sphi %s7366_s16, %s8751_s16   ;;  %s7325_s15 = sphi %s7364_s15, %s8750_s15   ;;  %s7321_s14 = sphi %s7362_s14, %s8749_s14   ;;  %s7317_s13 = sphi %s7360_s13, %s8748_s13   ;;  %s7313_s12 = sphi %s7358_s12, %s8747_s12  }
   0x8   : > { %p37_p0 = scmp.ge.s32.totalorder %s35_s18, 4  ;;  %p83_p1 = scmp.ne.s32.totalorder %s7321_s14, %s7317_s13 }
   0x9   : > { %p84_p2 = scmp.eq.s32.totalorder %s7333_s17, 0  ;;  %p7082_p4 = scmp.lt.s32.totalorder %s7333_s17, 4 }
   0xa   : > { %s8753_s18 = smov (%p37_p0, %s35_s18), 0  ;;  %s183_s22 = sand.u32 1, %s7333_s17  }
   0xb   : > { %p7398_p3 = por %p84_p2, %p83_p1  ;;  %s71_s21 = ssub.s32 %s7329_s16, %s8753_s18 }
   0xc   : > { %p74_p5 = scmp.eq.s32.totalorder %s71_s21, 0  ;;  %s185_s23 = sand.u32 1, %s7321_s14  }
   0xd   : > { %s6543_s24 = sshll.u32 %s7329_s16, 12  ;;  %s4479_s26 = sshll.u32 %s185_s23, 12 }
   0xe   : > { %s7409_s25 = scalar_select %p74_p5, %s7321_s14, %s76_s19  }
   0xf   : > { %s195_s29 = scalar_lea.hbm %s8738_s1, %s6543_s24  ;;  %s187_s4 = scalar_lea.vmem [#allocation6], %s4479_s26 }
  0x10   : > { %s196_s30 = sshll.u32 %s195_s29, 4  ;;  %s198_s5 = sshll.u32 %s187_s4, 4  ;;  %s197_s30 = int_to_ptr.hbm [resolvable:$true] %s196_s30  ;;  %s199_s5 = int_to_ptr.vmem [resolvable:$true] %s198_s5 }
  0x11   : > { %p7418_p6 = pnand %p7082_p4, %p7398_p3  ;;  %s7422_s7 = scalar_lea.sflag [#allocation7], %s183_s22 }
  0x12   : > { %s7335_s8 = smov 512   ;;  %s7336_s9 = smov 32  }
  0x13   : > { %7073 = dma.hbm_to_vmem [thread:$0]  (!%p7418_p6), %s197_s30, 65536, %s199_s5, %s7422_s7, %s7335_s8, %s7335_s8, %s7336_s9  }
  0x14   : > { %s7428_s10 = sadd.s32 4294967295, %s7333_s17   ;;  %s4475_s11 = sadd.s32 4294967294, %s7333_s17  }
  0x15   : > { %p89_p7 = scmp.ne.s32.totalorder %s7317_s13, %s7313_s12  ;;  %p90_p8 = scmp.eq.s32.totalorder %s7428_s10, 0 }
  0x16   : > { %p141_p9 = scmp.eq.s32.totalorder %s7428_s10, 3  ;;  %p147_p10 = scmp.eq.s32.totalorder %s4475_s11, 3 }
  0x17   : > { %p4476_p11 = scmp.ge.s32.totalorder %s7333_s17, 1  ;;  %p7438_p12 = por %p90_p8, %p89_p7 }
  0x18   : > { %p7445_p13 = por %p141_p9, %p83_p1  ;;  %p7449_p0 = por %p147_p10, %p89_p7 }
  0x19   : > { %p154_p2 = scmp.lt.s32.totalorder %s7333_s17, 5  ;;  %s170_s26 = sshll.u32 %s8737_s0, 4  ;;  %s171_s26 = int_to_ptr.hbm [resolvable:$true] %s170_s26 }
  0x1a   : > { %s4483_s28 = sshll.u32 %s185_s23, 3  ;;  %s7337_s29 = smov [#allocation3]  }
  0x1b   : > { %p7457_p3 = pnand %p4476_p11, %p154_p2  ;;  %s172_s30 = sshll.u32 %s7337_s29, 4  ;;  %s173_s30 = int_to_ptr.vmem [resolvable:$true] %s172_s30 }
  0x1c   : > { %s4484_s4 = sshll.u32 %s7329_s16, 3  ;;  %s212_s11 = scalar_lea.vmem [#allocation8], %s4483_s28 }
  0x1d   : > { %p7066_p1 = pneg %p7457_p3  ;;  %s216_s9 = scalar_lea.hbm %s8739_s2, %s4484_s4 }
  0x1e   : > { %s220_s22 = sshll.u32 %s212_s11, 4  ;;  %s218_s24 = sshll.u32 %s216_s9, 4  ;;  %s219_s24 = int_to_ptr.hbm [resolvable:$true] %s218_s24  ;;  %s221_s22 = int_to_ptr.vmem [resolvable:$true] %s220_s22 }
  0x1f   : > { %p7067_p4 = pnand %p7066_p1, %p90_p8  ;;  %229 = sbr.rel (%p7457_p3) target bundleno = 1232 (0x4d0), region = 32 }
  0x20   : > { %7076 = dma.hbm_to_vmem [thread:$0]  (!%p7418_p6), %s219_s24, 128, %s221_s22, %s7422_s7  }
  0x21   : > { %7069 = dma.hbm_to_vmem [thread:$0]  (!%p7067_p4), %s171_s26, 128, %s173_s30, [#allocation4]  }
  0x24   : > { %7300 = dma.done.wait (%p90_p8), [#allocation4], 128  }
  0x25   : > { %7302 = vsyncadd (%p90_p8), [#allocation4], 4294967168  ;;  %s236_s23 = sand.u32 1, %s7428_s10   ;;  %s7480_s28 = sand.u32 1, %s7317_s13  }
  0x26   : > { %s4487_s26 = sshll.u32 %s7480_s28, 12  ;;  %s237_s29 = scalar_lea.sflag [#allocation7], %s236_s23 }
  0x27   : > { %s7483_s6 = scalar_lea.vmem [#allocation6], %s4487_s26 }
  0x28   : > { %7304 = dma.done.wait (%p7438_p12), %s237_s29, 65664  }
  0x29   : > { %7306 = vsyncadd (%p7438_p12), %s237_s29, 4294901632  ;;  %v4716_v0 = vld [vmem:[%s7483_s6 + $0x1c0] sm:$0xf]  ;;  %v6600_v2 = vld [vmem:[%s7483_s6 + $0x1c4] sm:$0xf]  ;;  %vm4229_vm0 = vcmask 1041408  }
  0x2a   : > { %v6604_v1 = vld [vmem:[%s7483_s6 + $0x1dc] sm:$0xf0]  ;;  %v4718_v4 = vld [vmem:[%s7483_s6 + $0x1e0] sm:$0xf0]  ;;  %v4724_v5 = vld [vmem:[%s7483_s6 + $0x1c8] sm:$0xf] }
  0x2b   : > { %v4717_v3 = vor.u32 %v6604_v1, %v4716_v0  ;;  %v6605_v6 = vld [vmem:[%s7483_s6 + $0x1e4] sm:$0xf0]  ;;  %v4721_v7 = vor.u32 %v6600_v2, %v4718_v4  ;;  %v6601_v9 = vld [vmem:[%s7483_s6 + $0x1cc] sm:$0xf]  ;;  %v4684_v12 = vld [vmem:[%s7483_s6 + $0x180] sm:$0xf] }
  0x2c   : > { %v4725_v8 = vor.u32 %v6605_v6, %v4724_v5  ;;  %v4726_v10 = vld [vmem:[%s7483_s6 + $0x1e8] sm:$0xf0]  ;;  %v6596_v13 = vld [vmem:[%s7483_s6 + $0x19c] sm:$0xf0]  ;;  %v6592_v14 = vld [vmem:[%s7483_s6 + $0x184] sm:$0xf] }
  0x2d   : > { %3383 = vmatpush.bf16.xpose.msra.mxu0 %v4717_v3  ;;  %v4729_v11 = vor.u32 %v6601_v9, %v4726_v10  ;;  %3396 = vmatpush.bf16.xpose.msra.mxu1 %v4721_v7  ;;  %v4686_v15 = vld [vmem:[%s7483_s6 + $0x1a0] sm:$0xf0]  ;;  %v4692_v16 = vld [vmem:[%s7483_s6 + $0x188] sm:$0xf]  ;;  %v6593_v18 = vld [vmem:[%s7483_s6 + $0x18c] sm:$0xf]  ;;  %v4685_v20 = vor.u32 %v6596_v13, %v4684_v12 }
  0x2e   : > { %3409 = vmatpush.bf16.xpose.msra.mxu2 %v4725_v8  ;;  %v6597_v17 = vld [vmem:[%s7483_s6 + $0x1a4] sm:$0xf0]  ;;  %v4694_v19 = vld [vmem:[%s7483_s6 + $0x1a8] sm:$0xf0]  ;;  %v4689_v21 = vor.u32 %v6592_v14, %v4686_v15  ;;  %v4652_v24 = vld [vmem:[%s7483_s6 + $0x140] sm:$0xf] }
  0x2f   : > { %3422 = vmatpush.bf16.xpose.msra.mxu3 %v4729_v11  ;;  %v4693_v22 = vor.u32 %v6597_v17, %v4692_v16  ;;  %v4697_v23 = vor.u32 %v6593_v18, %v4694_v19  ;;  %v6588_v25 = vld [vmem:[%s7483_s6 + $0x15c] sm:$0xf0]  ;;  %v6584_v26 = vld [vmem:[%s7483_s6 + $0x144] sm:$0xf]  ;;  %v4660_v28 = vld [vmem:[%s7483_s6 + $0x148] sm:$0xf] }
  0x30   : > { %v4654_v27 = vld [vmem:[%s7483_s6 + $0x160] sm:$0xf0]  ;;  %v6589_v29 = vld [vmem:[%s7483_s6 + $0x164] sm:$0xf0]  ;;  %v6585_v30 = vld [vmem:[%s7483_s6 + $0x14c] sm:$0xf]  ;;  %v4653_v32 = vor.u32 %v6588_v25, %v4652_v24 }
  0x31   : > { %v4662_v31 = vld [vmem:[%s7483_s6 + $0x168] sm:$0xf0]  ;;  %v4657_v33 = vor.u32 %v6584_v26, %v4654_v27  ;;  %v4661_v34 = vor.u32 %v6589_v29, %v4660_v28  ;;  %v4620_v36 = vld [vmem:[%s7483_s6 + $0x100] sm:$0xf]  ;;  %v6576_v38 = vld [vmem:[%s7483_s6 + $0x104] sm:$0xf] }
  0x32   : > { %v4665_v35 = vor.u32 %v6585_v30, %v4662_v31  ;;  %v6580_v37 = vld [vmem:[%s7483_s6 + $0x11c] sm:$0xf0]  ;;  %v4622_v39 = vld [vmem:[%s7483_s6 + $0x120] sm:$0xf0]  ;;  %v4628_v40 = vld [vmem:[%s7483_s6 + $0x108] sm:$0xf] }
  0x33   : > { %v6581_v41 = vld [vmem:[%s7483_s6 + $0x124] sm:$0xf0]  ;;  %v6577_v42 = vld [vmem:[%s7483_s6 + $0x10c] sm:$0xf]  ;;  %v4621_v44 = vor.u32 %v6580_v37, %v4620_v36  ;;  %v4625_v45 = vor.u32 %v6576_v38, %v4622_v39  ;;  %v4588_v48 = vld [vmem:[%s7483_s6 + $0xc0] sm:$0xf] }
  0x34   : > { %v4630_v43 = vld [vmem:[%s7483_s6 + $0x128] sm:$0xf0]  ;;  %v4629_v46 = vor.u32 %v6581_v41, %v4628_v40  ;;  %v6572_v49 = vld [vmem:[%s7483_s6 + $0xdc] sm:$0xf0]  ;;  %v6568_v50 = vld [vmem:[%s7483_s6 + $0xc4] sm:$0xf] }
  0x35   : > { %3384 = vmatpush.bf16.xpose.msra.mxu0 %v4685_v20  ;;  %3397 = vmatpush.bf16.xpose.msra.mxu1 %v4689_v21  ;;  %v4633_v47 = vor.u32 %v6577_v42, %v4630_v43  ;;  %v4590_v51 = vld [vmem:[%s7483_s6 + $0xe0] sm:$0xf0]  ;;  %v4596_v52 = vld [vmem:[%s7483_s6 + $0xc8] sm:$0xf]  ;;  %v6569_v54 = vld [vmem:[%s7483_s6 + $0xcc] sm:$0xf]  ;;  %v4589_v56 = vor.u32 %v6572_v49, %v4588_v48 }
  0x36   : > { %3410 = vmatpush.bf16.xpose.msra.mxu2 %v4693_v22  ;;  %v6573_v53 = vld [vmem:[%s7483_s6 + $0xe4] sm:$0xf0]  ;;  %v4598_v55 = vld [vmem:[%s7483_s6 + $0xe8] sm:$0xf0]  ;;  %v4593_v57 = vor.u32 %v6568_v50, %v4590_v51  ;;  %v4556_v60 = vld [vmem:[%s7483_s6 + $0x80] sm:$0xf] }
  0x37   : > { %3423 = vmatpush.bf16.xpose.msra.mxu3 %v4697_v23  ;;  %v4597_v58 = vor.u32 %v6573_v53, %v4596_v52  ;;  %v4601_v59 = vor.u32 %v6569_v54, %v4598_v55  ;;  %v6564_v61 = vld [vmem:[%s7483_s6 + $0x9c] sm:$0xf0]  ;;  %v6560_v62 = vld [vmem:[%s7483_s6 + $0x84] sm:$0xf]  ;;  %v4564_v0 = vld [vmem:[%s7483_s6 + $0x88] sm:$0xf] }
  0x38   : > { %v4558_v63 = vld [vmem:[%s7483_s6 + $0xa0] sm:$0xf0]  ;;  %v6565_v1 = vld [vmem:[%s7483_s6 + $0xa4] sm:$0xf0]  ;;  %v6561_v2 = vld [vmem:[%s7483_s6 + $0x8c] sm:$0xf]  ;;  %v4557_v4 = vor.u32 %v6564_v61, %v4556_v60 }
  0x39   : > { %v4566_v3 = vld [vmem:[%s7483_s6 + $0xa8] sm:$0xf0]  ;;  %v4561_v5 = vor.u32 %v6560_v62, %v4558_v63  ;;  %v4565_v6 = vor.u32 %v6565_v1, %v4564_v0  ;;  %v4524_v8 = vld [vmem:[%s7483_s6 + $0x40] sm:$0xf]  ;;  %v6552_v10 = vld [vmem:[%s7483_s6 + $0x44] sm:$0xf] }
  0x3a   : > { %v4569_v7 = vor.u32 %v6561_v2, %v4566_v3  ;;  %v6556_v9 = vld [vmem:[%s7483_s6 + $0x5c] sm:$0xf0]  ;;  %v4526_v11 = vld [vmem:[%s7483_s6 + $0x60] sm:$0xf0]  ;;  %v4532_v12 = vld [vmem:[%s7483_s6 + $0x48] sm:$0xf] }
  0x3b   : > { %v6557_v13 = vld [vmem:[%s7483_s6 + $0x64] sm:$0xf0]  ;;  %v6553_v14 = vld [vmem:[%s7483_s6 + $0x4c] sm:$0xf]  ;;  %v4525_v16 = vor.u32 %v6556_v9, %v4524_v8  ;;  %v4529_v17 = vor.u32 %v6552_v10, %v4526_v11  ;;  %v4492_v20 = vld [vmem:[%s7483_s6] sm:$0xf] }
  0x3c   : > { %v4534_v15 = vld [vmem:[%s7483_s6 + $0x68] sm:$0xf0]  ;;  %v4533_v18 = vor.u32 %v6557_v13, %v4532_v12  ;;  %v6548_v21 = vld [vmem:[%s7483_s6 + $0x1c] sm:$0xf0]  ;;  %v6544_v22 = vld [vmem:[%s7483_s6 + $0x4] sm:$0xf] }
  0x3d   : > { %3385 = vmatpush.bf16.xpose.msra.mxu0 %v4653_v32  ;;  %3398 = vmatpush.bf16.xpose.msra.mxu1 %v4657_v33  ;;  %v4537_v19 = vor.u32 %v6553_v14, %v4534_v15  ;;  %v4494_v23 = vld [vmem:[%s7483_s6 + $0x20] sm:$0xf0]  ;;  %v4500_v24 = vld [vmem:[%s7483_s6 + $0x8] sm:$0xf]  ;;  %v6545_v26 = vld [vmem:[%s7483_s6 + $0xc] sm:$0xf]  ;;  %v4493_v31 = vor.u32 %v6548_v21, %v4492_v20 }
  0x3e   : > { %3411 = vmatpush.bf16.xpose.msra.mxu2 %v4661_v34  ;;  %v6549_v25 = vld [vmem:[%s7483_s6 + $0x24] sm:$0xf0]  ;;  %v4502_v27 = vld [vmem:[%s7483_s6 + $0x28] sm:$0xf0]  ;;  %v4732_v28 = vld [vmem:[%s7483_s6 + $0x1d0] sm:$0xf] }
  0x3f   : > { %3424 = vmatpush.bf16.xpose.msra.mxu3 %v4665_v35  ;;  %v6606_v29 = vld [vmem:[%s7483_s6 + $0x1ec] sm:$0xf0]  ;;  %v6602_v30 = vld [vmem:[%s7483_s6 + $0x1d4] sm:$0xf]  ;;  %v4740_v33 = vld [vmem:[%s7483_s6 + $0x1d8] sm:$0xf]  ;;  %v4497_v35 = vor.u32 %v6544_v22, %v4494_v23  ;;  %v4501_v36 = vor.u32 %v6549_v25, %v4500_v24  ;;  %v4505_v39 = vor.u32 %v6545_v26, %v4502_v27 }
  0x40   : > { %v4734_v32 = vld [vmem:[%s7483_s6 + $0x1f0] sm:$0xf0]  ;;  %v6607_v34 = vld [vmem:[%s7483_s6 + $0x1f4] sm:$0xf0]  ;;  %v6603_v37 = vld [vmem:[%s7483_s6 + $0x1dc] sm:$0xf]  ;;  %v4733_v40 = vor.u32 %v6606_v29, %v4732_v28 }
  0x41   : > { %v4742_v38 = vld [vmem:[%s7483_s6 + $0x1f8] sm:$0xf0]  ;;  %v4737_v41 = vor.u32 %v6602_v30, %v4734_v32  ;;  %v4741_v42 = vor.u32 %v6607_v34, %v4740_v33  ;;  %v4708_v48 = vld [vmem:[%s7483_s6 + $0x198] sm:$0xf]  ;;  %v4638_v8 = vld [vmem:[%s7483_s6 + $0x130] sm:$0xf0] }
  0x42   : > { %v4745_v43 = vor.u32 %v6603_v37, %v4742_v38  ;;  %v6599_v49 = vld [vmem:[%s7483_s6 + $0x1b4] sm:$0xf0]  ;;  %v6595_v50 = vld [vmem:[%s7483_s6 + $0x19c] sm:$0xf]  ;;  %v4604_v21 = vld [vmem:[%s7483_s6 + $0xd0] sm:$0xf] }
  0x43   : > { %v4710_v51 = vld [vmem:[%s7483_s6 + $0x1b8] sm:$0xf0]  ;;  %v4709_v54 = vor.u32 %v6599_v49, %v4708_v48  ;;  %v4676_v61 = vld [vmem:[%s7483_s6 + $0x158] sm:$0xf]  ;;  %v6574_v22 = vld [vmem:[%s7483_s6 + $0xec] sm:$0xf0] }
  0x44   : > { %v4713_v55 = vor.u32 %v6595_v50, %v4710_v51  ;;  %v292_v60 = vld [vmem:[#allocation3] sm:$0xff]  ;;  %v6570_v23 = vld [vmem:[%s7483_s6 + $0xd4] sm:$0xf]  ;;  %v4605_v29 = vor.u32 %v6574_v22, %v4604_v21  ;;  %v4572_v33 = vld [vmem:[%s7483_s6 + $0x90] sm:$0xf]  ;;  %s4488_s7 = sshll.u32 %s7480_s28, 3 }
  0x45   : > { %3386 = vmatpush.bf16.xpose.msra.mxu0 %v4621_v44  ;;  %3399 = vmatpush.bf16.xpose.msra.mxu1 %v4625_v45  ;;  %v4700_v44 = vld [vmem:[%s7483_s6 + $0x190] sm:$0xf]  ;;  %v6591_v62 = vld [vmem:[%s7483_s6 + $0x174] sm:$0xf0]  ;;  %806 = vst [vmem:[#allocation1] ss:$9 sm:$0xff] %v292_v60 }
  0x46   : > { %3412 = vmatpush.bf16.xpose.msra.mxu2 %v4629_v46  ;;  %v6598_v45 = vld [vmem:[%s7483_s6 + $0x1ac] sm:$0xf0]  ;;  %v6594_v46 = vld [vmem:[%s7483_s6 + $0x194] sm:$0xf]  ;;  %v6587_v63 = vld [vmem:[%s7483_s6 + $0x15c] sm:$0xf]  ;;  %v4677_v3 = vor.u32 %v6591_v62, %v4676_v61 }
  0x47   : > { %3425 = vmatpush.bf16.xpose.msra.mxu3 %v4633_v47  ;;  %v4702_v47 = vld [vmem:[%s7483_s6 + $0x1b0] sm:$0xf0]  ;;  %v4701_v52 = vor.u32 %v6598_v45, %v4700_v44  ;;  %v4678_v0 = vld [vmem:[%s7483_s6 + $0x178] sm:$0xf0]  ;;  %v4644_v9 = vld [vmem:[%s7483_s6 + $0x118] sm:$0xf] }
  0x48   : > { %v4705_v53 = vor.u32 %v6594_v46, %v4702_v47  ;;  %v6583_v10 = vld [vmem:[%s7483_s6 + $0x134] sm:$0xf0]  ;;  %v6579_v15 = vld [vmem:[%s7483_s6 + $0x11c] sm:$0xf]  ;;  %v4606_v24 = vld [vmem:[%s7483_s6 + $0xf0] sm:$0xf0] }
  0x49   : > { %v4612_v25 = vld [vmem:[%s7483_s6 + $0xd8] sm:$0xf]  ;;  %v6571_v27 = vld [vmem:[%s7483_s6 + $0xdc] sm:$0xf]  ;;  %v4609_v30 = vor.u32 %v6570_v23, %v4606_v24  ;;  %v6566_v34 = vld [vmem:[%s7483_s6 + $0xac] sm:$0xf0] }
  0x4a   : > { %v6575_v26 = vld [vmem:[%s7483_s6 + $0xf4] sm:$0xf0]  ;;  %v4614_v28 = vld [vmem:[%s7483_s6 + $0xf8] sm:$0xf0]  ;;  %v4540_v45 = vld [vmem:[%s7483_s6 + $0x50] sm:$0xf] }
  0x4b   : > { %v4617_v32 = vor.u32 %v6571_v27, %v4614_v28  ;;  %v4580_v37 = vld [vmem:[%s7483_s6 + $0x98] sm:$0xf]  ;;  %v6558_v46 = vld [vmem:[%s7483_s6 + $0x6c] sm:$0xf0]  ;;  %v6554_v47 = vld [vmem:[%s7483_s6 + $0x54] sm:$0xf] }
  0x4c   : > { %v7583_v11 = vld [vmem:[#allocation1 + $0x12] sm:$0xff]  ;;  %v7586_v12 = vld [vmem:[#allocation1] sm:$0xff]  ;;  %v7590_v14 = vld [vmem:[#allocation1 + $0x9] sm:$0xff]  ;;  %s8273_s10 = scalar_lea.vmem [#allocation8], %s4488_s7  ;;  %vm4231_vm1 = vcmask 1045508   ;;  %vm4233_vm2 = vcmask 1043456  }
  0x4d   : > { %3387 = vmatpush.bf16.xpose.msra.mxu0 %v4589_v56  ;;  %3400 = vmatpush.bf16.xpose.msra.mxu1 %v4593_v57  ;;  %v4668_v56 = vld [vmem:[%s7483_s6 + $0x150] sm:$0xf]  ;;  %v6567_v38 = vld [vmem:[%s7483_s6 + $0xb4] sm:$0xf0]  ;;  %v4542_v48 = vld [vmem:[%s7483_s6 + $0x70] sm:$0xf0] }
  0x4e   : > { %3413 = vmatpush.bf16.xpose.msra.mxu2 %v4597_v58  ;;  %v6590_v57 = vld [vmem:[%s7483_s6 + $0x16c] sm:$0xf0]  ;;  %v6586_v58 = vld [vmem:[%s7483_s6 + $0x154] sm:$0xf]  ;;  %v4548_v49 = vld [vmem:[%s7483_s6 + $0x58] sm:$0xf] }
  0x4f   : > { %3426 = vmatpush.bf16.xpose.msra.mxu3 %v4601_v59  ;;  %v4670_v59 = vld [vmem:[%s7483_s6 + $0x170] sm:$0xf0]  ;;  %v4669_v1 = vor.u32 %v6590_v57, %v4668_v56  ;;  %v7588_v13 = vld [vmem:[#allocation1 + $0x1b] sm:$0xff]  ;;  %v6559_v50 = vld [vmem:[%s7483_s6 + $0x74] sm:$0xf0]  ;;  %vm4313_vm3 = vcmask 1040384  }
  0x50   : > { %v4673_v2 = vor.u32 %v6586_v58, %v4670_v59  ;;  %v6555_v51 = vld [vmem:[%s7483_s6 + $0x5c] sm:$0xf]  ;;  %v4508_v57 = vld [vmem:[%s7483_s6 + $0x10] sm:$0xf]  ;;  %v6546_v59 = vld [vmem:[%s7483_s6 + $0x14] sm:$0xf] }
  0x51   : > { %v6550_v58 = vld [vmem:[%s7483_s6 + $0x2c] sm:$0xf0]  ;;  %v4510_v60 = vld [vmem:[%s7483_s6 + $0x30] sm:$0xf0]  ;;  %v4516_v61 = vld [vmem:[%s7483_s6 + $0x18] sm:$0xf] }
  0x52   : > { %v6551_v62 = vld [vmem:[%s7483_s6 + $0x34] sm:$0xf0]  ;;  %v7639_v22 = vld [vmem:[#allocation1 + $0x36] sm:$0xff]  ;;  %v4940_v23 = vld [vmem:[%s7483_s6 + $0x380] sm:$0xf]  ;;  %s6539_s19 = sshll.u32 %s7325_s15, 3 }
  0x53   : > { %v7637_v21 = vld [vmem:[#allocation1 + $0x24] sm:$0xff]  ;;  %v6660_v24 = vld [vmem:[%s7483_s6 + $0x39c] sm:$0xf0]  ;;  %v4948_v27 = vld [vmem:[%s7483_s6 + $0x388] sm:$0xf]  ;;  %vm4317_vm4 = vcmask 1042434   ;;  %s4347_s4 = scalar_lea.hbm %s8740_s3, %s6539_s19 }
  0x54   : > { %v6661_v28 = vld [vmem:[%s7483_s6 + $0x3a4] sm:$0xf0]  ;;  %vm4322_vm5 = vcmask 1044484   ;;  %vm4326_vm6 = vcmask 1046534   ;;  %s278_s15 = scalar_lea.vmem [#allocation9], %s4488_s7  ;;  %s4351_s8 = sshll.u32 %s4347_s4, 4  ;;  %s4352_s8 = int_to_ptr.hbm [resolvable:$true] %s4351_s8 }
  0x55   : > { %3388 = vmatpush.bf16.xpose.msra.mxu0 %v4557_v4  ;;  %3401 = vmatpush.bf16.xpose.msra.mxu1 %v4561_v5  ;;  %v4681_v4 = vor.u32 %v6587_v63, %v4678_v0  ;;  %v4636_v5 = vld [vmem:[%s7483_s6 + $0x110] sm:$0xf]  ;;  %v6547_v63 = vld [vmem:[%s7483_s6 + $0x1c] sm:$0xf]  ;;  %s4349_s5 = sshll.u32 %s278_s15, 4  ;;  %s4335_s9 = scalar_lea.sflag [#allocation5], %s7480_s28  ;;  %s4350_s5 = int_to_ptr.vmem [resolvable:$true] %s4349_s5 }
  0x56   : > { %3414 = vmatpush.bf16.xpose.msra.mxu2 %v4565_v6  ;;  %v6582_v6 = vld [vmem:[%s7483_s6 + $0x12c] sm:$0xf0]  ;;  %v4518_v0 = vld [vmem:[%s7483_s6 + $0x38] sm:$0xf0]  ;;  %s7261_s11 = sshra.s32 %s4352_s8, 4  ;;  %s7267_s26 = scalar_lea.hbm %s8740_s3, 32  ;;  %s7262_s11 = int_to_ptr.hbm [resolvable:$true] %s7261_s11 }
  0x57   : > { %3427 = vmatpush.bf16.xpose.msra.mxu3 %v4569_v7  ;;  %v6578_v7 = vld [vmem:[%s7483_s6 + $0x114] sm:$0xf]  ;;  %s7263_s22 = scalar_lea.hbm %s7262_s11, 8  ;;  %p7268_p8 = scmp.lt.s32.totalorder %s7262_s11, %s8740_s3 }
  0x58   : > { %p7264_p5 = scmp.ne.s32.totalorder %s7262_s11, %s7263_s22  ;;  %p7269_p9 = scmp.lt.s32.totalorder %s7267_s26, %s7263_s22 }
  0x5a   : > { %p7265_p6 = pnand %p7264_p5, %p7445_p13  ;;  %p7270_p10 = por %p7269_p9, %p7268_p8 }
  0x5c   : > { %p7266_p7 = pneg %p7265_p6 }
  0x5d   : > { %3389 = vmatpush.bf16.xpose.msra.mxu0 %v4525_v16  ;;  %3402 = vmatpush.bf16.xpose.msra.mxu1 %v4529_v17  ;;  %v4646_v16 = vld [vmem:[%s7483_s6 + $0x138] sm:$0xf0]  ;;  %v4637_v17 = vor.u32 %v6582_v6, %v4636_v5  ;;  %v4974_v5 = vld [vmem:[%s7483_s6 + $0x3e0] sm:$0xf0]  ;;  %v4980_v6 = vld [vmem:[%s7483_s6 + $0x3c8] sm:$0xf] }
  0x5e   : > { %3415 = vmatpush.bf16.xpose.msra.mxu2 %v4533_v18  ;;  %v4641_v18 = vor.u32 %v6578_v7, %v4638_v8  ;;  %v4649_v20 = vor.u32 %v6579_v15, %v4646_v16  ;;  %v6669_v7 = vld [vmem:[%s7483_s6 + $0x3e4] sm:$0xf0]  ;;  %v4513_v8 = vor.u32 %v6546_v59, %v4510_v60  ;;  %v4982_v15 = vld [vmem:[%s7483_s6 + $0x3e8] sm:$0xf0]  ;;  %v4521_v16 = vor.u32 %v6547_v63, %v4518_v0  ;;  %v6632_v63 = vld [vmem:[%s7483_s6 + $0x2c4] sm:$0xf]  ;;  %p7271_p11 = pnand %p7270_p10, %p7266_p7 }
  0x5f   : > { %3428 = vmatpush.bf16.xpose.msra.mxu3 %v4537_v19  ;;  %v4645_v19 = vor.u32 %v6583_v10, %v4644_v9  ;;  %v4517_v9 = vor.u32 %v6551_v62, %v4516_v61  ;;  %v6665_v10 = vld [vmem:[%s7483_s6 + $0x3cc] sm:$0xf]  ;;  %v4844_v61 = vld [vmem:[%s7483_s6 + $0x2c0] sm:$0xf]  ;;  %v4846_v0 = vld [vmem:[%s7483_s6 + $0x2e0] sm:$0xf0] }
  0x60   : > { %v6636_v62 = vld [vmem:[%s7483_s6 + $0x2dc] sm:$0xf0] }
  0x65   : > { %3390 = vmatpush.bf16.xpose.msra.mxu0 %v4493_v31  ;;  %3403 = vmatpush.bf16.xpose.msra.mxu1 %v4497_v35  ;;  %v4613_v31 = vor.u32 %v6575_v26, %v4612_v25  ;;  %v6562_v35 = vld [vmem:[%s7483_s6 + $0x94] sm:$0xf]  ;;  %v6656_v25 = vld [vmem:[%s7483_s6 + $0x384] sm:$0xf] }
  0x66   : > { %3416 = vmatpush.bf16.xpose.msra.mxu2 %v4501_v36  ;;  %v4574_v36 = vld [vmem:[%s7483_s6 + $0xb0] sm:$0xf0]  ;;  %v4942_v26 = vld [vmem:[%s7483_s6 + $0x3a0] sm:$0xf0] }
  0x67   : > { %3429 = vmatpush.bf16.xpose.msra.mxu3 %v4505_v39  ;;  %v6563_v39 = vld [vmem:[%s7483_s6 + $0x9c] sm:$0xf] }
  0x6c   : > { %3391 = vmatmul.bf16.vlgmr.msra.gmra.mxu0 %v7586_v12  ;;  %3404 = vmatmul.bf16.vlgmr.msra.gmra.mxu1 %v7590_v14 }
  0x6d   : > { %3435 = vmatpush.bf16.xpose.msrb.mxu0 %v4733_v40  ;;  %3448 = vmatpush.bf16.xpose.msrb.mxu1 %v4737_v41  ;;  %v4582_v40 = vld [vmem:[%s7483_s6 + $0xb8] sm:$0xf0]  ;;  %v4573_v41 = vor.u32 %v6566_v34, %v4572_v33  ;;  %v4941_v33 = vor.u32 %v6660_v24, %v4940_v23  ;;  %v4945_v34 = vor.u32 %v6656_v25, %v4942_v26 }
  0x6e   : > { %3461 = vmatpush.bf16.xpose.msrb.mxu2 %v4741_v42  ;;  %3430 = vmatmul.bf16.vlgmr.msra.gmra.mxu3 %v7588_v13  ;;  %v4577_v42 = vor.u32 %v6562_v35, %v4574_v36  ;;  %v4585_v44 = vor.u32 %v6563_v39, %v4582_v40  ;;  %v4949_v35 = vor.u32 %v6661_v28, %v4948_v27  ;;  %v6648_v39 = vld [vmem:[%s7483_s6 + $0x344] sm:$0xf]  ;;  %v4780_v27 = vld [vmem:[%s7483_s6 + $0x240] sm:$0xf] }
  0x6f   : > { %3474 = vmatpush.bf16.xpose.msrb.mxu3 %v4745_v43  ;;  %3417 = vmatmul.bf16.vlgmr.msra.gmra.mxu2 %v7583_v11  ;;  %v4581_v43 = vor.u32 %v6567_v38, %v4580_v37  ;;  %v4908_v37 = vld [vmem:[%s7483_s6 + $0x340] sm:$0xf]  ;;  %v4910_v40 = vld [vmem:[%s7483_s6 + $0x360] sm:$0xf0] }
  0x70   : > { %v6652_v38 = vld [vmem:[%s7483_s6 + $0x35c] sm:$0xf0] }
  0x71   : > { %v6620_v28 = vld [vmem:[%s7483_s6 + $0x25c] sm:$0xf0] }
  0x75   : > { %3436 = vmatpush.bf16.xpose.msrb.mxu0 %v4701_v52  ;;  %3449 = vmatpush.bf16.xpose.msrb.mxu1 %v4705_v53  ;;  %v4550_v52 = vld [vmem:[%s7483_s6 + $0x78] sm:$0xf0]  ;;  %v4541_v53 = vor.u32 %v6558_v46, %v4540_v45  ;;  %v4909_v45 = vor.u32 %v6652_v38, %v4908_v37  ;;  %v4913_v46 = vor.u32 %v6648_v39, %v4910_v40 }
  0x76   : > { %3462 = vmatpush.bf16.xpose.msrb.mxu2 %v4709_v54  ;;  %v4545_v54 = vor.u32 %v6554_v47, %v4542_v48  ;;  %v4553_v56 = vor.u32 %v6555_v51, %v4550_v52  ;;  %v6640_v51 = vld [vmem:[%s7483_s6 + $0x304] sm:$0xf]  ;;  %v4781_v37 = vor.u32 %v6620_v28, %v4780_v27  ;;  %v4892_v27 = vld [vmem:[%s7483_s6 + $0x310] sm:$0xf] }
  0x77   : > { %3475 = vmatpush.bf16.xpose.msrb.mxu3 %v4713_v55  ;;  %v4549_v55 = vor.u32 %v6559_v50, %v4548_v49  ;;  %v4876_v49 = vld [vmem:[%s7483_s6 + $0x300] sm:$0xf]  ;;  %v4878_v52 = vld [vmem:[%s7483_s6 + $0x320] sm:$0xf0]  ;;  %v6646_v28 = vld [vmem:[%s7483_s6 + $0x32c] sm:$0xf0] }
  0x78   : > { %v6644_v50 = vld [vmem:[%s7483_s6 + $0x31c] sm:$0xf0] }
  0x7d   : > { %3437 = vmatpush.bf16.xpose.msrb.mxu0 %v4669_v1  ;;  %3450 = vmatpush.bf16.xpose.msrb.mxu1 %v4673_v2  ;;  %v4972_v1 = vld [vmem:[%s7483_s6 + $0x3c0] sm:$0xf] }
  0x7e   : > { %3463 = vmatpush.bf16.xpose.msrb.mxu2 %v4677_v3  ;;  %v6668_v2 = vld [vmem:[%s7483_s6 + $0x3dc] sm:$0xf0]  ;;  %v6664_v3 = vld [vmem:[%s7483_s6 + $0x3c4] sm:$0xf] }
  0x7f   : > { %3476 = vmatpush.bf16.xpose.msrb.mxu3 %v4681_v4  ;;  %v4509_v4 = vor.u32 %v6550_v58, %v4508_v57  ;;  %v4877_v57 = vor.u32 %v6644_v50, %v4876_v49  ;;  %v4881_v58 = vor.u32 %v6640_v51, %v4878_v52  ;;  %v4988_v49 = vld [vmem:[%s7483_s6 + $0x3d0] sm:$0xf]  ;;  %v6666_v51 = vld [vmem:[%s7483_s6 + $0x3d4] sm:$0xf] }
  0x80   : > { %v6670_v50 = vld [vmem:[%s7483_s6 + $0x3ec] sm:$0xf0] }
  0x85   : > { %3438 = vmatpush.bf16.xpose.msrb.mxu0 %v4637_v17  ;;  %3451 = vmatpush.bf16.xpose.msrb.mxu1 %v4641_v18  ;;  %v4973_v17 = vor.u32 %v6668_v2, %v4972_v1  ;;  %v4977_v18 = vor.u32 %v6664_v3, %v4974_v5  ;;  %v4852_v1 = vld [vmem:[%s7483_s6 + $0x2c8] sm:$0xf]  ;;  %v6633_v3 = vld [vmem:[%s7483_s6 + $0x2cc] sm:$0xf]  ;;  %v4845_v5 = vor.u32 %v6636_v62, %v4844_v61 }
  0x86   : > { %3464 = vmatpush.bf16.xpose.msrb.mxu2 %v4645_v19  ;;  %v4981_v19 = vor.u32 %v6669_v7, %v4980_v6  ;;  %v6637_v2 = vld [vmem:[%s7483_s6 + $0x2e4] sm:$0xf0]  ;;  %v4849_v6 = vor.u32 %v6632_v63, %v4846_v0  ;;  %v4989_v61 = vor.u32 %v6670_v50, %v4988_v49 }
  0x87   : > { %3477 = vmatpush.bf16.xpose.msrb.mxu3 %v4649_v20  ;;  %v4985_v20 = vor.u32 %v6665_v10, %v4982_v15  ;;  %v4853_v7 = vor.u32 %v6637_v2, %v4852_v1  ;;  %v6628_v10 = vld [vmem:[%s7483_s6 + $0x29c] sm:$0xf0]  ;;  %v6624_v15 = vld [vmem:[%s7483_s6 + $0x284] sm:$0xf]  ;;  %v4956_v1 = vld [vmem:[%s7483_s6 + $0x390] sm:$0xf] }
  0x88   : > { %v6662_v2 = vld [vmem:[%s7483_s6 + $0x3ac] sm:$0xf0] }
  0x8d   : > { %3439 = vmatpush.bf16.xpose.msrb.mxu0 %v4605_v29  ;;  %3452 = vmatpush.bf16.xpose.msrb.mxu1 %v4609_v30  ;;  %v6657_v29 = vld [vmem:[%s7483_s6 + $0x38c] sm:$0xf] }
  0x8e   : > { %3465 = vmatpush.bf16.xpose.msrb.mxu2 %v4613_v31  ;;  %v4950_v30 = vld [vmem:[%s7483_s6 + $0x3a8] sm:$0xf0]  ;;  %v7649_v31 = vld [vmem:[#allocation1 + $0x2d] sm:$0xff] }
  0x8f   : > { %3478 = vmatpush.bf16.xpose.msrb.mxu3 %v4617_v32  ;;  %v7651_v32 = vld [vmem:[#allocation1 + $0x3f] sm:$0xff]  ;;  %v4953_v36 = vor.u32 %v6657_v29, %v4950_v30  ;;  %v6616_v29 = vld [vmem:[%s7483_s6 + $0x244] sm:$0xf] }
  0x90   : > { %v4782_v30 = vld [vmem:[%s7483_s6 + $0x260] sm:$0xf0] }
  0x91   : > { %v4785_v38 = vor.u32 %v6616_v29, %v4782_v30  ;;  %v6642_v29 = vld [vmem:[%s7483_s6 + $0x314] sm:$0xf] }
  0x92   : > { %v4894_v30 = vld [vmem:[%s7483_s6 + $0x330] sm:$0xf0] }
  0x95   : > { %3440 = vmatpush.bf16.xpose.msrb.mxu0 %v4573_v41  ;;  %3453 = vmatpush.bf16.xpose.msrb.mxu1 %v4577_v42  ;;  %v4916_v41 = vld [vmem:[%s7483_s6 + $0x348] sm:$0xf] }
  0x96   : > { %3466 = vmatpush.bf16.xpose.msrb.mxu2 %v4581_v43  ;;  %v6653_v42 = vld [vmem:[%s7483_s6 + $0x364] sm:$0xf0]  ;;  %v6649_v43 = vld [vmem:[%s7483_s6 + $0x34c] sm:$0xf] }
  0x97   : > { %3479 = vmatpush.bf16.xpose.msrb.mxu3 %v4585_v44  ;;  %v4918_v44 = vld [vmem:[%s7483_s6 + $0x368] sm:$0xf0]  ;;  %v4917_v47 = vor.u32 %v6653_v42, %v4916_v41  ;;  %v4748_v41 = vld [vmem:[%s7483_s6 + $0x200] sm:$0xf] }
  0x98   : > { %v4921_v48 = vor.u32 %v6649_v43, %v4918_v44  ;;  %v6612_v42 = vld [vmem:[%s7483_s6 + $0x21c] sm:$0xf0]  ;;  %v6608_v43 = vld [vmem:[%s7483_s6 + $0x204] sm:$0xf] }
  0x99   : > { %v4750_v44 = vld [vmem:[%s7483_s6 + $0x220] sm:$0xf0]  ;;  %v4749_v52 = vor.u32 %v6612_v42, %v4748_v41  ;;  %v4860_v41 = vld [vmem:[%s7483_s6 + $0x2d0] sm:$0xf] }
  0x9a   : > { %v6638_v42 = vld [vmem:[%s7483_s6 + $0x2ec] sm:$0xf0] }
  0x9b   : > { %v4861_v49 = vor.u32 %v6638_v42, %v4860_v41  ;;  %v5236_v41 = vld [vmem:[%s7483_s6 + $0x5c8] sm:$0xf] }
  0x9c   : > { %v6733_v42 = vld [vmem:[%s7483_s6 + $0x5e4] sm:$0xf0] }
  0x9d   : > { %3441 = vmatpush.bf16.xpose.msrb.mxu0 %v4541_v53  ;;  %3454 = vmatpush.bf16.xpose.msrb.mxu1 %v4545_v54  ;;  %v4884_v53 = vld [vmem:[%s7483_s6 + $0x308] sm:$0xf] }
  0x9e   : > { %3467 = vmatpush.bf16.xpose.msrb.mxu2 %v4549_v55  ;;  %v6645_v54 = vld [vmem:[%s7483_s6 + $0x324] sm:$0xf0]  ;;  %v6641_v55 = vld [vmem:[%s7483_s6 + $0x30c] sm:$0xf] }
  0x9f   : > { %3480 = vmatpush.bf16.xpose.msrb.mxu3 %v4553_v56  ;;  %v4886_v56 = vld [vmem:[%s7483_s6 + $0x328] sm:$0xf0]  ;;  %v4885_v59 = vor.u32 %v6645_v54, %v4884_v53  ;;  %v4990_v53 = vld [vmem:[%s7483_s6 + $0x3f0] sm:$0xf0]  ;;  %v4996_v54 = vld [vmem:[%s7483_s6 + $0x3d8] sm:$0xf] }
  0xa0   : > { %v4889_v60 = vor.u32 %v6641_v55, %v4886_v56  ;;  %v6671_v55 = vld [vmem:[%s7483_s6 + $0x3f4] sm:$0xf0]  ;;  %v4753_v56 = vor.u32 %v6608_v43, %v4750_v44  ;;  %v4993_v62 = vor.u32 %v6666_v51, %v4990_v53  ;;  %v6634_v43 = vld [vmem:[%s7483_s6 + $0x2d4] sm:$0xf] }
  0xa1   : > { %v4997_v63 = vor.u32 %v6671_v55, %v4996_v54  ;;  %v4862_v44 = vld [vmem:[%s7483_s6 + $0x2f0] sm:$0xf0] }
  0xa2   : > { %v4865_v51 = vor.u32 %v6634_v43, %v4862_v44 }
  0xa5   : > { %3442 = vmatpush.bf16.xpose.msrb.mxu0 %v4509_v4  ;;  %3455 = vmatpush.bf16.xpose.msrb.mxu1 %v4513_v8  ;;  %v4854_v4 = vld [vmem:[%s7483_s6 + $0x2e8] sm:$0xf0] }
  0xa6   : > { %3468 = vmatpush.bf16.xpose.msrb.mxu2 %v4517_v9  ;;  %v4857_v8 = vor.u32 %v6633_v3, %v4854_v4  ;;  %v4812_v9 = vld [vmem:[%s7483_s6 + $0x280] sm:$0xf]  ;;  %v6658_v3 = vld [vmem:[%s7483_s6 + $0x394] sm:$0xf] }
  0xa7   : > { %3481 = vmatpush.bf16.xpose.msrb.mxu3 %v4521_v16  ;;  %v4814_v16 = vld [vmem:[%s7483_s6 + $0x2a0] sm:$0xf0]  ;;  %v4813_v23 = vor.u32 %v6628_v10, %v4812_v9  ;;  %v4958_v4 = vld [vmem:[%s7483_s6 + $0x3b0] sm:$0xf0]  ;;  %v4957_v9 = vor.u32 %v6662_v2, %v4956_v1  ;;  %v4838_v1 = vld [vmem:[%s7483_s6 + $0x2b8] sm:$0xf0] }
  0xa8   : > { %v4817_v24 = vor.u32 %v6624_v15, %v4814_v16  ;;  %v4961_v10 = vor.u32 %v6658_v3, %v4958_v4 }
  0xac   : > { %3443 = vmatmul.bf16.vlgmr.msrb.gmra.mxu0 %v7637_v21  ;;  %3456 = vmatmul.bf16.vlgmr.msrb.gmra.mxu1 %v7649_v31 }
  0xad   : > { %3487 = vmatpush.bf16.xpose.msra.mxu0 %v4973_v17  ;;  %3500 = vmatpush.bf16.xpose.msra.mxu1 %v4977_v18  ;;  %v4820_v17 = vld [vmem:[%s7483_s6 + $0x288] sm:$0xf] }
  0xae   : > { %3513 = vmatpush.bf16.xpose.msra.mxu2 %v4981_v19  ;;  %3482 = vmatmul.bf16.vlgmr.msrb.gmra.mxu3 %v7651_v32  ;;  %v6629_v18 = vld [vmem:[%s7483_s6 + $0x2a4] sm:$0xf0]  ;;  %v6625_v19 = vld [vmem:[%s7483_s6 + $0x28c] sm:$0xf] }
  0xaf   : > { %3526 = vmatpush.bf16.xpose.msra.mxu3 %v4985_v20  ;;  %3469 = vmatmul.bf16.vlgmr.msrb.gmra.mxu2 %v7639_v22  ;;  %v4822_v20 = vld [vmem:[%s7483_s6 + $0x2a8] sm:$0xf0]  ;;  %v4821_v25 = vor.u32 %v6629_v18, %v4820_v17  ;;  %v4924_v17 = vld [vmem:[%s7483_s6 + $0x350] sm:$0xf] }
  0xb0   : > { %v4825_v26 = vor.u32 %v6625_v19, %v4822_v20  ;;  %v6654_v18 = vld [vmem:[%s7483_s6 + $0x36c] sm:$0xf0]  ;;  %v6650_v19 = vld [vmem:[%s7483_s6 + $0x354] sm:$0xf] }
  0xb1   : > { %v4926_v20 = vld [vmem:[%s7483_s6 + $0x370] sm:$0xf0] }
  0xb5   : > { %3488 = vmatpush.bf16.xpose.msra.mxu0 %v4941_v33  ;;  %3501 = vmatpush.bf16.xpose.msra.mxu1 %v4945_v34  ;;  %v4788_v33 = vld [vmem:[%s7483_s6 + $0x248] sm:$0xf] }
  0xb6   : > { %3514 = vmatpush.bf16.xpose.msra.mxu2 %v4949_v35  ;;  %v6621_v34 = vld [vmem:[%s7483_s6 + $0x264] sm:$0xf0]  ;;  %v6617_v35 = vld [vmem:[%s7483_s6 + $0x24c] sm:$0xf] }
  0xb7   : > { %3527 = vmatpush.bf16.xpose.msra.mxu3 %v4953_v36  ;;  %v4790_v36 = vld [vmem:[%s7483_s6 + $0x268] sm:$0xf0]  ;;  %v4789_v39 = vor.u32 %v6621_v34, %v4788_v33  ;;  %v4900_v33 = vld [vmem:[%s7483_s6 + $0x318] sm:$0xf] }
  0xb8   : > { %v4793_v40 = vor.u32 %v6617_v35, %v4790_v36  ;;  %v6647_v34 = vld [vmem:[%s7483_s6 + $0x334] sm:$0xf0]  ;;  %v6643_v35 = vld [vmem:[%s7483_s6 + $0x31c] sm:$0xf] }
  0xb9   : > { %v4902_v36 = vld [vmem:[%s7483_s6 + $0x338] sm:$0xf0] }
  0xbd   : > { %3489 = vmatpush.bf16.xpose.msra.mxu0 %v4909_v45  ;;  %3502 = vmatpush.bf16.xpose.msra.mxu1 %v4913_v46  ;;  %v4756_v45 = vld [vmem:[%s7483_s6 + $0x208] sm:$0xf] }
  0xbe   : > { %3515 = vmatpush.bf16.xpose.msra.mxu2 %v4917_v47  ;;  %v6613_v46 = vld [vmem:[%s7483_s6 + $0x224] sm:$0xf0]  ;;  %v6609_v47 = vld [vmem:[%s7483_s6 + $0x20c] sm:$0xf] }
  0xbf   : > { %3528 = vmatpush.bf16.xpose.msra.mxu3 %v4921_v48  ;;  %v4758_v48 = vld [vmem:[%s7483_s6 + $0x228] sm:$0xf0] }
  0xc5   : > { %3490 = vmatpush.bf16.xpose.msra.mxu0 %v4877_v57  ;;  %3503 = vmatpush.bf16.xpose.msra.mxu1 %v4881_v58  ;;  %v4757_v57 = vor.u32 %v6613_v46, %v4756_v45  ;;  %v6667_v58 = vld [vmem:[%s7483_s6 + $0x3dc] sm:$0xf]  ;;  %v4868_v45 = vld [vmem:[%s7483_s6 + $0x2d8] sm:$0xf] }
  0xc6   : > { %3516 = vmatpush.bf16.xpose.msra.mxu2 %v4885_v59  ;;  %v4998_v59 = vld [vmem:[%s7483_s6 + $0x3f8] sm:$0xf0]  ;;  %v6639_v46 = vld [vmem:[%s7483_s6 + $0x2f4] sm:$0xf0] }
  0xc7   : > { %3529 = vmatpush.bf16.xpose.msra.mxu3 %v4889_v60  ;;  %v4761_v60 = vor.u32 %v6609_v47, %v4758_v48  ;;  %v5001_v0 = vor.u32 %v6667_v58, %v4998_v59  ;;  %v6635_v47 = vld [vmem:[%s7483_s6 + $0x2dc] sm:$0xf]  ;;  %v6626_v58 = vld [vmem:[%s7483_s6 + $0x294] sm:$0xf] }
  0xc8   : > { %v4870_v48 = vld [vmem:[%s7483_s6 + $0x2f8] sm:$0xf0] }
  0xc9   : > { %v4873_v54 = vor.u32 %v6635_v47, %v4870_v48 }
  0xcd   : > { %3491 = vmatpush.bf16.xpose.msra.mxu0 %v4845_v5  ;;  %3504 = vmatpush.bf16.xpose.msra.mxu1 %v4849_v6  ;;  %v4964_v5 = vld [vmem:[%s7483_s6 + $0x398] sm:$0xf] }
  0xce   : > { %3517 = vmatpush.bf16.xpose.msra.mxu2 %v4853_v7  ;;  %v6663_v6 = vld [vmem:[%s7483_s6 + $0x3b4] sm:$0xf0]  ;;  %v6659_v7 = vld [vmem:[%s7483_s6 + $0x39c] sm:$0xf] }
  0xcf   : > { %3530 = vmatpush.bf16.xpose.msra.mxu3 %v4857_v8  ;;  %v4966_v8 = vld [vmem:[%s7483_s6 + $0x3b8] sm:$0xf0]  ;;  %v4965_v15 = vor.u32 %v6663_v6, %v4964_v5 }
  0xd0   : > { %v4969_v16 = vor.u32 %v6659_v7, %v4966_v8 }
  0xd5   : > { %3492 = vmatpush.bf16.xpose.msra.mxu0 %v4813_v23  ;;  %3505 = vmatpush.bf16.xpose.msra.mxu1 %v4817_v24  ;;  %v6655_v23 = vld [vmem:[%s7483_s6 + $0x374] sm:$0xf0]  ;;  %v4929_v24 = vor.u32 %v6650_v19, %v4926_v20 }
  0xd6   : > { %3518 = vmatpush.bf16.xpose.msra.mxu2 %v4821_v25  ;;  %v4804_v19 = vld [vmem:[%s7483_s6 + $0x258] sm:$0xf] }
  0xd7   : > { %3531 = vmatpush.bf16.xpose.msra.mxu3 %v4825_v26  ;;  %v6623_v20 = vld [vmem:[%s7483_s6 + $0x274] sm:$0xf0] }
  0xdd   : > { %3493 = vmatpush.bf16.xpose.msra.mxu0 %v4781_v37  ;;  %3506 = vmatpush.bf16.xpose.msra.mxu1 %v4785_v38  ;;  %v4893_v37 = vor.u32 %v6646_v28, %v4892_v27  ;;  %v4897_v38 = vor.u32 %v6642_v29, %v4894_v30  ;;  %v6614_v27 = vld [vmem:[%s7483_s6 + $0x22c] sm:$0xf0]  ;;  %v6610_v28 = vld [vmem:[%s7483_s6 + $0x214] sm:$0xf]  ;;  %v4772_v30 = vld [vmem:[%s7483_s6 + $0x218] sm:$0xf] }
  0xde   : > { %3519 = vmatpush.bf16.xpose.msra.mxu2 %v4789_v39  ;;  %v4901_v39 = vor.u32 %v6647_v34, %v4900_v33  ;;  %v4766_v29 = vld [vmem:[%s7483_s6 + $0x230] sm:$0xf0]  ;;  %v6615_v33 = vld [vmem:[%s7483_s6 + $0x234] sm:$0xf0]  ;;  %v6611_v34 = vld [vmem:[%s7483_s6 + $0x21c] sm:$0xf] }
  0xdf   : > { %3532 = vmatpush.bf16.xpose.msra.mxu3 %v4793_v40  ;;  %v4905_v40 = vor.u32 %v6643_v35, %v4902_v36  ;;  %v4774_v35 = vld [vmem:[%s7483_s6 + $0x238] sm:$0xf0]  ;;  %v5228_v36 = vld [vmem:[%s7483_s6 + $0x5c0] sm:$0xf]  ;;  %v4769_v43 = vor.u32 %v6610_v28, %v4766_v29  ;;  %v4773_v44 = vor.u32 %v6615_v33, %v4772_v30 }
  0xe0   : > { %v4777_v47 = vor.u32 %v6611_v34, %v4774_v35  ;;  %v5100_v34 = vld [vmem:[%s7483_s6 + $0x4c0] sm:$0xf] }
  0xe1   : > { %v6700_v35 = vld [vmem:[%s7483_s6 + $0x4dc] sm:$0xf0] }
  0xe5   : > { %3494 = vmatpush.bf16.xpose.msra.mxu0 %v4749_v52  ;;  %3507 = vmatpush.bf16.xpose.msra.mxu1 %v4753_v56  ;;  %v4869_v52 = vor.u32 %v6639_v46, %v4868_v45  ;;  %v4828_v56 = vld [vmem:[%s7483_s6 + $0x290] sm:$0xf]  ;;  %v6729_v45 = vld [vmem:[%s7483_s6 + $0x5cc] sm:$0xf] }
  0xe6   : > { %3520 = vmatpush.bf16.xpose.msra.mxu2 %v4757_v57  ;;  %v6630_v57 = vld [vmem:[%s7483_s6 + $0x2ac] sm:$0xf0]  ;;  %v5238_v46 = vld [vmem:[%s7483_s6 + $0x5e8] sm:$0xf0] }
  0xe7   : > { %3533 = vmatpush.bf16.xpose.msra.mxu3 %v4761_v60  ;;  %v4830_v60 = vld [vmem:[%s7483_s6 + $0x2b0] sm:$0xf0]  ;;  %v4829_v2 = vor.u32 %v6630_v57, %v4828_v56  ;;  %v5204_v56 = vld [vmem:[%s7483_s6 + $0x588] sm:$0xf] }
  0xe8   : > { %v4833_v5 = vor.u32 %v6626_v58, %v4830_v60  ;;  %v6725_v57 = vld [vmem:[%s7483_s6 + $0x5a4] sm:$0xf0]  ;;  %v6721_v58 = vld [vmem:[%s7483_s6 + $0x58c] sm:$0xf] }
  0xe9   : > { %v3392_v50 = vpop.f32.mrf.mxu0  ;;  %v3405_v53 = vpop.f32.mrf.mxu1 }
  0xea   : > { %v3406_v55 = vadd.f32 %v3405_v53, %v3392_v50  ;;  %v5237_v50 = vor.u32 %v6733_v42, %v5236_v41  ;;  %v6724_v53 = vld [vmem:[%s7483_s6 + $0x59c] sm:$0xf0]  ;;  %v5110_v41 = vld [vmem:[%s7483_s6 + $0x4e8] sm:$0xf0]  ;;  %v5101_v42 = vor.u32 %v6700_v35, %v5100_v34  ;;  %v6726_v34 = vld [vmem:[%s7483_s6 + $0x5ac] sm:$0xf0] }
  0xeb   : > { %v6722_v35 = vld [vmem:[%s7483_s6 + $0x594] sm:$0xf] }
  0xec   : > { %3495 = vmatmul.bf16.vlgmr.msra.gmra.mxu0 %v7586_v12  ;;  %3508 = vmatmul.bf16.vlgmr.msra.gmra.mxu1 %v7590_v14  ;;  %v4932_v12 = vld [vmem:[%s7483_s6 + $0x358] sm:$0xf]  ;;  %v4934_v14 = vld [vmem:[%s7483_s6 + $0x378] sm:$0xf0] }
  0xed   : > { %3539 = vmatpush.bf16.xpose.msrb.mxu0 %v4989_v61  ;;  %3552 = vmatpush.bf16.xpose.msrb.mxu1 %v4993_v62  ;;  %v4933_v25 = vor.u32 %v6655_v23, %v4932_v12  ;;  %v4836_v61 = vld [vmem:[%s7483_s6 + $0x298] sm:$0xf]  ;;  %v6619_v12 = vld [vmem:[%s7483_s6 + $0x25c] sm:$0xf] }
  0xee   : > { %3565 = vmatpush.bf16.xpose.msrb.mxu2 %v4997_v63  ;;  %3534 = vmatmul.bf16.vlgmr.msra.gmra.mxu3 %v7588_v13  ;;  %v4925_v13 = vor.u32 %v6654_v18, %v4924_v17  ;;  %v6631_v62 = vld [vmem:[%s7483_s6 + $0x2b4] sm:$0xf0]  ;;  %v4798_v18 = vld [vmem:[%s7483_s6 + $0x270] sm:$0xf0]  ;;  %v4806_v23 = vld [vmem:[%s7483_s6 + $0x278] sm:$0xf0] }
  0xef   : > { %3578 = vmatpush.bf16.xpose.msrb.mxu3 %v5001_v0  ;;  %3521 = vmatmul.bf16.vlgmr.msra.gmra.mxu2 %v7583_v11  ;;  %v6651_v11 = vld [vmem:[%s7483_s6 + $0x35c] sm:$0xf]  ;;  %v4837_v6 = vor.u32 %v6631_v62, %v4836_v61  ;;  %v5205_v62 = vor.u32 %v6725_v57, %v5204_v56 }
  0xf0   : > { %v4937_v26 = vor.u32 %v6651_v11, %v4934_v14  ;;  %v6627_v0 = vld [vmem:[%s7483_s6 + $0x29c] sm:$0xf] }
  0xf1   : > { %v3431_v3 = vpop.f32.mrf.mxu3  ;;  %v3394_v4 = vpop.f32.mrf.mxu0 }
  0xf2   : > { %v3418_v59 = vpop.f32.mrf.mxu2  ;;  %v3407_v8 = vpop.f32.mrf.mxu1  ;;  %v6717_v4 = vld [vmem:[%s7483_s6 + $0x564] sm:$0xf0] }
  0xf3   : > { %v3419_v63 = vadd.f32 %v3418_v59, %v3406_v55  ;;  %v5198_v55 = vld [vmem:[%s7483_s6 + $0x5a0] sm:$0xf0]  ;;  %v5206_v59 = vld [vmem:[%s7483_s6 + $0x5a8] sm:$0xf0] }
  0xf5   : > { %3540 = vmatpush.bf16.xpose.msrb.mxu0 %v4957_v9  ;;  %3553 = vmatpush.bf16.xpose.msrb.mxu1 %v4961_v10  ;;  %v7757_v7 = vadd.f32 %v3431_v3, %v3419_v63  ;;  %v4841_v9 = vor.u32 %v6627_v0, %v4838_v1  ;;  %v4796_v10 = vld [vmem:[%s7483_s6 + $0x250] sm:$0xf]  ;;  %v5209_v63 = vor.u32 %v6721_v58, %v5206_v59  ;;  %v5164_v0 = vld [vmem:[%s7483_s6 + $0x540] sm:$0xf]  ;;  %v5172_v3 = vld [vmem:[%s7483_s6 + $0x548] sm:$0xf] }
  0xf6   : > { %3566 = vmatpush.bf16.xpose.msrb.mxu2 %v4965_v15  ;;  %v6622_v15 = vld [vmem:[%s7483_s6 + $0x26c] sm:$0xf0]  ;;  %v6716_v1 = vld [vmem:[%s7483_s6 + $0x55c] sm:$0xf0] }
  0xf7   : > { %3579 = vmatpush.bf16.xpose.msrb.mxu3 %v4969_v16  ;;  %v6618_v16 = vld [vmem:[%s7483_s6 + $0x254] sm:$0xf]  ;;  %v4797_v11 = vor.u32 %v6622_v15, %v4796_v10 }
  0xf9   : > { %v3433_v14 = vpop.f32.mrf.mxu3 }
  0xfa   : > { %v3420_v17 = vpop.f32.mrf.mxu2  ;;  %v5142_v14 = vld [vmem:[%s7483_s6 + $0x528] sm:$0xf0] }
  0xfb   : > { %v5132_v17 = vld [vmem:[%s7483_s6 + $0x500] sm:$0xf] }
  0xfd   : > { %3541 = vmatpush.bf16.xpose.msrb.mxu0 %v4925_v13  ;;  %3554 = vmatpush.bf16.xpose.msrb.mxu1 %v4929_v24  ;;  %v4801_v13 = vor.u32 %v6618_v16, %v4798_v18  ;;  %v4805_v24 = vor.u32 %v6623_v20, %v4804_v19  ;;  %v6708_v18 = vld [vmem:[%s7483_s6 + $0x51c] sm:$0xf0]  ;;  %v6704_v19 = vld [vmem:[%s7483_s6 + $0x504] sm:$0xf] }
  0xfe   : > { %3567 = vmatpush.bf16.xpose.msrb.mxu2 %v4933_v25  ;;  %v4809_v25 = vor.u32 %v6619_v12, %v4806_v23  ;;  %v5134_v20 = vld [vmem:[%s7483_s6 + $0x520] sm:$0xf0]  ;;  %v5140_v12 = vld [vmem:[%s7483_s6 + $0x508] sm:$0xf] }
  0xff   : > { %3580 = vmatpush.bf16.xpose.msrb.mxu3 %v4937_v26  ;;  %v4764_v26 = vld [vmem:[%s7483_s6 + $0x210] sm:$0xf]  ;;  %v6709_v23 = vld [vmem:[%s7483_s6 + $0x524] sm:$0xf0] }
 0x105   : > { %3542 = vmatpush.bf16.xpose.msrb.mxu0 %v4893_v37  ;;  %3555 = vmatpush.bf16.xpose.msrb.mxu1 %v4897_v38  ;;  %v6732_v37 = vld [vmem:[%s7483_s6 + $0x5dc] sm:$0xf0]  ;;  %v6728_v38 = vld [vmem:[%s7483_s6 + $0x5c4] sm:$0xf] }
 0x106   : > { %3568 = vmatpush.bf16.xpose.msrb.mxu2 %v4901_v39  ;;  %v4765_v39 = vor.u32 %v6614_v27, %v4764_v26  ;;  %v5229_v48 = vor.u32 %v6732_v37, %v5228_v36  ;;  %v6696_v36 = vld [vmem:[%s7483_s6 + $0x4c4] sm:$0xf] }
 0x107   : > { %3581 = vmatpush.bf16.xpose.msrb.mxu3 %v4905_v40  ;;  %v5230_v40 = vld [vmem:[%s7483_s6 + $0x5e0] sm:$0xf0] }
 0x108   : > { %v5102_v37 = vld [vmem:[%s7483_s6 + $0x4e0] sm:$0xf0] }
 0x10d   : > { %3543 = vmatpush.bf16.xpose.msrb.mxu0 %v4861_v49  ;;  %3556 = vmatpush.bf16.xpose.msrb.mxu1 %v4865_v51  ;;  %v5233_v49 = vor.u32 %v6728_v38, %v5230_v40  ;;  %v5241_v51 = vor.u32 %v6729_v45, %v5238_v46  ;;  %v5108_v38 = vld [vmem:[%s7483_s6 + $0x4c8] sm:$0xf]  ;;  %v6697_v40 = vld [vmem:[%s7483_s6 + $0x4cc] sm:$0xf] }
 0x10e   : > { %3569 = vmatpush.bf16.xpose.msrb.mxu2 %v4869_v52  ;;  %v5196_v52 = vld [vmem:[%s7483_s6 + $0x580] sm:$0xf]  ;;  %v5113_v46 = vor.u32 %v6697_v40, %v5110_v41  ;;  %v5222_v40 = vld [vmem:[%s7483_s6 + $0x5b8] sm:$0xf0] }
 0x10f   : > { %3582 = vmatpush.bf16.xpose.msrb.mxu3 %v4873_v54  ;;  %v6720_v54 = vld [vmem:[%s7483_s6 + $0x584] sm:$0xf]  ;;  %v5197_v60 = vor.u32 %v6724_v53, %v5196_v52  ;;  %v5076_v52 = vld [vmem:[%s7483_s6 + $0x488] sm:$0xf] }
 0x110   : > { %v5201_v61 = vor.u32 %v6720_v54, %v5198_v55  ;;  %v6693_v53 = vld [vmem:[%s7483_s6 + $0x4a4] sm:$0xf0]  ;;  %v6689_v54 = vld [vmem:[%s7483_s6 + $0x48c] sm:$0xf] }
 0x111   : > { %v5078_v55 = vld [vmem:[%s7483_s6 + $0x4a8] sm:$0xf0]  ;;  %v5077_v58 = vor.u32 %v6693_v53, %v5076_v52  ;;  %v5182_v52 = vld [vmem:[%s7483_s6 + $0x570] sm:$0xf0]  ;;  %v5188_v53 = vld [vmem:[%s7483_s6 + $0x558] sm:$0xf] }
 0x112   : > { %v5081_v59 = vor.u32 %v6689_v54, %v5078_v55  ;;  %v6719_v54 = vld [vmem:[%s7483_s6 + $0x574] sm:$0xf0]  ;;  %v6715_v55 = vld [vmem:[%s7483_s6 + $0x55c] sm:$0xf] }
 0x115   : > { %3544 = vmatpush.bf16.xpose.msrb.mxu0 %v4829_v2  ;;  %3557 = vmatpush.bf16.xpose.msrb.mxu1 %v4833_v5  ;;  %v6712_v2 = vld [vmem:[%s7483_s6 + $0x544] sm:$0xf]  ;;  %v6713_v5 = vld [vmem:[%s7483_s6 + $0x54c] sm:$0xf] }
 0x116   : > { %3570 = vmatpush.bf16.xpose.msrb.mxu2 %v4837_v6  ;;  %v5165_v6 = vor.u32 %v6716_v1, %v5164_v0  ;;  %v5044_v0 = vld [vmem:[%s7483_s6 + $0x448] sm:$0xf] }
 0x117   : > { %3583 = vmatpush.bf16.xpose.msrb.mxu3 %v4841_v9  ;;  %v6685_v1 = vld [vmem:[%s7483_s6 + $0x464] sm:$0xf0] }
 0x11d   : > { %3545 = vmatpush.bf16.xpose.msrb.mxu0 %v4797_v11  ;;  %3558 = vmatpush.bf16.xpose.msrb.mxu1 %v4801_v13  ;;  %v6705_v11 = vld [vmem:[%s7483_s6 + $0x50c] sm:$0xf]  ;;  %v5133_v13 = vor.u32 %v6708_v18, %v5132_v17  ;;  %v5244_v17 = vld [vmem:[%s7483_s6 + $0x5d0] sm:$0xf] }
 0x11e   : > { %3571 = vmatpush.bf16.xpose.msrb.mxu2 %v4805_v24  ;;  %v5145_v27 = vor.u32 %v6705_v11, %v5142_v14  ;;  %v6734_v18 = vld [vmem:[%s7483_s6 + $0x5ec] sm:$0xf0]  ;;  %v6735_v11 = vld [vmem:[%s7483_s6 + $0x5f4] sm:$0xf0] }
 0x11f   : > { %3584 = vmatpush.bf16.xpose.msrb.mxu3 %v4809_v25  ;;  %v5141_v25 = vor.u32 %v6709_v23, %v5140_v12  ;;  %v5246_v12 = vld [vmem:[%s7483_s6 + $0x5f0] sm:$0xf0]  ;;  %v5252_v23 = vld [vmem:[%s7483_s6 + $0x5d8] sm:$0xf] }
 0x125   : > { %3546 = vmatpush.bf16.xpose.msrb.mxu0 %v4765_v39  ;;  %3559 = vmatpush.bf16.xpose.msrb.mxu1 %v4769_v43  ;;  %v6701_v39 = vld [vmem:[%s7483_s6 + $0x4e4] sm:$0xf0]  ;;  %v5105_v43 = vor.u32 %v6696_v36, %v5102_v37  ;;  %v5214_v36 = vld [vmem:[%s7483_s6 + $0x5b0] sm:$0xf0]  ;;  %v5220_v37 = vld [vmem:[%s7483_s6 + $0x598] sm:$0xf] }
 0x126   : > { %3572 = vmatpush.bf16.xpose.msrb.mxu2 %v4773_v44  ;;  %v5109_v44 = vor.u32 %v6701_v39, %v5108_v38  ;;  %v6727_v38 = vld [vmem:[%s7483_s6 + $0x5b4] sm:$0xf0]  ;;  %v6723_v39 = vld [vmem:[%s7483_s6 + $0x59c] sm:$0xf] }
 0x127   : > { %3585 = vmatpush.bf16.xpose.msrb.mxu3 %v4777_v47 }
 0x129   : > { %v3444_v9 = vpop.f32.mrf.mxu0  ;;  %v3457_v15 = vpop.f32.mrf.mxu1 }
 0x12a   : > { %v3445_v10 = vadd.f32 %v3444_v9, %v7757_v7  ;;  %v5137_v7 = vor.u32 %v6704_v19, %v5134_v20  ;;  %v5012_v9 = vld [vmem:[%s7483_s6 + $0x408] sm:$0xf]  ;;  %v6730_v19 = vld [vmem:[%s7483_s6 + $0x5d4] sm:$0xf] }
 0x12c   : > { %3547 = vmatmul.bf16.vlgmr.msrb.gmra.mxu0 %v7637_v21  ;;  %3560 = vmatmul.bf16.vlgmr.msrb.gmra.mxu1 %v7649_v31  ;;  %v5166_v21 = vld [vmem:[%s7483_s6 + $0x560] sm:$0xf0]  ;;  %v3458_v16 = vadd.f32 %v3457_v15, %v3445_v10  ;;  %v6677_v10 = vld [vmem:[%s7483_s6 + $0x424] sm:$0xf0]  ;;  %v6673_v15 = vld [vmem:[%s7483_s6 + $0x40c] sm:$0xf] }
 0x12d   : > { %3591 = vmatpush.bf16.xpose.msra.mxu0 %v5229_v48  ;;  %3604 = vmatpush.bf16.xpose.msra.mxu1 %v5233_v49  ;;  %v5169_v31 = vor.u32 %v6712_v2, %v5166_v21  ;;  %v5068_v48 = vld [vmem:[%s7483_s6 + $0x480] sm:$0xf]  ;;  %v6681_v2 = vld [vmem:[%s7483_s6 + $0x44c] sm:$0xf] }
 0x12e   : > { %3617 = vmatpush.bf16.xpose.msra.mxu2 %v5237_v50  ;;  %3586 = vmatmul.bf16.vlgmr.msrb.gmra.mxu3 %v7651_v32  ;;  %v5173_v32 = vor.u32 %v6717_v4, %v5172_v3  ;;  %v6692_v49 = vld [vmem:[%s7483_s6 + $0x49c] sm:$0xf0]  ;;  %v6688_v50 = vld [vmem:[%s7483_s6 + $0x484] sm:$0xf]  ;;  %v5046_v21 = vld [vmem:[%s7483_s6 + $0x468] sm:$0xf0] }
 0x12f   : > { %3630 = vmatpush.bf16.xpose.msra.mxu3 %v5241_v51  ;;  %3573 = vmatmul.bf16.vlgmr.msrb.gmra.mxu2 %v7639_v22  ;;  %v5174_v22 = vld [vmem:[%s7483_s6 + $0x568] sm:$0xf0]  ;;  %v5070_v51 = vld [vmem:[%s7483_s6 + $0x4a0] sm:$0xf0]  ;;  %v5069_v56 = vor.u32 %v6692_v49, %v5068_v48  ;;  %v5180_v49 = vld [vmem:[%s7483_s6 + $0x550] sm:$0xf] }
 0x130   : > { %v5177_v8 = vor.u32 %v6713_v5, %v5174_v22  ;;  %v5073_v57 = vor.u32 %v6688_v50, %v5070_v51  ;;  %v5045_v5 = vor.u32 %v6685_v1, %v5044_v0  ;;  %v5049_v22 = vor.u32 %v6681_v2, %v5046_v21  ;;  %v7871_v48 = vld [vmem:[#allocation1 + $0x1b] sm:$0xff]  ;;  %v6714_v51 = vld [vmem:[%s7483_s6 + $0x554] sm:$0xf]  ;;  %v5156_v1 = vld [vmem:[%s7483_s6 + $0x518] sm:$0xf] }
 0x131   : > { %v3483_v28 = vpop.f32.mrf.mxu3  ;;  %v3446_v29 = vpop.f32.mrf.mxu0  ;;  %v6718_v50 = vld [vmem:[%s7483_s6 + $0x56c] sm:$0xf0]  ;;  %v5150_v0 = vld [vmem:[%s7483_s6 + $0x530] sm:$0xf0]  ;;  %v6711_v2 = vld [vmem:[%s7483_s6 + $0x534] sm:$0xf0] }
 0x132   : > { %v3470_v24 = vpop.f32.mrf.mxu2  ;;  %v3459_v30 = vpop.f32.mrf.mxu1  ;;  %v6707_v21 = vld [vmem:[%s7483_s6 + $0x51c] sm:$0xf] }
 0x133   : > { %v3471_v26 = vadd.f32 %v3470_v24, %v3458_v16  ;;  %v5014_v16 = vld [vmem:[%s7483_s6 + $0x428] sm:$0xf0]  ;;  %v6731_v24 = vld [vmem:[%s7483_s6 + $0x5dc] sm:$0xf]  ;;  %v5212_v30 = vld [vmem:[%s7483_s6 + $0x590] sm:$0xf] }
 0x134   : > { %v5213_v41 = vor.u32 %v6726_v34, %v5212_v30  ;;  %v6691_v30 = vld [vmem:[%s7483_s6 + $0x49c] sm:$0xf] }
 0x135   : > { %3592 = vmatpush.bf16.xpose.msra.mxu0 %v5197_v60  ;;  %3605 = vmatpush.bf16.xpose.msra.mxu1 %v5201_v61  ;;  %v7812_v33 = vadd.f32 %v3483_v28, %v3471_v26  ;;  %v5036_v60 = vld [vmem:[%s7483_s6 + $0x440] sm:$0xf]  ;;  %v5245_v26 = vor.u32 %v6734_v18, %v5244_v17  ;;  %v5253_v28 = vor.u32 %v6735_v11, %v5252_v23  ;;  %v5126_v17 = vld [vmem:[%s7483_s6 + $0x4f8] sm:$0xf0] }
 0x136   : > { %3618 = vmatpush.bf16.xpose.msra.mxu2 %v5205_v62  ;;  %v6684_v61 = vld [vmem:[%s7483_s6 + $0x45c] sm:$0xf0]  ;;  %v6680_v62 = vld [vmem:[%s7483_s6 + $0x444] sm:$0xf]  ;;  %v5094_v34 = vld [vmem:[%s7483_s6 + $0x4b8] sm:$0xf0] }
 0x137   : > { %3631 = vmatpush.bf16.xpose.msra.mxu3 %v5209_v63  ;;  %v5038_v63 = vld [vmem:[%s7483_s6 + $0x460] sm:$0xf0]  ;;  %v5037_v3 = vor.u32 %v6684_v61, %v5036_v60  ;;  %v5148_v61 = vld [vmem:[%s7483_s6 + $0x510] sm:$0xf] }
 0x138   : > { %v5041_v4 = vor.u32 %v6680_v62, %v5038_v63  ;;  %v6710_v62 = vld [vmem:[%s7483_s6 + $0x52c] sm:$0xf0]  ;;  %v6706_v63 = vld [vmem:[%s7483_s6 + $0x514] sm:$0xf] }
 0x139   : > { %v3485_v47 = vpop.f32.mrf.mxu3 }
 0x13a   : > { %v3472_v45 = vpop.f32.mrf.mxu2  ;;  %v7868_v47 = vld [vmem:[#allocation1 + $0x9] sm:$0xff] }
 0x13b   : > { %v5225_v45 = vor.u32 %v6723_v39, %v5222_v40 }
 0x13d   : > { %3593 = vmatpush.bf16.xpose.msra.mxu0 %v5165_v6  ;;  %3606 = vmatpush.bf16.xpose.msra.mxu1 %v5169_v31  ;;  %v5004_v6 = vld [vmem:[%s7483_s6 + $0x400] sm:$0xf] }
 0x13e   : > { %3619 = vmatpush.bf16.xpose.msra.mxu2 %v5173_v32  ;;  %v6676_v31 = vld [vmem:[%s7483_s6 + $0x41c] sm:$0xf0]  ;;  %v6672_v32 = vld [vmem:[%s7483_s6 + $0x404] sm:$0xf] }
 0x13f   : > { %3632 = vmatpush.bf16.xpose.msra.mxu3 %v5177_v8  ;;  %v5006_v8 = vld [vmem:[%s7483_s6 + $0x420] sm:$0xf0]  ;;  %v5005_v20 = vor.u32 %v6676_v31, %v5004_v6  ;;  %v5116_v31 = vld [vmem:[%s7483_s6 + $0x4d0] sm:$0xf] }
 0x140   : > { %v5009_v14 = vor.u32 %v6672_v32, %v5006_v8  ;;  %v6702_v32 = vld [vmem:[%s7483_s6 + $0x4ec] sm:$0xf0]  ;;  %v6698_v8 = vld [vmem:[%s7483_s6 + $0x4d4] sm:$0xf] }
 0x141   : > { %v5117_v18 = vor.u32 %v6702_v32, %v5116_v31  ;;  %v5486_v31 = vld [vmem:[%s7483_s6 + $0x7e0] sm:$0xf0]  ;;  %v5492_v32 = vld [vmem:[%s7483_s6 + $0x7c8] sm:$0xf] }
 0x145   : > { %3594 = vmatpush.bf16.xpose.msra.mxu0 %v5133_v13  ;;  %3607 = vmatpush.bf16.xpose.msra.mxu1 %v5137_v7  ;;  %v5013_v13 = vor.u32 %v6677_v10, %v5012_v9  ;;  %v5254_v7 = vld [vmem:[%s7483_s6 + $0x5f8] sm:$0xf0]  ;;  %v5118_v9 = vld [vmem:[%s7483_s6 + $0x4f0] sm:$0xf0]  ;;  %v5124_v10 = vld [vmem:[%s7483_s6 + $0x4d8] sm:$0xf] }
 0x146   : > { %3620 = vmatpush.bf16.xpose.msra.mxu2 %v5141_v25  ;;  %v5017_v25 = vor.u32 %v6673_v15, %v5014_v16  ;;  %v5257_v29 = vor.u32 %v6731_v24, %v5254_v7  ;;  %v6703_v15 = vld [vmem:[%s7483_s6 + $0x4f4] sm:$0xf0]  ;;  %v6699_v16 = vld [vmem:[%s7483_s6 + $0x4dc] sm:$0xf]  ;;  %v5084_v24 = vld [vmem:[%s7483_s6 + $0x490] sm:$0xf] }
 0x147   : > { %3633 = vmatpush.bf16.xpose.msra.mxu3 %v5145_v27  ;;  %v5249_v27 = vor.u32 %v6730_v19, %v5246_v12  ;;  %v5121_v12 = vor.u32 %v6698_v8, %v5118_v9  ;;  %v5125_v23 = vor.u32 %v6703_v15, %v5124_v10  ;;  %v6694_v7 = vld [vmem:[%s7483_s6 + $0x4ac] sm:$0xf0]  ;;  %v6797_v8 = vld [vmem:[%s7483_s6 + $0x7e4] sm:$0xf0]  ;;  %v6793_v15 = vld [vmem:[%s7483_s6 + $0x7cc] sm:$0xf] }
 0x14d   : > { %3595 = vmatpush.bf16.xpose.msra.mxu0 %v5101_v42  ;;  %3608 = vmatpush.bf16.xpose.msra.mxu1 %v5105_v43  ;;  %v5217_v42 = vor.u32 %v6722_v35, %v5214_v36  ;;  %v5221_v43 = vor.u32 %v6727_v38, %v5220_v37  ;;  %v5085_v35 = vor.u32 %v6694_v7, %v5084_v24  ;;  %v5460_v24 = vld [vmem:[%s7483_s6 + $0x788] sm:$0xf] }
 0x14e   : > { %3621 = vmatpush.bf16.xpose.msra.mxu2 %v5109_v44  ;;  %v7862_v44 = vld [vmem:[#allocation1] sm:$0xff]  ;;  %v6789_v7 = vld [vmem:[%s7483_s6 + $0x7a4] sm:$0xf0] }
 0x14f   : > { %3634 = vmatpush.bf16.xpose.msra.mxu3 %v5113_v46  ;;  %v7865_v46 = vld [vmem:[#allocation1 + $0x12] sm:$0xff] }
 0x155   : > { %3596 = vmatpush.bf16.xpose.msra.mxu0 %v5069_v56  ;;  %3609 = vmatpush.bf16.xpose.msra.mxu1 %v5073_v57  ;;  %v5190_v56 = vld [vmem:[%s7483_s6 + $0x578] sm:$0xf0]  ;;  %v5181_v57 = vor.u32 %v6718_v50, %v5180_v49  ;;  %v6686_v49 = vld [vmem:[%s7483_s6 + $0x46c] sm:$0xf0]  ;;  %v6682_v50 = vld [vmem:[%s7483_s6 + $0x454] sm:$0xf] }
 0x156   : > { %3622 = vmatpush.bf16.xpose.msra.mxu2 %v5077_v58  ;;  %v5185_v58 = vor.u32 %v6714_v51, %v5182_v52  ;;  %v5193_v60 = vor.u32 %v6715_v55, %v5190_v56  ;;  %v5054_v51 = vld [vmem:[%s7483_s6 + $0x470] sm:$0xf0]  ;;  %v5060_v52 = vld [vmem:[%s7483_s6 + $0x458] sm:$0xf]  ;;  %v5062_v55 = vld [vmem:[%s7483_s6 + $0x478] sm:$0xf0] }
 0x157   : > { %3635 = vmatpush.bf16.xpose.msra.mxu3 %v5081_v59  ;;  %v5189_v59 = vor.u32 %v6719_v54, %v5188_v53  ;;  %v6687_v53 = vld [vmem:[%s7483_s6 + $0x474] sm:$0xf0]  ;;  %v6683_v54 = vld [vmem:[%s7483_s6 + $0x45c] sm:$0xf] }
 0x15d   : > { %3597 = vmatpush.bf16.xpose.msra.mxu0 %v5037_v3  ;;  %3610 = vmatpush.bf16.xpose.msra.mxu1 %v5041_v4  ;;  %v5158_v3 = vld [vmem:[%s7483_s6 + $0x538] sm:$0xf0]  ;;  %v5149_v4 = vor.u32 %v6710_v62, %v5148_v61  ;;  %v5020_v61 = vld [vmem:[%s7483_s6 + $0x410] sm:$0xf] }
 0x15e   : > { %3623 = vmatpush.bf16.xpose.msra.mxu2 %v5045_v5  ;;  %v5153_v5 = vor.u32 %v6706_v63, %v5150_v0  ;;  %v5161_v6 = vor.u32 %v6707_v21, %v5158_v3  ;;  %v6678_v62 = vld [vmem:[%s7483_s6 + $0x42c] sm:$0xf0]  ;;  %v6674_v63 = vld [vmem:[%s7483_s6 + $0x414] sm:$0xf]  ;;  %v6675_v21 = vld [vmem:[%s7483_s6 + $0x41c] sm:$0xf] }
 0x15f   : > { %3636 = vmatpush.bf16.xpose.msra.mxu3 %v5049_v22  ;;  %v5157_v22 = vor.u32 %v6711_v2, %v5156_v1  ;;  %v5022_v0 = vld [vmem:[%s7483_s6 + $0x430] sm:$0xf0]  ;;  %v5028_v1 = vld [vmem:[%s7483_s6 + $0x418] sm:$0xf]  ;;  %v5030_v3 = vld [vmem:[%s7483_s6 + $0x438] sm:$0xf0] }
 0x160   : > { %v6679_v2 = vld [vmem:[%s7483_s6 + $0x434] sm:$0xf0]  ;;  %v5025_v9 = vor.u32 %v6674_v63, %v5022_v0  ;;  %v5396_v63 = vld [vmem:[%s7483_s6 + $0x708] sm:$0xf] }
 0x161   : > { %v5029_v10 = vor.u32 %v6679_v2, %v5028_v1  ;;  %v6773_v0 = vld [vmem:[%s7483_s6 + $0x724] sm:$0xf0]  ;;  %v6769_v1 = vld [vmem:[%s7483_s6 + $0x70c] sm:$0xf] }
 0x162   : > { %v5398_v2 = vld [vmem:[%s7483_s6 + $0x728] sm:$0xf0] }
 0x165   : > { %3598 = vmatpush.bf16.xpose.msra.mxu0 %v5005_v20  ;;  %3611 = vmatpush.bf16.xpose.msra.mxu1 %v5009_v14  ;;  %v5129_v14 = vor.u32 %v6699_v16, %v5126_v17  ;;  %v5494_v16 = vld [vmem:[%s7483_s6 + $0x7e8] sm:$0xf0]  ;;  %v5033_v17 = vor.u32 %v6675_v21, %v5030_v3 }
 0x166   : > { %3624 = vmatpush.bf16.xpose.msra.mxu2 %v5013_v13 }
 0x167   : > { %3637 = vmatpush.bf16.xpose.msra.mxu3 %v5017_v25  ;;  %v6690_v25 = vld [vmem:[%s7483_s6 + $0x494] sm:$0xf] }
 0x169   : > { %v3496_v19 = vpop.f32.mrf.mxu0  ;;  %v3509_v20 = vpop.f32.mrf.mxu1 }
 0x16a   : > { %v3510_v11 = vadd.f32 %v3509_v20, %v3496_v19  ;;  %v5493_v20 = vor.u32 %v6797_v8, %v5492_v32 }
 0x16c   : > { %3599 = vmatmul.bf16.vlgmr.msra.gmra.mxu0 %v7862_v44  ;;  %3612 = vmatmul.bf16.vlgmr.msra.gmra.mxu1 %v7868_v47 }
 0x16d   : > { %3643 = vmatpush.bf16.xpose.msrb.mxu0 %v5245_v26  ;;  %3656 = vmatpush.bf16.xpose.msrb.mxu1 %v5249_v27  ;;  %v5086_v27 = vld [vmem:[%s7483_s6 + $0x4b0] sm:$0xf0] }
 0x16e   : > { %3669 = vmatpush.bf16.xpose.msrb.mxu2 %v5253_v28  ;;  %3638 = vmatmul.bf16.vlgmr.msra.gmra.mxu3 %v7871_v48  ;;  %v5092_v28 = vld [vmem:[%s7483_s6 + $0x498] sm:$0xf]  ;;  %v5089_v38 = vor.u32 %v6690_v25, %v5086_v27  ;;  %v6785_v25 = vld [vmem:[%s7483_s6 + $0x78c] sm:$0xf] }
 0x16f   : > { %3682 = vmatpush.bf16.xpose.msrb.mxu3 %v5257_v29  ;;  %3625 = vmatmul.bf16.vlgmr.msra.gmra.mxu2 %v7865_v46  ;;  %v6695_v29 = vld [vmem:[%s7483_s6 + $0x4b4] sm:$0xf0] }
 0x170   : > { %v5093_v39 = vor.u32 %v6695_v29, %v5092_v28  ;;  %v7940_v28 = vld [vmem:[#allocation1 + $0x24] sm:$0xff] }
 0x171   : > { %v3535_v36 = vpop.f32.mrf.mxu3  ;;  %v3498_v37 = vpop.f32.mrf.mxu0 }
 0x172   : > { %v3522_v13 = vpop.f32.mrf.mxu2  ;;  %v7949_v37 = vld [vmem:[#allocation1 + $0x3f] sm:$0xff] }
 0x173   : > { %v3523_v26 = vadd.f32 %v3522_v13, %v3510_v11  ;;  %v6788_v11 = vld [vmem:[%s7483_s6 + $0x79c] sm:$0xf0]  ;;  %v5454_v13 = vld [vmem:[%s7483_s6 + $0x7a0] sm:$0xf0] }
 0x175   : > { %3644 = vmatpush.bf16.xpose.msrb.mxu0 %v5213_v41  ;;  %3657 = vmatpush.bf16.xpose.msrb.mxu1 %v5217_v42  ;;  %v7906_v40 = vadd.f32 %v3535_v36, %v3523_v26  ;;  %v3511_v41 = vpop.f32.mrf.mxu1  ;;  %v5097_v42 = vor.u32 %v6691_v30, %v5094_v34  ;;  %v5462_v26 = vld [vmem:[%s7483_s6 + $0x7a8] sm:$0xf0]  ;;  %v5461_v30 = vor.u32 %v6789_v7, %v5460_v24  ;;  %v7946_v36 = vld [vmem:[#allocation1 + $0x2d] sm:$0xff] }
 0x176   : > { %3670 = vmatpush.bf16.xpose.msrb.mxu2 %v5221_v43  ;;  %v7943_v34 = vld [vmem:[#allocation1 + $0x36] sm:$0xff] }
 0x177   : > { %3683 = vmatpush.bf16.xpose.msrb.mxu3 %v5225_v45  ;;  %v5052_v45 = vld [vmem:[%s7483_s6 + $0x450] sm:$0xf]  ;;  %v6776_v41 = vld [vmem:[%s7483_s6 + $0x744] sm:$0xf] }
 0x178   : > { %v5053_v56 = vor.u32 %v6686_v49, %v5052_v45  ;;  %v6781_v45 = vld [vmem:[%s7483_s6 + $0x764] sm:$0xf0]  ;;  %v6777_v49 = vld [vmem:[%s7483_s6 + $0x74c] sm:$0xf] }
 0x17a   : > { %v3524_v43 = vpop.f32.mrf.mxu2 }
 0x17b   : > { %v5428_v43 = vld [vmem:[%s7483_s6 + $0x748] sm:$0xf] }
 0x17d   : > { %3645 = vmatpush.bf16.xpose.msrb.mxu0 %v5181_v57  ;;  %3658 = vmatpush.bf16.xpose.msrb.mxu1 %v5185_v58  ;;  %v3537_v57 = vpop.f32.mrf.mxu3  ;;  %v5057_v58 = vor.u32 %v6682_v50, %v5054_v51  ;;  %v5430_v50 = vld [vmem:[%s7483_s6 + $0x768] sm:$0xf0] }
 0x17e   : > { %3671 = vmatpush.bf16.xpose.msrb.mxu2 %v5189_v59  ;;  %v5061_v59 = vor.u32 %v6687_v53, %v5060_v52  ;;  %v5429_v53 = vor.u32 %v6781_v45, %v5428_v43 }
 0x17f   : > { %3684 = vmatpush.bf16.xpose.msrb.mxu3 %v5193_v60  ;;  %v5065_v60 = vor.u32 %v6683_v54, %v5062_v55  ;;  %v5433_v54 = vor.u32 %v6777_v49, %v5430_v50  ;;  %v5292_v49 = vld [vmem:[%s7483_s6 + $0x640] sm:$0xf] }
 0x180   : > { %v6748_v50 = vld [vmem:[%s7483_s6 + $0x65c] sm:$0xf0] }
 0x185   : > { %3646 = vmatpush.bf16.xpose.msrb.mxu0 %v5149_v4  ;;  %3659 = vmatpush.bf16.xpose.msrb.mxu1 %v5153_v5  ;;  %v5484_v4 = vld [vmem:[%s7483_s6 + $0x7c0] sm:$0xf] }
 0x186   : > { %3672 = vmatpush.bf16.xpose.msrb.mxu2 %v5157_v22  ;;  %v6796_v5 = vld [vmem:[%s7483_s6 + $0x7dc] sm:$0xf0]  ;;  %v6792_v22 = vld [vmem:[%s7483_s6 + $0x7c4] sm:$0xf] }
 0x187   : > { %3685 = vmatpush.bf16.xpose.msrb.mxu3 %v5161_v6  ;;  %v5021_v6 = vor.u32 %v6678_v62, %v5020_v61  ;;  %v5489_v19 = vor.u32 %v6792_v22, %v5486_v31  ;;  %v6768_v61 = vld [vmem:[%s7483_s6 + $0x704] sm:$0xf]  ;;  %v5401_v22 = vor.u32 %v6769_v1, %v5398_v2  ;;  %v5268_v1 = vld [vmem:[%s7483_s6 + $0x608] sm:$0xf] }
 0x188   : > { %v5390_v62 = vld [vmem:[%s7483_s6 + $0x720] sm:$0xf0]  ;;  %v6741_v2 = vld [vmem:[%s7483_s6 + $0x624] sm:$0xf0] }
 0x18d   : > { %3647 = vmatpush.bf16.xpose.msrb.mxu0 %v5117_v18  ;;  %3660 = vmatpush.bf16.xpose.msrb.mxu1 %v5121_v12  ;;  %v5485_v18 = vor.u32 %v6796_v5, %v5484_v4  ;;  %v5497_v12 = vor.u32 %v6793_v15, %v5494_v16  ;;  %v5397_v4 = vor.u32 %v6773_v0, %v5396_v63  ;;  %v6760_v15 = vld [vmem:[%s7483_s6 + $0x6c4] sm:$0xf] }
 0x18e   : > { %3673 = vmatpush.bf16.xpose.msrb.mxu2 %v5125_v23  ;;  %v5452_v23 = vld [vmem:[%s7483_s6 + $0x780] sm:$0xf]  ;;  %v5358_v16 = vld [vmem:[%s7483_s6 + $0x6e0] sm:$0xf0] }
 0x18f   : > { %3686 = vmatpush.bf16.xpose.msrb.mxu3 %v5129_v14  ;;  %v6784_v14 = vld [vmem:[%s7483_s6 + $0x784] sm:$0xf]  ;;  %v5453_v27 = vor.u32 %v6788_v11, %v5452_v23 }
 0x190   : > { %v5457_v29 = vor.u32 %v6784_v14, %v5454_v13  ;;  %v5361_v14 = vor.u32 %v6760_v15, %v5358_v16  ;;  %v6736_v63 = vld [vmem:[%s7483_s6 + $0x604] sm:$0xf]  ;;  %v5510_v15 = vld [vmem:[%s7483_s6 + $0x7f8] sm:$0xf0] }
 0x191   : > { %v5262_v0 = vld [vmem:[%s7483_s6 + $0x620] sm:$0xf0] }
 0x195   : > { %3648 = vmatpush.bf16.xpose.msrb.mxu0 %v5085_v35  ;;  %3661 = vmatpush.bf16.xpose.msrb.mxu1 %v5089_v38  ;;  %v5465_v35 = vor.u32 %v6785_v25, %v5462_v26  ;;  %v5420_v38 = vld [vmem:[%s7483_s6 + $0x740] sm:$0xf] }
 0x196   : > { %3674 = vmatpush.bf16.xpose.msrb.mxu2 %v5093_v39  ;;  %v6780_v39 = vld [vmem:[%s7483_s6 + $0x75c] sm:$0xf0] }
 0x197   : > { %3687 = vmatpush.bf16.xpose.msrb.mxu3 %v5097_v42  ;;  %v5422_v42 = vld [vmem:[%s7483_s6 + $0x760] sm:$0xf0]  ;;  %v5421_v51 = vor.u32 %v6780_v39, %v5420_v38  ;;  %v5324_v26 = vld [vmem:[%s7483_s6 + $0x680] sm:$0xf]  ;;  %v6753_v38 = vld [vmem:[%s7483_s6 + $0x68c] sm:$0xf] }
 0x198   : > { %v5425_v52 = vor.u32 %v6776_v41, %v5422_v42  ;;  %v5334_v39 = vld [vmem:[%s7483_s6 + $0x6a8] sm:$0xf0] }
 0x199   : > { %v5337_v45 = vor.u32 %v6753_v38, %v5334_v39  ;;  %v6782_v38 = vld [vmem:[%s7483_s6 + $0x76c] sm:$0xf0]  ;;  %v6778_v39 = vld [vmem:[%s7483_s6 + $0x754] sm:$0xf] }
 0x19d   : > { %3649 = vmatpush.bf16.xpose.msrb.mxu0 %v5053_v56  ;;  %3662 = vmatpush.bf16.xpose.msrb.mxu1 %v5057_v58 }
 0x19e   : > { %3675 = vmatpush.bf16.xpose.msrb.mxu2 %v5061_v59  ;;  %v5388_v59 = vld [vmem:[%s7483_s6 + $0x700] sm:$0xf] }
 0x19f   : > { %3688 = vmatpush.bf16.xpose.msrb.mxu3 %v5065_v60  ;;  %v6772_v60 = vld [vmem:[%s7483_s6 + $0x71c] sm:$0xf0] }
 0x1a0   : > { %v5389_v21 = vor.u32 %v6772_v60, %v5388_v59 }
 0x1a5   : > { %3650 = vmatpush.bf16.xpose.msrb.mxu0 %v5021_v6  ;;  %3663 = vmatpush.bf16.xpose.msrb.mxu1 %v5025_v9  ;;  %v5356_v9 = vld [vmem:[%s7483_s6 + $0x6c0] sm:$0xf] }
 0x1a6   : > { %3676 = vmatpush.bf16.xpose.msrb.mxu2 %v5029_v10  ;;  %v6764_v10 = vld [vmem:[%s7483_s6 + $0x6dc] sm:$0xf0] }
 0x1a7   : > { %3689 = vmatpush.bf16.xpose.msrb.mxu3 %v5033_v17  ;;  %v5357_v11 = vor.u32 %v6764_v10, %v5356_v9  ;;  %v5269_v9 = vor.u32 %v6741_v2, %v5268_v1  ;;  %v6795_v10 = vld [vmem:[%s7483_s6 + $0x7dc] sm:$0xf]  ;;  %v5374_v1 = vld [vmem:[%s7483_s6 + $0x6f0] sm:$0xf0]  ;;  %v5380_v2 = vld [vmem:[%s7483_s6 + $0x6d8] sm:$0xf] }
 0x1a9   : > { %v3548_v55 = vpop.f32.mrf.mxu0  ;;  %v3561_v57 = vpop.f32.mrf.mxu1 }
 0x1aa   : > { %v3549_v56 = vadd.f32 %v3548_v55, %v7906_v40  ;;  %v5393_v40 = vor.u32 %v6768_v61, %v5390_v62  ;;  %v6745_v55 = vld [vmem:[%s7483_s6 + $0x64c] sm:$0xf]  ;;  %v5260_v61 = vld [vmem:[%s7483_s6 + $0x600] sm:$0xf] }
 0x1ab   : > { %v6740_v62 = vld [vmem:[%s7483_s6 + $0x61c] sm:$0xf0] }
 0x1ac   : > { %3651 = vmatmul.bf16.vlgmr.msrb.gmra.mxu0 %v7940_v28  ;;  %3664 = vmatmul.bf16.vlgmr.msrb.gmra.mxu1 %v7946_v36  ;;  %v3562_v58 = vadd.f32 %v3561_v57, %v3549_v56  ;;  %v5302_v56 = vld [vmem:[%s7483_s6 + $0x668] sm:$0xf0]  ;;  %v5293_v57 = vor.u32 %v6748_v50, %v5292_v49  ;;  %v5404_v50 = vld [vmem:[%s7483_s6 + $0x710] sm:$0xf] }
 0x1ad   : > { %3695 = vmatpush.bf16.xpose.msra.mxu0 %v5485_v18  ;;  %3708 = vmatpush.bf16.xpose.msra.mxu1 %v5489_v19  ;;  %v5364_v18 = vld [vmem:[%s7483_s6 + $0x6c8] sm:$0xf]  ;;  %v5305_v60 = vor.u32 %v6745_v55, %v5302_v56  ;;  %v6775_v55 = vld [vmem:[%s7483_s6 + $0x734] sm:$0xf0]  ;;  %v6771_v56 = vld [vmem:[%s7483_s6 + $0x71c] sm:$0xf] }
 0x1ae   : > { %3721 = vmatpush.bf16.xpose.msra.mxu2 %v5493_v20  ;;  %3690 = vmatmul.bf16.vlgmr.msrb.gmra.mxu3 %v7949_v37  ;;  %v6765_v19 = vld [vmem:[%s7483_s6 + $0x6e4] sm:$0xf0]  ;;  %v6761_v20 = vld [vmem:[%s7483_s6 + $0x6cc] sm:$0xf] }
 0x1af   : > { %3734 = vmatpush.bf16.xpose.msra.mxu3 %v5497_v12  ;;  %3677 = vmatmul.bf16.vlgmr.msrb.gmra.mxu2 %v7943_v34  ;;  %v5366_v12 = vld [vmem:[%s7483_s6 + $0x6e8] sm:$0xf0]  ;;  %v5365_v13 = vor.u32 %v6765_v19, %v5364_v18 }
 0x1b0   : > { %v5369_v7 = vor.u32 %v6761_v20, %v5366_v12  ;;  %v5513_v20 = vor.u32 %v6795_v10, %v5510_v15  ;;  %v5468_v12 = vld [vmem:[%s7483_s6 + $0x790] sm:$0xf] }
 0x1b1   : > { %v3587_v6 = vpop.f32.mrf.mxu3  ;;  %v3550_v31 = vpop.f32.mrf.mxu0  ;;  %v5340_v10 = vld [vmem:[%s7483_s6 + $0x690] sm:$0xf] }
 0x1b2   : > { %v3574_v3 = vpop.f32.mrf.mxu2  ;;  %v3563_v32 = vpop.f32.mrf.mxu1  ;;  %v5508_v31 = vld [vmem:[%s7483_s6 + $0x7d8] sm:$0xf]  ;;  %v6758_v15 = vld [vmem:[%s7483_s6 + $0x6ac] sm:$0xf0] }
 0x1b3   : > { %v3575_v5 = vadd.f32 %v3574_v3, %v3562_v58  ;;  %v5270_v3 = vld [vmem:[%s7483_s6 + $0x628] sm:$0xf0]  ;;  %v6799_v32 = vld [vmem:[%s7483_s6 + $0x7f4] sm:$0xf0] }
 0x1b4   : > { %v5509_v19 = vor.u32 %v6799_v32, %v5508_v31 }
 0x1b5   : > { %3696 = vmatpush.bf16.xpose.msra.mxu0 %v5453_v27  ;;  %3709 = vmatpush.bf16.xpose.msra.mxu1 %v5457_v29  ;;  %v3588_v8 = vadd.f32 %v3587_v6, %v3575_v5  ;;  %v6756_v27 = vld [vmem:[%s7483_s6 + $0x69c] sm:$0xf0]  ;;  %v6752_v29 = vld [vmem:[%s7483_s6 + $0x684] sm:$0xf]  ;;  %v6794_v5 = vld [vmem:[%s7483_s6 + $0x7d4] sm:$0xf] }
 0x1b6   : > { %3722 = vmatpush.bf16.xpose.msra.mxu2 %v5461_v30  ;;  %v5332_v30 = vld [vmem:[%s7483_s6 + $0x688] sm:$0xf]  ;;  %v5325_v41 = vor.u32 %v6756_v27, %v5324_v26  ;;  %v5502_v6 = vld [vmem:[%s7483_s6 + $0x7f0] sm:$0xf0]  ;;  %v5478_v26 = vld [vmem:[%s7483_s6 + $0x7b8] sm:$0xf0] }
 0x1b7   : > { %3735 = vmatpush.bf16.xpose.msra.mxu3 %v5465_v35  ;;  %v4223_v17 = vrot.slane %v3588_v8, 6  ;;  %v6757_v35 = vld [vmem:[%s7483_s6 + $0x6a4] sm:$0xf0]  ;;  %v5265_v8 = vor.u32 %v6736_v63, %v5262_v0  ;;  %v5505_v18 = vor.u32 %v6794_v5, %v5502_v6  ;;  %v6766_v63 = vld [vmem:[%s7483_s6 + $0x6ec] sm:$0xf0] }
 0x1b8   : > { %v5333_v43 = vor.u32 %v6757_v35, %v5332_v30  ;;  %v5436_v35 = vld [vmem:[%s7483_s6 + $0x750] sm:$0xf]  ;;  %v6762_v0 = vld [vmem:[%s7483_s6 + $0x6d4] sm:$0xf] }
 0x1b9   : > { %v7979_v23 = vsel %vm4229_vm0, %v7812_v33, %v4223_v17  ;;  %v3589_v25 = vpop.f32.mrf.mxu3  ;;  %v5326_v33 = vld [vmem:[%s7483_s6 + $0x6a0] sm:$0xf0]  ;;  %v5377_v6 = vor.u32 %v6762_v0, %v5374_v1  ;;  %v6861_v0 = vld [vmem:[%s7483_s6 + $0x9e4] sm:$0xf0] }
 0x1ba   : > { %v3576_v24 = vpop.f32.mrf.mxu2  ;;  %v5329_v42 = vor.u32 %v6752_v29, %v5326_v33  ;;  %v6787_v25 = vld [vmem:[%s7483_s6 + $0x79c] sm:$0xf] }
 0x1bb   : > { %v5476_v24 = vld [vmem:[%s7483_s6 + $0x798] sm:$0xf]  ;;  %v5481_v30 = vor.u32 %v6787_v25, %v5478_v26 }
 0x1bd   : > { %3697 = vmatpush.bf16.xpose.msra.mxu0 %v5421_v51  ;;  %3710 = vmatpush.bf16.xpose.msra.mxu1 %v5425_v52  ;;  %v6744_v51 = vld [vmem:[%s7483_s6 + $0x644] sm:$0xf] }
 0x1be   : > { %3723 = vmatpush.bf16.xpose.msra.mxu2 %v5429_v53  ;;  %v5294_v52 = vld [vmem:[%s7483_s6 + $0x660] sm:$0xf0]  ;;  %v5300_v53 = vld [vmem:[%s7483_s6 + $0x648] sm:$0xf] }
 0x1bf   : > { %3736 = vmatpush.bf16.xpose.msra.mxu3 %v5433_v54  ;;  %v6749_v54 = vld [vmem:[%s7483_s6 + $0x664] sm:$0xf0]  ;;  %v5297_v58 = vor.u32 %v6744_v51, %v5294_v52  ;;  %v6774_v51 = vld [vmem:[%s7483_s6 + $0x72c] sm:$0xf0]  ;;  %v6770_v52 = vld [vmem:[%s7483_s6 + $0x714] sm:$0xf] }
 0x1c0   : > { %v5301_v59 = vor.u32 %v6749_v54, %v5300_v53  ;;  %v5406_v53 = vld [vmem:[%s7483_s6 + $0x730] sm:$0xf0]  ;;  %v5412_v54 = vld [vmem:[%s7483_s6 + $0x718] sm:$0xf] }
 0x1c5   : > { %3698 = vmatpush.bf16.xpose.msra.mxu0 %v5389_v21  ;;  %3711 = vmatpush.bf16.xpose.msra.mxu1 %v5393_v40  ;;  %v6737_v21 = vld [vmem:[%s7483_s6 + $0x60c] sm:$0xf]  ;;  %v5500_v40 = vld [vmem:[%s7483_s6 + $0x7d0] sm:$0xf] }
 0x1c6   : > { %3724 = vmatpush.bf16.xpose.msra.mxu2 %v5397_v4  ;;  %v6798_v4 = vld [vmem:[%s7483_s6 + $0x7ec] sm:$0xf0]  ;;  %v5273_v16 = vor.u32 %v6737_v21, %v5270_v3  ;;  %v6767_v21 = vld [vmem:[%s7483_s6 + $0x6f4] sm:$0xf0]  ;;  %v6763_v3 = vld [vmem:[%s7483_s6 + $0x6dc] sm:$0xf] }
 0x1c7   : > { %3737 = vmatpush.bf16.xpose.msra.mxu3 %v5401_v22  ;;  %v5261_v22 = vor.u32 %v6740_v62, %v5260_v61  ;;  %v5501_v17 = vor.u32 %v6798_v4, %v5500_v40  ;;  %v5372_v62 = vld [vmem:[%s7483_s6 + $0x6d0] sm:$0xf]  ;;  %v5382_v40 = vld [vmem:[%s7483_s6 + $0x6f8] sm:$0xf0]  ;;  %v5381_v31 = vor.u32 %v6767_v21, %v5380_v2  ;;  %v6857_v21 = vld [vmem:[%s7483_s6 + $0x9cc] sm:$0xf] }
 0x1c8   : > { %v5373_v4 = vor.u32 %v6766_v63, %v5372_v62  ;;  %v5742_v62 = vld [vmem:[%s7483_s6 + $0x9e0] sm:$0xf0]  ;;  %v5748_v63 = vld [vmem:[%s7483_s6 + $0x9c8] sm:$0xf] }
 0x1cd   : > { %3699 = vmatpush.bf16.xpose.msra.mxu0 %v5357_v11  ;;  %3712 = vmatpush.bf16.xpose.msra.mxu1 %v5361_v14  ;;  %v6790_v11 = vld [vmem:[%s7483_s6 + $0x7ac] sm:$0xf0]  ;;  %v6786_v14 = vld [vmem:[%s7483_s6 + $0x794] sm:$0xf] }
 0x1ce   : > { %3725 = vmatpush.bf16.xpose.msra.mxu2 %v5365_v13  ;;  %v5470_v13 = vld [vmem:[%s7483_s6 + $0x7b0] sm:$0xf0]  ;;  %v5469_v27 = vor.u32 %v6790_v11, %v5468_v12  ;;  %v6755_v12 = vld [vmem:[%s7483_s6 + $0x69c] sm:$0xf] }
 0x1cf   : > { %3738 = vmatpush.bf16.xpose.msra.mxu3 %v5369_v7  ;;  %v6791_v7 = vld [vmem:[%s7483_s6 + $0x7b4] sm:$0xf0]  ;;  %v5473_v29 = vor.u32 %v6786_v14, %v5470_v13  ;;  %v5350_v11 = vld [vmem:[%s7483_s6 + $0x6b8] sm:$0xf0]  ;;  %v5341_v14 = vor.u32 %v6758_v15, %v5340_v10  ;;  %v5716_v10 = vld [vmem:[%s7483_s6 + $0x988] sm:$0xf] }
 0x1d0   : > { %v5477_v33 = vor.u32 %v6791_v7, %v5476_v24  ;;  %v6853_v15 = vld [vmem:[%s7483_s6 + $0x9a4] sm:$0xf0] }
 0x1d5   : > { %3700 = vmatpush.bf16.xpose.msra.mxu0 %v5325_v41  ;;  %3713 = vmatpush.bf16.xpose.msra.mxu1 %v5329_v42  ;;  %v5438_v41 = vld [vmem:[%s7483_s6 + $0x770] sm:$0xf0]  ;;  %v6783_v42 = vld [vmem:[%s7483_s6 + $0x774] sm:$0xf0] }
 0x1d6   : > { %3726 = vmatpush.bf16.xpose.msra.mxu2 %v5333_v43  ;;  %v5441_v43 = vor.u32 %v6778_v39, %v5438_v41  ;;  %v5310_v39 = vld [vmem:[%s7483_s6 + $0x670] sm:$0xf0]  ;;  %v5316_v41 = vld [vmem:[%s7483_s6 + $0x658] sm:$0xf] }
 0x1d7   : > { %3739 = vmatpush.bf16.xpose.msra.mxu3 %v5337_v45 }
 0x1dd   : > { %3701 = vmatpush.bf16.xpose.msra.mxu0 %v5293_v57  ;;  %3714 = vmatpush.bf16.xpose.msra.mxu1 %v5297_v58  ;;  %v5414_v57 = vld [vmem:[%s7483_s6 + $0x738] sm:$0xf0]  ;;  %v5405_v58 = vor.u32 %v6774_v51, %v5404_v50  ;;  %v5276_v50 = vld [vmem:[%s7483_s6 + $0x610] sm:$0xf] }
 0x1de   : > { %3727 = vmatpush.bf16.xpose.msra.mxu2 %v5301_v59  ;;  %v5409_v59 = vor.u32 %v6770_v52, %v5406_v53  ;;  %v5417_v61 = vor.u32 %v6771_v56, %v5414_v57  ;;  %v6742_v51 = vld [vmem:[%s7483_s6 + $0x62c] sm:$0xf0]  ;;  %v6738_v52 = vld [vmem:[%s7483_s6 + $0x614] sm:$0xf]  ;;  %v6739_v56 = vld [vmem:[%s7483_s6 + $0x61c] sm:$0xf] }
 0x1df   : > { %3740 = vmatpush.bf16.xpose.msra.mxu3 %v5305_v60  ;;  %v5413_v60 = vor.u32 %v6775_v55, %v5412_v54  ;;  %v5278_v53 = vld [vmem:[%s7483_s6 + $0x630] sm:$0xf0]  ;;  %v5284_v54 = vld [vmem:[%s7483_s6 + $0x618] sm:$0xf]  ;;  %v5286_v57 = vld [vmem:[%s7483_s6 + $0x638] sm:$0xf0] }
 0x1e0   : > { %v6743_v55 = vld [vmem:[%s7483_s6 + $0x634] sm:$0xf0]  ;;  %v5281_v1 = vor.u32 %v6738_v52, %v5278_v53 }
 0x1e1   : > { %v5285_v2 = vor.u32 %v6743_v55, %v5284_v54 }
 0x1e5   : > { %3702 = vmatpush.bf16.xpose.msra.mxu0 %v5261_v22  ;;  %3715 = vmatpush.bf16.xpose.msra.mxu1 %v5265_v8  ;;  %v5385_v8 = vor.u32 %v6763_v3, %v5382_v40  ;;  %v5750_v3 = vld [vmem:[%s7483_s6 + $0x9e8] sm:$0xf0]  ;;  %v5289_v40 = vor.u32 %v6739_v56, %v5286_v57  ;;  %v5612_v57 = vld [vmem:[%s7483_s6 + $0x8c0] sm:$0xf] }
 0x1e6   : > { %3728 = vmatpush.bf16.xpose.msra.mxu2 %v5269_v9 }
 0x1e7   : > { %3741 = vmatpush.bf16.xpose.msra.mxu3 %v5273_v16  ;;  %v6754_v16 = vld [vmem:[%s7483_s6 + $0x694] sm:$0xf] }
 0x1e9   : > { %v3600_v5 = vpop.f32.mrf.mxu0  ;;  %v3613_v22 = vpop.f32.mrf.mxu1 }
 0x1ea   : > { %v3614_v32 = vadd.f32 %v3613_v22, %v3600_v5  ;;  %v5749_v22 = vor.u32 %v6861_v0, %v5748_v63  ;;  %v6825_v63 = vld [vmem:[%s7483_s6 + $0x8cc] sm:$0xf] }
 0x1eb   : > { %v5622_v0 = vld [vmem:[%s7483_s6 + $0x8e8] sm:$0xf0] }
 0x1ec   : > { %3703 = vmatmul.bf16.vlgmr.msra.gmra.mxu0 %v7862_v44  ;;  %3716 = vmatmul.bf16.vlgmr.msra.gmra.mxu1 %v7868_v47  ;;  %v5444_v44 = vld [vmem:[%s7483_s6 + $0x758] sm:$0xf]  ;;  %v5446_v47 = vld [vmem:[%s7483_s6 + $0x778] sm:$0xf0] }
 0x1ed   : > { %3747 = vmatpush.bf16.xpose.msrb.mxu0 %v5501_v17  ;;  %3760 = vmatpush.bf16.xpose.msrb.mxu1 %v5505_v18  ;;  %v5445_v45 = vor.u32 %v6783_v42, %v5444_v44  ;;  %v5342_v18 = vld [vmem:[%s7483_s6 + $0x6b0] sm:$0xf0]  ;;  %v6751_v44 = vld [vmem:[%s7483_s6 + $0x674] sm:$0xf0]  ;;  %v6747_v42 = vld [vmem:[%s7483_s6 + $0x65c] sm:$0xf] }
 0x1ee   : > { %3773 = vmatpush.bf16.xpose.msrb.mxu2 %v5509_v19  ;;  %3742 = vmatmul.bf16.vlgmr.msra.gmra.mxu3 %v7871_v48  ;;  %v5437_v48 = vor.u32 %v6782_v38, %v5436_v35  ;;  %v5348_v19 = vld [vmem:[%s7483_s6 + $0x698] sm:$0xf]  ;;  %v5345_v7 = vor.u32 %v6754_v16, %v5342_v18  ;;  %v6750_v35 = vld [vmem:[%s7483_s6 + $0x66c] sm:$0xf0]  ;;  %v6746_v38 = vld [vmem:[%s7483_s6 + $0x654] sm:$0xf] }
 0x1ef   : > { %3786 = vmatpush.bf16.xpose.msrb.mxu3 %v5513_v20  ;;  %3729 = vmatmul.bf16.vlgmr.msra.gmra.mxu2 %v7865_v46  ;;  %v6779_v46 = vld [vmem:[%s7483_s6 + $0x75c] sm:$0xf]  ;;  %v6759_v20 = vld [vmem:[%s7483_s6 + $0x6b4] sm:$0xf0]  ;;  %v6849_v16 = vld [vmem:[%s7483_s6 + $0x98c] sm:$0xf] }
 0x1f0   : > { %v5449_v49 = vor.u32 %v6779_v46, %v5446_v47  ;;  %v5349_v25 = vor.u32 %v6759_v20, %v5348_v19  ;;  %v5318_v46 = vld [vmem:[%s7483_s6 + $0x678] sm:$0xf0]  ;;  %v5717_v20 = vor.u32 %v6853_v15, %v5716_v10  ;;  %v5590_v10 = vld [vmem:[%s7483_s6 + $0x8a8] sm:$0xf0] }
 0x1f1   : > { %v3639_v13 = vpop.f32.mrf.mxu3  ;;  %v3602_v24 = vpop.f32.mrf.mxu0 }
 0x1f2   : > { %v3626_v9 = vpop.f32.mrf.mxu2  ;;  %v5684_v24 = vld [vmem:[%s7483_s6 + $0x948] sm:$0xf] }
 0x1f3   : > { %v3627_v17 = vadd.f32 %v3626_v9, %v3614_v32  ;;  %v6852_v32 = vld [vmem:[%s7483_s6 + $0x99c] sm:$0xf0]  ;;  %v5710_v9 = vld [vmem:[%s7483_s6 + $0x9a0] sm:$0xf0] }
 0x1f5   : > { %3748 = vmatpush.bf16.xpose.msrb.mxu0 %v5469_v27  ;;  %3761 = vmatpush.bf16.xpose.msrb.mxu1 %v5473_v29  ;;  %v8057_v26 = vadd.f32 %v3639_v13, %v3627_v17  ;;  %v3615_v27 = vpop.f32.mrf.mxu1  ;;  %v5353_v29 = vor.u32 %v6755_v12, %v5350_v11  ;;  %v5718_v17 = vld [vmem:[%s7483_s6 + $0x9a8] sm:$0xf0]  ;;  %v5676_v11 = vld [vmem:[%s7483_s6 + $0x940] sm:$0xf]  ;;  %v6840_v13 = vld [vmem:[%s7483_s6 + $0x944] sm:$0xf] }
 0x1f6   : > { %3774 = vmatpush.bf16.xpose.msrb.mxu2 %v5477_v33  ;;  %v5721_v12 = vor.u32 %v6849_v16, %v5718_v17 }
 0x1f7   : > { %3787 = vmatpush.bf16.xpose.msrb.mxu3 %v5481_v30  ;;  %v5308_v30 = vld [vmem:[%s7483_s6 + $0x650] sm:$0xf] }
 0x1f8   : > { %v5309_v47 = vor.u32 %v6750_v35, %v5308_v30 }
 0x1fa   : > { %v3628_v33 = vpop.f32.mrf.mxu2 }
 0x1fd   : > { %3749 = vmatpush.bf16.xpose.msrb.mxu0 %v5437_v48  ;;  %3762 = vmatpush.bf16.xpose.msrb.mxu1 %v5441_v43  ;;  %v3641_v48 = vpop.f32.mrf.mxu3  ;;  %v5313_v43 = vor.u32 %v6746_v38, %v5310_v39  ;;  %v5644_v39 = vld [vmem:[%s7483_s6 + $0x900] sm:$0xf] }
 0x1fe   : > { %3775 = vmatpush.bf16.xpose.msrb.mxu2 %v5445_v45  ;;  %v5317_v45 = vor.u32 %v6751_v44, %v5316_v41  ;;  %v6836_v41 = vld [vmem:[%s7483_s6 + $0x91c] sm:$0xf0]  ;;  %v6832_v44 = vld [vmem:[%s7483_s6 + $0x904] sm:$0xf]  ;;  %v6833_v48 = vld [vmem:[%s7483_s6 + $0x90c] sm:$0xf] }
 0x1ff   : > { %3788 = vmatpush.bf16.xpose.msrb.mxu3 %v5449_v49  ;;  %v5321_v49 = vor.u32 %v6747_v42, %v5318_v46  ;;  %v5646_v42 = vld [vmem:[%s7483_s6 + $0x920] sm:$0xf0]  ;;  %v5652_v46 = vld [vmem:[%s7483_s6 + $0x908] sm:$0xf] }
 0x205   : > { %3750 = vmatpush.bf16.xpose.msrb.mxu0 %v5405_v58  ;;  %3763 = vmatpush.bf16.xpose.msrb.mxu1 %v5409_v59  ;;  %v5740_v58 = vld [vmem:[%s7483_s6 + $0x9c0] sm:$0xf] }
 0x206   : > { %3776 = vmatpush.bf16.xpose.msrb.mxu2 %v5413_v60  ;;  %v6860_v59 = vld [vmem:[%s7483_s6 + $0x9dc] sm:$0xf0]  ;;  %v6856_v60 = vld [vmem:[%s7483_s6 + $0x9c4] sm:$0xf] }
 0x207   : > { %3789 = vmatpush.bf16.xpose.msrb.mxu3 %v5417_v61  ;;  %v5277_v61 = vor.u32 %v6742_v51, %v5276_v50  ;;  %v5745_v5 = vor.u32 %v6856_v60, %v5742_v62  ;;  %v5614_v60 = vld [vmem:[%s7483_s6 + $0x8e0] sm:$0xf0]  ;;  %v6829_v62 = vld [vmem:[%s7483_s6 + $0x8e4] sm:$0xf0] }
 0x20d   : > { %3751 = vmatpush.bf16.xpose.msrb.mxu0 %v5373_v4  ;;  %3764 = vmatpush.bf16.xpose.msrb.mxu1 %v5377_v6  ;;  %v5741_v4 = vor.u32 %v6860_v59, %v5740_v58  ;;  %v5753_v6 = vor.u32 %v6857_v21, %v5750_v3  ;;  %v6828_v58 = vld [vmem:[%s7483_s6 + $0x8dc] sm:$0xf0]  ;;  %v6824_v59 = vld [vmem:[%s7483_s6 + $0x8c4] sm:$0xf] }
 0x20e   : > { %3777 = vmatpush.bf16.xpose.msrb.mxu2 %v5381_v31  ;;  %v5708_v31 = vld [vmem:[%s7483_s6 + $0x980] sm:$0xf] }
 0x20f   : > { %3790 = vmatpush.bf16.xpose.msrb.mxu3 %v5385_v8  ;;  %v6848_v8 = vld [vmem:[%s7483_s6 + $0x984] sm:$0xf]  ;;  %v5709_v18 = vor.u32 %v6852_v32, %v5708_v31  ;;  %v5588_v32 = vld [vmem:[%s7483_s6 + $0x888] sm:$0xf] }
 0x210   : > { %v5713_v19 = vor.u32 %v6848_v8, %v5710_v9  ;;  %v5582_v31 = vld [vmem:[%s7483_s6 + $0x8a0] sm:$0xf0]  ;;  %v6821_v8 = vld [vmem:[%s7483_s6 + $0x8a4] sm:$0xf0]  ;;  %v6817_v9 = vld [vmem:[%s7483_s6 + $0x88c] sm:$0xf] }
 0x211   : > { %v5589_v17 = vor.u32 %v6821_v8, %v5588_v32  ;;  %v6842_v32 = vld [vmem:[%s7483_s6 + $0x954] sm:$0xf] }
 0x212   : > { %v5694_v8 = vld [vmem:[%s7483_s6 + $0x970] sm:$0xf0] }
 0x215   : > { %3752 = vmatpush.bf16.xpose.msrb.mxu0 %v5341_v14  ;;  %3765 = vmatpush.bf16.xpose.msrb.mxu1 %v5345_v7  ;;  %v6844_v14 = vld [vmem:[%s7483_s6 + $0x95c] sm:$0xf0]  ;;  %v6845_v7 = vld [vmem:[%s7483_s6 + $0x964] sm:$0xf0] }
 0x216   : > { %3778 = vmatpush.bf16.xpose.msrb.mxu2 %v5349_v25  ;;  %v6841_v25 = vld [vmem:[%s7483_s6 + $0x94c] sm:$0xf]  ;;  %v5677_v27 = vor.u32 %v6844_v14, %v5676_v11  ;;  %v5550_v11 = vld [vmem:[%s7483_s6 + $0x860] sm:$0xf0]  ;;  %v5556_v14 = vld [vmem:[%s7483_s6 + $0x848] sm:$0xf] }
 0x217   : > { %3791 = vmatpush.bf16.xpose.msrb.mxu3 %v5353_v29 }
 0x21d   : > { %3753 = vmatpush.bf16.xpose.msrb.mxu0 %v5309_v47  ;;  %3766 = vmatpush.bf16.xpose.msrb.mxu1 %v5313_v43  ;;  %v6837_v47 = vld [vmem:[%s7483_s6 + $0x924] sm:$0xf0]  ;;  %v5654_v43 = vld [vmem:[%s7483_s6 + $0x928] sm:$0xf0] }
 0x21e   : > { %3779 = vmatpush.bf16.xpose.msrb.mxu2 %v5317_v45  ;;  %v5645_v45 = vor.u32 %v6836_v41, %v5644_v39  ;;  %v5653_v50 = vor.u32 %v6837_v47, %v5652_v46  ;;  %v5657_v52 = vor.u32 %v6833_v48, %v5654_v43  ;;  %v5526_v39 = vld [vmem:[%s7483_s6 + $0x828] sm:$0xf0]  ;;  %v5756_v41 = vld [vmem:[%s7483_s6 + $0x9d0] sm:$0xf]  ;;  %v5758_v47 = vld [vmem:[%s7483_s6 + $0x9f0] sm:$0xf0] }
 0x21f   : > { %3792 = vmatpush.bf16.xpose.msrb.mxu3 %v5321_v49  ;;  %v5764_v48 = vld [vmem:[%s7483_s6 + $0x9d8] sm:$0xf] }
 0x220   : > { %v6863_v43 = vld [vmem:[%s7483_s6 + $0x9f4] sm:$0xf0] }
 0x225   : > { %3754 = vmatpush.bf16.xpose.msrb.mxu0 %v5277_v61  ;;  %3767 = vmatpush.bf16.xpose.msrb.mxu1 %v5281_v1  ;;  %v5620_v61 = vld [vmem:[%s7483_s6 + $0x8c8] sm:$0xf]  ;;  %v5613_v1 = vor.u32 %v6828_v58, %v5612_v57  ;;  %v5724_v57 = vld [vmem:[%s7483_s6 + $0x990] sm:$0xf] }
 0x226   : > { %3780 = vmatpush.bf16.xpose.msrb.mxu2 %v5285_v2  ;;  %v5617_v2 = vor.u32 %v6824_v59, %v5614_v60  ;;  %v5621_v21 = vor.u32 %v6829_v62, %v5620_v61  ;;  %v6854_v58 = vld [vmem:[%s7483_s6 + $0x9ac] sm:$0xf0]  ;;  %v6850_v59 = vld [vmem:[%s7483_s6 + $0x994] sm:$0xf]  ;;  %v5732_v61 = vld [vmem:[%s7483_s6 + $0x998] sm:$0xf] }
 0x227   : > { %3793 = vmatpush.bf16.xpose.msrb.mxu3 %v5289_v40  ;;  %v5625_v40 = vor.u32 %v6825_v63, %v5622_v0  ;;  %v5726_v60 = vld [vmem:[%s7483_s6 + $0x9b0] sm:$0xf0]  ;;  %v6855_v62 = vld [vmem:[%s7483_s6 + $0x9b4] sm:$0xf0]  ;;  %v6851_v63 = vld [vmem:[%s7483_s6 + $0x99c] sm:$0xf] }
 0x228   : > { %v5734_v0 = vld [vmem:[%s7483_s6 + $0x9b8] sm:$0xf0] }
 0x229   : > { %v3652_v33 = vpop.f32.mrf.mxu0  ;;  %v3665_v35 = vpop.f32.mrf.mxu1 }
 0x22a   : > { %v3653_v30 = vadd.f32 %v3652_v33, %v8057_v26  ;;  %v5649_v26 = vor.u32 %v6832_v44, %v5646_v42  ;;  %v5518_v33 = vld [vmem:[%s7483_s6 + $0x820] sm:$0xf0]  ;;  %v6862_v44 = vld [vmem:[%s7483_s6 + $0x9ec] sm:$0xf0]  ;;  %v6858_v42 = vld [vmem:[%s7483_s6 + $0x9d4] sm:$0xf] }
 0x22c   : > { %3755 = vmatmul.bf16.vlgmr.msrb.gmra.mxu0 %v7940_v28  ;;  %3768 = vmatmul.bf16.vlgmr.msrb.gmra.mxu1 %v7946_v36  ;;  %v5678_v28 = vld [vmem:[%s7483_s6 + $0x960] sm:$0xf0]  ;;  %v3666_v38 = vadd.f32 %v3665_v35, %v3653_v30  ;;  %v5524_v30 = vld [vmem:[%s7483_s6 + $0x808] sm:$0xf] }
 0x22d   : > { %3799 = vmatpush.bf16.xpose.msra.mxu0 %v5741_v4  ;;  %3812 = vmatpush.bf16.xpose.msra.mxu1 %v5745_v5  ;;  %v5681_v36 = vor.u32 %v6840_v13, %v5678_v28  ;;  %v5580_v5 = vld [vmem:[%s7483_s6 + $0x880] sm:$0xf]  ;;  %v6813_v13 = vld [vmem:[%s7483_s6 + $0x864] sm:$0xf0]  ;;  %v6809_v28 = vld [vmem:[%s7483_s6 + $0x84c] sm:$0xf] }
 0x22e   : > { %3825 = vmatpush.bf16.xpose.msra.mxu2 %v5749_v22  ;;  %3794 = vmatmul.bf16.vlgmr.msrb.gmra.mxu3 %v7949_v37  ;;  %v5685_v37 = vor.u32 %v6845_v7, %v5684_v24  ;;  %v6820_v22 = vld [vmem:[%s7483_s6 + $0x89c] sm:$0xf0]  ;;  %v5558_v24 = vld [vmem:[%s7483_s6 + $0x868] sm:$0xf0]  ;;  %v6805_v35 = vld [vmem:[%s7483_s6 + $0x824] sm:$0xf0] }
 0x22f   : > { %3838 = vmatpush.bf16.xpose.msra.mxu3 %v5753_v6  ;;  %3781 = vmatmul.bf16.vlgmr.msrb.gmra.mxu2 %v7943_v34  ;;  %v5686_v34 = vld [vmem:[%s7483_s6 + $0x968] sm:$0xf0]  ;;  %v6816_v6 = vld [vmem:[%s7483_s6 + $0x884] sm:$0xf]  ;;  %v5581_v15 = vor.u32 %v6820_v22, %v5580_v5  ;;  %v8168_v5 = vld [vmem:[#allocation1 + $0x9] sm:$0xff] }
 0x230   : > { %v5689_v29 = vor.u32 %v6841_v25, %v5686_v34  ;;  %v5585_v16 = vor.u32 %v6816_v6, %v5582_v31  ;;  %v5557_v34 = vor.u32 %v6813_v13, %v5556_v14  ;;  %v8171_v22 = vld [vmem:[#allocation1 + $0x1b] sm:$0xff]  ;;  %v6834_v14 = vld [vmem:[%s7483_s6 + $0x914] sm:$0xf] }
 0x231   : > { %v3691_v53 = vpop.f32.mrf.mxu3  ;;  %v3654_v54 = vpop.f32.mrf.mxu0  ;;  %v5692_v6 = vld [vmem:[%s7483_s6 + $0x950] sm:$0xf]  ;;  %v5662_v13 = vld [vmem:[%s7483_s6 + $0x930] sm:$0xf0] }
 0x232   : > { %v3678_v49 = vpop.f32.mrf.mxu2  ;;  %v3667_v55 = vpop.f32.mrf.mxu1  ;;  %v5765_v54 = vor.u32 %v6863_v43, %v5764_v48  ;;  %v6846_v31 = vld [vmem:[%s7483_s6 + $0x96c] sm:$0xf0] }
 0x233   : > { %v3679_v51 = vadd.f32 %v3678_v49, %v3666_v38  ;;  %v6801_v38 = vld [vmem:[%s7483_s6 + $0x80c] sm:$0xf]  ;;  %v5525_v49 = vor.u32 %v6805_v35, %v5524_v30  ;;  %v6826_v30 = vld [vmem:[%s7483_s6 + $0x8d4] sm:$0xf] }
 0x234   : > { %v5630_v35 = vld [vmem:[%s7483_s6 + $0x8f0] sm:$0xf0] }
 0x235   : > { %3800 = vmatpush.bf16.xpose.msra.mxu0 %v5709_v18  ;;  %3813 = vmatpush.bf16.xpose.msra.mxu1 %v5713_v19  ;;  %v8112_v56 = vadd.f32 %v3691_v53, %v3679_v51  ;;  %v5593_v18 = vor.u32 %v6817_v9, %v5590_v10  ;;  %v5548_v19 = vld [vmem:[%s7483_s6 + $0x840] sm:$0xf]  ;;  %v5529_v51 = vor.u32 %v6801_v38, %v5526_v39  ;;  %v5700_v9 = vld [vmem:[%s7483_s6 + $0x958] sm:$0xf] }
 0x236   : > { %3826 = vmatpush.bf16.xpose.msra.mxu2 %v5717_v20  ;;  %v6812_v20 = vld [vmem:[%s7483_s6 + $0x85c] sm:$0xf0]  ;;  %v5761_v53 = vor.u32 %v6858_v42, %v5758_v47  ;;  %v6847_v10 = vld [vmem:[%s7483_s6 + $0x974] sm:$0xf0]  ;;  %v5633_v48 = vor.u32 %v6826_v30, %v5630_v35  ;;  %v6921_v35 = vld [vmem:[%s7483_s6 + $0xbcc] sm:$0xf] }
 0x237   : > { %3839 = vmatpush.bf16.xpose.msra.mxu3 %v5721_v12  ;;  %v6808_v12 = vld [vmem:[%s7483_s6 + $0x844] sm:$0xf]  ;;  %v5549_v7 = vor.u32 %v6812_v20, %v5548_v19  ;;  %v5701_v19 = vor.u32 %v6847_v10, %v5700_v9  ;;  %v5636_v38 = vld [vmem:[%s7483_s6 + $0x8d8] sm:$0xf]  ;;  %v5574_v9 = vld [vmem:[%s7483_s6 + $0x878] sm:$0xf0] }
 0x238   : > { %v5553_v25 = vor.u32 %v6808_v12, %v5550_v11  ;;  %v5660_v12 = vld [vmem:[%s7483_s6 + $0x910] sm:$0xf]  ;;  %v6831_v39 = vld [vmem:[%s7483_s6 + $0x8f4] sm:$0xf0] }
 0x239   : > { %v3693_v4 = vpop.f32.mrf.mxu3  ;;  %v6838_v11 = vld [vmem:[%s7483_s6 + $0x92c] sm:$0xf0]  ;;  %v5637_v43 = vor.u32 %v6831_v39, %v5636_v38  ;;  %v6006_v38 = vld [vmem:[%s7483_s6 + $0xbe8] sm:$0xf0] }
 0x23a   : > { %v3680_v3 = vpop.f32.mrf.mxu2  ;;  %v8165_v4 = vld [vmem:[#allocation1 + $0x12] sm:$0xff] }
 0x23b   : > { %v8162_v3 = vld [vmem:[#allocation1] sm:$0xff] }
 0x23d   : > { %3801 = vmatpush.bf16.xpose.msra.mxu0 %v5677_v27  ;;  %3814 = vmatpush.bf16.xpose.msra.mxu1 %v5681_v36  ;;  %v5561_v27 = vor.u32 %v6809_v28, %v5558_v24  ;;  %v5516_v36 = vld [vmem:[%s7483_s6 + $0x800] sm:$0xf]  ;;  %v5668_v28 = vld [vmem:[%s7483_s6 + $0x918] sm:$0xf] }
 0x23e   : > { %3827 = vmatpush.bf16.xpose.msra.mxu2 %v5685_v37  ;;  %v6804_v37 = vld [vmem:[%s7483_s6 + $0x81c] sm:$0xf0]  ;;  %v6839_v24 = vld [vmem:[%s7483_s6 + $0x934] sm:$0xf0] }
 0x23f   : > { %3840 = vmatpush.bf16.xpose.msra.mxu3 %v5689_v29  ;;  %v6800_v29 = vld [vmem:[%s7483_s6 + $0x804] sm:$0xf]  ;;  %v5517_v46 = vor.u32 %v6804_v37, %v5516_v36  ;;  %v5669_v36 = vor.u32 %v6839_v24, %v5668_v28  ;;  %v6803_v28 = vld [vmem:[%s7483_s6 + $0x81c] sm:$0xf] }
 0x240   : > { %v5542_v24 = vld [vmem:[%s7483_s6 + $0x838] sm:$0xf0] }
 0x241   : > { %v5545_v39 = vor.u32 %v6803_v28, %v5542_v24  ;;  %v6896_v28 = vld [vmem:[%s7483_s6 + $0xb04] sm:$0xf] }
 0x245   : > { %3802 = vmatpush.bf16.xpose.msra.mxu0 %v5645_v45  ;;  %3815 = vmatpush.bf16.xpose.msra.mxu1 %v5649_v26  ;;  %v5521_v45 = vor.u32 %v6800_v29, %v5518_v33  ;;  %v6859_v26 = vld [vmem:[%s7483_s6 + $0x9dc] sm:$0xf]  ;;  %v5628_v29 = vld [vmem:[%s7483_s6 + $0x8d0] sm:$0xf] }
 0x246   : > { %3828 = vmatpush.bf16.xpose.msra.mxu2 %v5653_v50  ;;  %v5766_v50 = vld [vmem:[%s7483_s6 + $0x9f8] sm:$0xf0]  ;;  %v6830_v33 = vld [vmem:[%s7483_s6 + $0x8ec] sm:$0xf0] }
 0x247   : > { %3841 = vmatpush.bf16.xpose.msra.mxu3 %v5657_v52  ;;  %v5757_v52 = vor.u32 %v6862_v44, %v5756_v41  ;;  %v5769_v55 = vor.u32 %v6859_v26, %v5766_v50  ;;  %v6827_v41 = vld [vmem:[%s7483_s6 + $0x8dc] sm:$0xf]  ;;  %v5629_v42 = vor.u32 %v6830_v33, %v5628_v29  ;;  %v5596_v26 = vld [vmem:[%s7483_s6 + $0x890] sm:$0xf]  ;;  %v6925_v29 = vld [vmem:[%s7483_s6 + $0xbe4] sm:$0xf0] }
 0x248   : > { %v5638_v44 = vld [vmem:[%s7483_s6 + $0x8f8] sm:$0xf0]  ;;  %v6822_v50 = vld [vmem:[%s7483_s6 + $0x8ac] sm:$0xf0] }
 0x24d   : > { %3803 = vmatpush.bf16.xpose.msra.mxu0 %v5613_v1  ;;  %3816 = vmatpush.bf16.xpose.msra.mxu1 %v5617_v2  ;;  %v5725_v1 = vor.u32 %v6854_v58, %v5724_v57  ;;  %v5729_v2 = vor.u32 %v6850_v59, %v5726_v60  ;;  %v5606_v57 = vld [vmem:[%s7483_s6 + $0x8b8] sm:$0xf0]  ;;  %v5597_v58 = vor.u32 %v6822_v50, %v5596_v26  ;;  %v6912_v26 = vld [vmem:[%s7483_s6 + $0xb84] sm:$0xf] }
 0x24e   : > { %3829 = vmatpush.bf16.xpose.msra.mxu2 %v5621_v21  ;;  %v5733_v21 = vor.u32 %v6855_v62, %v5732_v61  ;;  %v5966_v50 = vld [vmem:[%s7483_s6 + $0xba0] sm:$0xf0] }
 0x24f   : > { %3842 = vmatpush.bf16.xpose.msra.mxu3 %v5625_v40  ;;  %v5737_v40 = vor.u32 %v6851_v63, %v5734_v0 }
 0x255   : > { %3804 = vmatpush.bf16.xpose.msra.mxu0 %v5581_v15  ;;  %3817 = vmatpush.bf16.xpose.msra.mxu1 %v5585_v16  ;;  %v6843_v15 = vld [vmem:[%s7483_s6 + $0x95c] sm:$0xf] }
 0x256   : > { %3830 = vmatpush.bf16.xpose.msra.mxu2 %v5589_v17  ;;  %v5702_v16 = vld [vmem:[%s7483_s6 + $0x978] sm:$0xf0]  ;;  %v5693_v17 = vor.u32 %v6846_v31, %v5692_v6  ;;  %v5566_v6 = vld [vmem:[%s7483_s6 + $0x870] sm:$0xf0]  ;;  %v5572_v31 = vld [vmem:[%s7483_s6 + $0x858] sm:$0xf] }
 0x257   : > { %3843 = vmatpush.bf16.xpose.msra.mxu3 %v5593_v18  ;;  %v5697_v18 = vor.u32 %v6842_v32, %v5694_v8  ;;  %v5705_v20 = vor.u32 %v6843_v15, %v5702_v16  ;;  %v6815_v32 = vld [vmem:[%s7483_s6 + $0x874] sm:$0xf0]  ;;  %v6811_v8 = vld [vmem:[%s7483_s6 + $0x85c] sm:$0xf] }
 0x25d   : > { %3805 = vmatpush.bf16.xpose.msra.mxu0 %v5549_v7  ;;  %3818 = vmatpush.bf16.xpose.msra.mxu1 %v5553_v25  ;;  %v6835_v7 = vld [vmem:[%s7483_s6 + $0x91c] sm:$0xf] }
 0x25e   : > { %3831 = vmatpush.bf16.xpose.msra.mxu2 %v5557_v34  ;;  %v5670_v25 = vld [vmem:[%s7483_s6 + $0x938] sm:$0xf0]  ;;  %v5661_v34 = vor.u32 %v6838_v11, %v5660_v12  ;;  %v6802_v12 = vld [vmem:[%s7483_s6 + $0x814] sm:$0xf] }
 0x25f   : > { %3844 = vmatpush.bf16.xpose.msra.mxu3 %v5561_v27  ;;  %v5665_v27 = vor.u32 %v6834_v14, %v5662_v13  ;;  %v5673_v37 = vor.u32 %v6835_v7, %v5670_v25  ;;  %v5534_v11 = vld [vmem:[%s7483_s6 + $0x830] sm:$0xf0]  ;;  %v5540_v14 = vld [vmem:[%s7483_s6 + $0x818] sm:$0xf]  ;;  %v5996_v7 = vld [vmem:[%s7483_s6 + $0xbc0] sm:$0xf] }
 0x260   : > { %v6807_v13 = vld [vmem:[%s7483_s6 + $0x834] sm:$0xf0]  ;;  %v6924_v25 = vld [vmem:[%s7483_s6 + $0xbdc] sm:$0xf0]  ;;  %v5537_v33 = vor.u32 %v6802_v12, %v5534_v11 }
 0x261   : > { %v5541_v30 = vor.u32 %v6807_v13, %v5540_v14  ;;  %v6900_v12 = vld [vmem:[%s7483_s6 + $0xb1c] sm:$0xf0] }
 0x265   : > { %3806 = vmatpush.bf16.xpose.msra.mxu0 %v5517_v46  ;;  %3819 = vmatpush.bf16.xpose.msra.mxu1 %v5521_v45  ;;  %v5641_v45 = vor.u32 %v6827_v41, %v5638_v44  ;;  %v5997_v41 = vor.u32 %v6924_v25, %v5996_v7  ;;  %v5902_v7 = vld [vmem:[%s7483_s6 + $0xb20] sm:$0xf0]  ;;  %v5908_v25 = vld [vmem:[%s7483_s6 + $0xb08] sm:$0xf] }
 0x266   : > { %3832 = vmatpush.bf16.xpose.msra.mxu2 %v5525_v49 }
 0x267   : > { %3845 = vmatpush.bf16.xpose.msra.mxu3 %v5529_v51  ;;  %v6818_v51 = vld [vmem:[%s7483_s6 + $0x894] sm:$0xf] }
 0x269   : > { %v8198_v46 = vpop.f32.mrf.mxu0  ;;  %v8200_v47 = vpop.f32.mrf.mxu1 }
 0x26c   : > { %3807 = vmatmul.bf16.vlgmr.msra.gmra.mxu0 %v8162_v3  ;;  %3820 = vmatmul.bf16.vlgmr.msra.gmra.mxu1 %v8168_v5 }
 0x26d   : > { %3851 = vmatpush.bf16.xpose.msrb.mxu0 %v5757_v52  ;;  %3864 = vmatpush.bf16.xpose.msrb.mxu1 %v5761_v53  ;;  %v5598_v52 = vld [vmem:[%s7483_s6 + $0x8b0] sm:$0xf0]  ;;  %v5604_v53 = vld [vmem:[%s7483_s6 + $0x898] sm:$0xf] }
 0x26e   : > { %3877 = vmatpush.bf16.xpose.msrb.mxu2 %v5765_v54  ;;  %3846 = vmatmul.bf16.vlgmr.msra.gmra.mxu3 %v8171_v22  ;;  %v6823_v54 = vld [vmem:[%s7483_s6 + $0x8b4] sm:$0xf0]  ;;  %v5601_v61 = vor.u32 %v6818_v51, %v5598_v52  ;;  %v5972_v51 = vld [vmem:[%s7483_s6 + $0xb88] sm:$0xf] }
 0x26f   : > { %3890 = vmatpush.bf16.xpose.msrb.mxu3 %v5769_v55  ;;  %3833 = vmatmul.bf16.vlgmr.msra.gmra.mxu2 %v8165_v4  ;;  %v6819_v55 = vld [vmem:[%s7483_s6 + $0x89c] sm:$0xf]  ;;  %v5605_v62 = vor.u32 %v6823_v54, %v5604_v53  ;;  %v6917_v52 = vld [vmem:[%s7483_s6 + $0xba4] sm:$0xf0]  ;;  %v3718_v53 = vadd.f32 %v8200_v47, %v8198_v46  ;;  %v6913_v54 = vld [vmem:[%s7483_s6 + $0xb8c] sm:$0xf] }
 0x270   : > { %v5609_v0 = vor.u32 %v6819_v55, %v5606_v57  ;;  %v5974_v55 = vld [vmem:[%s7483_s6 + $0xba8] sm:$0xf0]  ;;  %v8255_v47 = vld [vmem:[#allocation1 + $0x2d] sm:$0xff] }
 0x271   : > { %v8212_v59 = vpop.f32.mrf.mxu3  ;;  %v3706_v60 = vpop.f32.mrf.mxu0  ;;  %v5977_v46 = vor.u32 %v6913_v54, %v5974_v55  ;;  %v6888_v54 = vld [vmem:[%s7483_s6 + $0xac4] sm:$0xf] }
 0x272   : > { %v8202_v49 = vpop.f32.mrf.mxu2  ;;  %v3719_v63 = vpop.f32.mrf.mxu1  ;;  %v5969_v60 = vor.u32 %v6912_v26, %v5966_v50  ;;  %v5868_v50 = vld [vmem:[%s7483_s6 + $0xac0] sm:$0xf]  ;;  %v5870_v55 = vld [vmem:[%s7483_s6 + $0xae0] sm:$0xf0] }
 0x273   : > { %v3731_v63 = vadd.f32 %v8202_v49, %v3718_v53  ;;  %v6905_v49 = vld [vmem:[%s7483_s6 + $0xb4c] sm:$0xf]  ;;  %v6892_v53 = vld [vmem:[%s7483_s6 + $0xadc] sm:$0xf0] }
 0x275   : > { %3852 = vmatpush.bf16.xpose.msrb.mxu0 %v5725_v1  ;;  %3865 = vmatpush.bf16.xpose.msrb.mxu1 %v5729_v2  ;;  %v5564_v2 = vld [vmem:[%s7483_s6 + $0x850] sm:$0xf] }
 0x276   : > { %3878 = vmatpush.bf16.xpose.msrb.mxu2 %v5733_v21  ;;  %v6814_v21 = vld [vmem:[%s7483_s6 + $0x86c] sm:$0xf0] }
 0x277   : > { %3891 = vmatpush.bf16.xpose.msrb.mxu3 %v5737_v40  ;;  %v6810_v40 = vld [vmem:[%s7483_s6 + $0x854] sm:$0xf]  ;;  %v5565_v10 = vor.u32 %v6814_v21, %v5564_v2  ;;  %v6908_v2 = vld [vmem:[%s7483_s6 + $0xb5c] sm:$0xf0]  ;;  %v6904_v21 = vld [vmem:[%s7483_s6 + $0xb44] sm:$0xf] }
 0x278   : > { %v5569_v16 = vor.u32 %v6810_v40, %v5566_v6  ;;  %v5934_v40 = vld [vmem:[%s7483_s6 + $0xb60] sm:$0xf0]  ;;  %v5940_v6 = vld [vmem:[%s7483_s6 + $0xb48] sm:$0xf] }
 0x279   : > { %v3745_v15 = vpop.f32.mrf.mxu3 }
 0x27a   : > { %v3732_v1 = vpop.f32.mrf.mxu2 }
 0x27b   : > { %v5932_v1 = vld [vmem:[%s7483_s6 + $0xb40] sm:$0xf] }
 0x27d   : > { %3853 = vmatpush.bf16.xpose.msrb.mxu0 %v5693_v17  ;;  %3866 = vmatpush.bf16.xpose.msrb.mxu1 %v5697_v18  ;;  %v5573_v17 = vor.u32 %v6815_v32, %v5572_v31  ;;  %v5577_v18 = vor.u32 %v6811_v8, %v5574_v9  ;;  %v6909_v31 = vld [vmem:[%s7483_s6 + $0xb64] sm:$0xf0]  ;;  %v3744_v32 = vadd.f32 %v8212_v59, %v3731_v63  ;;  %v5942_v8 = vld [vmem:[%s7483_s6 + $0xb68] sm:$0xf0]  ;;  %v5900_v59 = vld [vmem:[%s7483_s6 + $0xb00] sm:$0xf] }
 0x27e   : > { %3879 = vmatpush.bf16.xpose.msrb.mxu2 %v5701_v19  ;;  %v5532_v19 = vld [vmem:[%s7483_s6 + $0x810] sm:$0xf]  ;;  %v5933_v9 = vor.u32 %v6908_v2, %v5932_v1  ;;  %v5941_v15 = vor.u32 %v6909_v31, %v5940_v6  ;;  %v6889_v63 = vld [vmem:[%s7483_s6 + $0xacc] sm:$0xf] }
 0x27f   : > { %3892 = vmatpush.bf16.xpose.msrb.mxu3 %v5705_v20  ;;  %v6806_v20 = vld [vmem:[%s7483_s6 + $0x82c] sm:$0xf0]  ;;  %v5878_v1 = vld [vmem:[%s7483_s6 + $0xae8] sm:$0xf0] }
 0x285   : > { %3854 = vmatpush.bf16.xpose.msrb.mxu0 %v5661_v34  ;;  %3867 = vmatpush.bf16.xpose.msrb.mxu1 %v5665_v27  ;;  %v6920_v34 = vld [vmem:[%s7483_s6 + $0xbc4] sm:$0xf]  ;;  %v5533_v27 = vor.u32 %v6806_v20, %v5532_v19 }
 0x286   : > { %3880 = vmatpush.bf16.xpose.msrb.mxu2 %v5669_v36  ;;  %v5998_v36 = vld [vmem:[%s7483_s6 + $0xbe0] sm:$0xf0] }
 0x287   : > { %3893 = vmatpush.bf16.xpose.msrb.mxu3 %v5673_v37  ;;  %v6004_v37 = vld [vmem:[%s7483_s6 + $0xbc8] sm:$0xf]  ;;  %v6001_v44 = vor.u32 %v6920_v34, %v5998_v36  ;;  %v6897_v36 = vld [vmem:[%s7483_s6 + $0xb0c] sm:$0xf] }
 0x288   : > { %v6901_v34 = vld [vmem:[%s7483_s6 + $0xb24] sm:$0xf0] }
 0x28d   : > { %3855 = vmatpush.bf16.xpose.msrb.mxu0 %v5629_v42  ;;  %3868 = vmatpush.bf16.xpose.msrb.mxu1 %v5633_v48  ;;  %v6005_v42 = vor.u32 %v6925_v29, %v6004_v37  ;;  %v6009_v48 = vor.u32 %v6921_v35, %v6006_v38  ;;  %v5910_v37 = vld [vmem:[%s7483_s6 + $0xb28] sm:$0xf0] }
 0x28e   : > { %3881 = vmatpush.bf16.xpose.msrb.mxu2 %v5637_v43  ;;  %v5964_v43 = vld [vmem:[%s7483_s6 + $0xb80] sm:$0xf] }
 0x28f   : > { %3894 = vmatpush.bf16.xpose.msrb.mxu3 %v5641_v45  ;;  %v6916_v45 = vld [vmem:[%s7483_s6 + $0xb9c] sm:$0xf0] }
 0x290   : > { %v5965_v57 = vor.u32 %v6916_v45, %v5964_v43 }
 0x295   : > { %3856 = vmatpush.bf16.xpose.msrb.mxu0 %v5597_v58  ;;  %3869 = vmatpush.bf16.xpose.msrb.mxu1 %v5601_v61  ;;  %v8248_v58 = vld [vmem:[#allocation1 + $0x24] sm:$0xff]  ;;  %v5973_v61 = vor.u32 %v6917_v52, %v5972_v51 }
 0x296   : > { %3882 = vmatpush.bf16.xpose.msrb.mxu2 %v5605_v62  ;;  %v8252_v62 = vld [vmem:[#allocation1 + $0x36] sm:$0xff] }
 0x297   : > { %3895 = vmatpush.bf16.xpose.msrb.mxu3 %v5609_v0  ;;  %v8259_v0 = vld [vmem:[#allocation1 + $0x3f] sm:$0xff] }
 0x29d   : > { %3857 = vmatpush.bf16.xpose.msrb.mxu0 %v5565_v10  ;;  %3870 = vmatpush.bf16.xpose.msrb.mxu1 %v5569_v16  ;;  %v5937_v10 = vor.u32 %v6904_v21, %v5934_v40  ;;  %v4249_v16 = vld [vmem:[%s8273_s10] sm:$0xff]  ;;  %v5869_v40 = vor.u32 %v6892_v53, %v5868_v50  ;;  %v6926_v50 = vld [vmem:[%s7483_s6 + $0xbec] sm:$0xf0]  ;;  %v6014_v53 = vld [vmem:[%s7483_s6 + $0xbf0] sm:$0xf0] }
 0x29e   : > { %3883 = vmatpush.bf16.xpose.msrb.mxu2 %v5573_v17  ;;  %v5945_v17 = vor.u32 %v6905_v49, %v5942_v8  ;;  %v4252_v11 = vperm.slane %v4249_v16, 1  ;;  %v4253_v14 = vperm.slane %v4249_v16, 2  ;;  %v4254_v13 = vperm.slane %v4249_v16, 3 }
 0x29f   : > { %3896 = vmatpush.bf16.xpose.msrb.mxu3 %v5577_v18  ;;  %v4251_v29 = vperm.slane %v4249_v16, 0  ;;  %v5881_v49 = vor.u32 %v6889_v63, %v5878_v1  ;;  %v6884_v16 = vld [vmem:[%s7483_s6 + $0xa9c] sm:$0xf0] }
 0x2a0   : > { %v4261_v35 = vrot.slane %v4254_v13, 2 }
 0x2a5   : > { %3858 = vmatpush.bf16.xpose.msrb.mxu0 %v5533_v27  ;;  %3871 = vmatpush.bf16.xpose.msrb.mxu1 %v5537_v33  ;;  %v5901_v27 = vor.u32 %v6900_v12, %v5900_v59  ;;  %v4259_v33 = vrot.slane %v4252_v11, 6  ;;  %v5846_v59 = vld [vmem:[%s7483_s6 + $0xaa8] sm:$0xf0] }
 0x2a6   : > { %3884 = vmatpush.bf16.xpose.msrb.mxu2 %v5541_v30  ;;  %v4260_v30 = vrot.slane %v4253_v14, 4 }
 0x2a7   : > { %3897 = vmatpush.bf16.xpose.msrb.mxu3 %v5545_v39  ;;  %v5905_v39 = vor.u32 %v6896_v28, %v5902_v7  ;;  %v4265_v51 = vsel %vm4229_vm0, %v4251_v29, %v4259_v33  ;;  %v5804_v28 = vld [vmem:[%s7483_s6 + $0xa40] sm:$0xf]  ;;  %v6872_v7 = vld [vmem:[%s7483_s6 + $0xa44] sm:$0xf] }
 0x2a8   : > { %v4266_v52 = vsel %vm4231_vm1, %v4260_v30, %v4261_v35 }
 0x2a9   : > { %v3756_v18 = vpop.f32.mrf.mxu0  ;;  %v3769_v20 = vpop.f32.mrf.mxu1  ;;  %v4267_v2 = vsel %vm4233_vm2, %v4265_v51, %v4266_v52  ;;  %v6922_v51 = vld [vmem:[%s7483_s6 + $0xbd4] sm:$0xf] }
 0x2aa   : > { %v3757_v19 = vadd.f32 %v3756_v18, %v3744_v32  ;;  %v5844_v18 = vld [vmem:[%s7483_s6 + $0xa88] sm:$0xf] }
 0x2ac   : > { %3859 = vmatmul.bf16.vlgmr.msrb.gmra.mxu0 %v8248_v58  ;;  %3872 = vmatmul.bf16.vlgmr.msrb.gmra.mxu1 %v8255_v47  ;;  %v3770_v24 = vadd.f32 %v3769_v20, %v3757_v19  ;;  %v6885_v19 = vld [vmem:[%s7483_s6 + $0xaa4] sm:$0xf0]  ;;  %v6881_v20 = vld [vmem:[%s7483_s6 + $0xa8c] sm:$0xf] }
 0x2ad   : > { %3903 = vmatpush.bf16.xpose.msra.mxu0 %v5997_v41  ;;  %3916 = vmatpush.bf16.xpose.msra.mxu1 %v6001_v44  ;;  %v5909_v41 = vor.u32 %v6901_v34, %v5908_v25  ;;  %v5845_v14 = vor.u32 %v6885_v19, %v5844_v18  ;;  %v5849_v13 = vor.u32 %v6881_v20, %v5846_v59  ;;  %v5806_v25 = vld [vmem:[%s7483_s6 + $0xa60] sm:$0xf0]  ;;  %v5812_v34 = vld [vmem:[%s7483_s6 + $0xa48] sm:$0xf]  ;;  %v5948_v18 = vld [vmem:[%s7483_s6 + $0xb50] sm:$0xf] }
 0x2ae   : > { %3929 = vmatpush.bf16.xpose.msra.mxu2 %v6005_v42  ;;  %3898 = vmatmul.bf16.vlgmr.msrb.gmra.mxu3 %v8259_v0  ;;  %v5913_v42 = vor.u32 %v6897_v36, %v5910_v37  ;;  %v6873_v36 = vld [vmem:[%s7483_s6 + $0xa4c] sm:$0xf]  ;;  %v5809_v33 = vor.u32 %v6872_v7, %v5806_v25  ;;  %v6910_v19 = vld [vmem:[%s7483_s6 + $0xb6c] sm:$0xf0]  ;;  %v6906_v20 = vld [vmem:[%s7483_s6 + $0xb54] sm:$0xf] }
 0x2af   : > { %3942 = vmatpush.bf16.xpose.msra.mxu3 %v6009_v48  ;;  %3885 = vmatmul.bf16.vlgmr.msrb.gmra.mxu2 %v8252_v62  ;;  %v5814_v37 = vld [vmem:[%s7483_s6 + $0xa68] sm:$0xf0]  ;;  %v5950_v59 = vld [vmem:[%s7483_s6 + $0xb70] sm:$0xf0] }
 0x2b0   : > { %v5817_v35 = vor.u32 %v6873_v36, %v5814_v37  ;;  %v6898_v36 = vld [vmem:[%s7483_s6 + $0xb14] sm:$0xf] }
 0x2b1   : > { %v3795_v48 = vpop.f32.mrf.mxu3  ;;  %v3758_v43 = vpop.f32.mrf.mxu0  ;;  %v5918_v37 = vld [vmem:[%s7483_s6 + $0xb30] sm:$0xf0] }
 0x2b2   : > { %v3782_v38 = vpop.f32.mrf.mxu2  ;;  %v3771_v45 = vpop.f32.mrf.mxu1  ;;  %v6865_v43 = vld [vmem:[%s7483_s6 + $0xa0c] sm:$0xf] }
 0x2b3   : > { %v3783_v44 = vadd.f32 %v3782_v38, %v3770_v24  ;;  %v6876_v24 = vld [vmem:[%s7483_s6 + $0xa5c] sm:$0xf0]  ;;  %v5782_v45 = vld [vmem:[%s7483_s6 + $0xa28] sm:$0xf0] }
 0x2b4   : > { %v5805_v29 = vor.u32 %v6876_v24, %v5804_v28  ;;  %v5772_v38 = vld [vmem:[%s7483_s6 + $0xa00] sm:$0xf]  ;;  %v5785_v63 = vor.u32 %v6865_v43, %v5782_v45  ;;  %v5949_v28 = vor.u32 %v6910_v19, %v5948_v18  ;;  %v5953_v24 = vor.u32 %v6906_v20, %v5950_v59  ;;  %v6890_v43 = vld [vmem:[%s7483_s6 + $0xad4] sm:$0xf]  ;;  %v5820_v20 = vld [vmem:[%s7483_s6 + $0xa50] sm:$0xf] }
 0x2b5   : > { %3904 = vmatpush.bf16.xpose.msra.mxu0 %v5965_v57  ;;  %3917 = vmatpush.bf16.xpose.msra.mxu1 %v5969_v60  ;;  %v3796_v26 = vadd.f32 %v3795_v48, %v3783_v44  ;;  %v4224_v57 = vrot.slane %v8112_v56, 4  ;;  %v5873_v56 = vor.u32 %v6888_v54, %v5870_v55  ;;  %v5774_v44 = vld [vmem:[%s7483_s6 + $0xa20] sm:$0xf0]  ;;  %v6869_v48 = vld [vmem:[%s7483_s6 + $0xa24] sm:$0xf0] }
 0x2b6   : > { %3930 = vmatpush.bf16.xpose.msra.mxu2 %v5973_v61  ;;  %v5876_v61 = vld [vmem:[%s7483_s6 + $0xac8] sm:$0xf]  ;;  %v6020_v54 = vld [vmem:[%s7483_s6 + $0xbd8] sm:$0xf]  ;;  %v5886_v45 = vld [vmem:[%s7483_s6 + $0xaf0] sm:$0xf0] }
 0x2b7   : > { %3943 = vmatpush.bf16.xpose.msra.mxu3 %v5977_v46  ;;  %v4225_v60 = vrot.slane %v3796_v26, 2  ;;  %v6893_v46 = vld [vmem:[%s7483_s6 + $0xae4] sm:$0xf0]  ;;  %v6012_v26 = vld [vmem:[%s7483_s6 + $0xbd0] sm:$0xf] }
 0x2b8   : > { %v5877_v31 = vor.u32 %v6893_v46, %v5876_v61  ;;  %v6927_v55 = vld [vmem:[%s7483_s6 + $0xbf4] sm:$0xf0]  ;;  %v6923_v61 = vld [vmem:[%s7483_s6 + $0xbdc] sm:$0xf]  ;;  %v6013_v1 = vor.u32 %v6926_v50, %v6012_v26  ;;  %v6878_v59 = vld [vmem:[%s7483_s6 + $0xa6c] sm:$0xf0] }
 0x2b9   : > { %v4232_v21 = vsel %vm4231_vm1, %v4224_v57, %v4225_v60  ;;  %v3797_v8 = vpop.f32.mrf.mxu3  ;;  %v6022_v46 = vld [vmem:[%s7483_s6 + $0xbf8] sm:$0xf0]  ;;  %v5892_v26 = vld [vmem:[%s7483_s6 + $0xad8] sm:$0xf] }
 0x2ba   : > { %v4234_v6 = vsel %vm4233_vm2, %v7979_v23, %v4232_v21  ;;  %v3784_v32 = vpop.f32.mrf.mxu2  ;;  %v5838_v23 = vld [vmem:[%s7483_s6 + $0xaa0] sm:$0xf0]  ;;  %v6021_v21 = vor.u32 %v6927_v55, %v6020_v54  ;;  %v6919_v8 = vld [vmem:[%s7483_s6 + $0xbb4] sm:$0xf0] }
 0x2bb   : > { %v5982_v32 = vld [vmem:[%s7483_s6 + $0xbb0] sm:$0xf0]  ;;  %v6895_v50 = vld [vmem:[%s7483_s6 + $0xaf4] sm:$0xf0] }
 0x2bd   : > { %3905 = vmatpush.bf16.xpose.msra.mxu0 %v5933_v9  ;;  %3918 = vmatpush.bf16.xpose.msra.mxu1 %v5937_v10  ;;  %v4273_v9 = vadd.f32 %v4267_v2, %v4234_v6  ;;  %v6017_v2 = vor.u32 %v6922_v51, %v6014_v53  ;;  %v5980_v6 = vld [vmem:[%s7483_s6 + $0xb90] sm:$0xf]  ;;  %v6891_v51 = vld [vmem:[%s7483_s6 + $0xadc] sm:$0xf] }
 0x2be   : > { %3931 = vmatpush.bf16.xpose.msra.mxu2 %v5941_v15  ;;  %v5836_v15 = vld [vmem:[%s7483_s6 + $0xa80] sm:$0xf] }
 0x2bf   : > { %3944 = vmatpush.bf16.xpose.msra.mxu3 %v5945_v17  ;;  %v4275_v10 = vmax.f32 %v4273_v9, 0.0  ;;  %v6880_v17 = vld [vmem:[%s7483_s6 + $0xa84] sm:$0xf]  ;;  %v5837_v12 = vor.u32 %v6884_v16, %v5836_v15  ;;  %v6915_v9 = vld [vmem:[%s7483_s6 + $0xb9c] sm:$0xf] }
 0x2c0   : > { %v5841_v11 = vor.u32 %v6880_v17, %v5838_v23 }
 0x2c1   : > { %4279 = vst [vmem:[#allocation1] ss:$4 sm:$0xff] %v4275_v10  ;;  %v5990_v10 = vld [vmem:[%s7483_s6 + $0xbb8] sm:$0xf0] }
 0x2c2   : > { %v5993_v23 = vor.u32 %v6915_v9, %v5990_v10 }
 0x2c5   : > { %3906 = vmatpush.bf16.xpose.msra.mxu0 %v5901_v27  ;;  %3919 = vmatpush.bf16.xpose.msra.mxu1 %v5905_v39  ;;  %v6877_v27 = vld [vmem:[%s7483_s6 + $0xa64] sm:$0xf0]  ;;  %v6868_v39 = vld [vmem:[%s7483_s6 + $0xa1c] sm:$0xf0] }
 0x2c6   : > { %3932 = vmatpush.bf16.xpose.msra.mxu2 %v5909_v41  ;;  %v5813_v30 = vor.u32 %v6877_v27, %v5812_v34  ;;  %v6864_v41 = vld [vmem:[%s7483_s6 + $0xa04] sm:$0xf]  ;;  %v5773_v52 = vor.u32 %v6868_v39, %v5772_v38  ;;  %v5916_v34 = vld [vmem:[%s7483_s6 + $0xb10] sm:$0xf]  ;;  %v5921_v39 = vor.u32 %v6898_v36, %v5918_v37 }
 0x2c7   : > { %3945 = vmatpush.bf16.xpose.msra.mxu3 %v5913_v42  ;;  %v5780_v42 = vld [vmem:[%s7483_s6 + $0xa08] sm:$0xf]  ;;  %v5777_v57 = vor.u32 %v6864_v41, %v5774_v44  ;;  %v6902_v27 = vld [vmem:[%s7483_s6 + $0xb2c] sm:$0xf0] }
 0x2c8   : > { %v5781_v60 = vor.u32 %v6869_v48, %v5780_v42  ;;  %v5917_v38 = vor.u32 %v6902_v27, %v5916_v34  ;;  %v5884_v42 = vld [vmem:[%s7483_s6 + $0xad0] sm:$0xf] }
 0x2c9   : > { %v6894_v48 = vld [vmem:[%s7483_s6 + $0xaec] sm:$0xf0] }
 0x2ca   : > { %v5885_v53 = vor.u32 %v6894_v48, %v5884_v42  ;;  %v5788_v37 = vld [vmem:[%s7483_s6 + $0xa10] sm:$0xf]  ;;  %v6988_v42 = vld [vmem:[%s7483_s6 + $0xddc] sm:$0xf0]  ;;  %v6984_v48 = vld [vmem:[%s7483_s6 + $0xdc4] sm:$0xf] }
 0x2cd   : > { %3907 = vmatpush.bf16.xpose.msra.mxu0 %v5869_v40  ;;  %3920 = vmatpush.bf16.xpose.msra.mxu1 %v5873_v56  ;;  %v6025_v40 = vor.u32 %v6923_v61, %v6022_v46  ;;  %v6918_v56 = vld [vmem:[%s7483_s6 + $0xbac] sm:$0xf0] }
 0x2ce   : > { %3933 = vmatpush.bf16.xpose.msra.mxu2 %v5877_v31  ;;  %v6914_v31 = vld [vmem:[%s7483_s6 + $0xb94] sm:$0xf]  ;;  %v5981_v15 = vor.u32 %v6918_v56, %v5980_v6  ;;  %v5860_v56 = vld [vmem:[%s7483_s6 + $0xa98] sm:$0xf] }
 0x2cf   : > { %3946 = vmatpush.bf16.xpose.msra.mxu3 %v5881_v49  ;;  %v5988_v49 = vld [vmem:[%s7483_s6 + $0xb98] sm:$0xf]  ;;  %v5985_v16 = vor.u32 %v6914_v31, %v5982_v32  ;;  %v5854_v6 = vld [vmem:[%s7483_s6 + $0xab0] sm:$0xf0]  ;;  %v6883_v32 = vld [vmem:[%s7483_s6 + $0xa9c] sm:$0xf] }
 0x2d0   : > { %v5989_v17 = vor.u32 %v6919_v8, %v5988_v49  ;;  %v6887_v31 = vld [vmem:[%s7483_s6 + $0xab4] sm:$0xf0]  ;;  %v5862_v49 = vld [vmem:[%s7483_s6 + $0xab8] sm:$0xf0] }
 0x2d1   : > { %v5865_v18 = vor.u32 %v6883_v32, %v5862_v49 }
 0x2d5   : > { %3908 = vmatpush.bf16.xpose.msra.mxu0 %v5837_v12  ;;  %3921 = vmatpush.bf16.xpose.msra.mxu1 %v5841_v11  ;;  %v5956_v12 = vld [vmem:[%s7483_s6 + $0xb58] sm:$0xf] }
 0x2d6   : > { %3934 = vmatpush.bf16.xpose.msra.mxu2 %v5845_v14  ;;  %v6911_v11 = vld [vmem:[%s7483_s6 + $0xb74] sm:$0xf0]  ;;  %v6907_v14 = vld [vmem:[%s7483_s6 + $0xb5c] sm:$0xf] }
 0x2d7   : > { %3947 = vmatpush.bf16.xpose.msra.mxu3 %v5849_v13  ;;  %v5958_v13 = vld [vmem:[%s7483_s6 + $0xb78] sm:$0xf0]  ;;  %v5957_v7 = vor.u32 %v6911_v11, %v5956_v12  ;;  %v6874_v12 = vld [vmem:[%s7483_s6 + $0xa54] sm:$0xf] }
 0x2d8   : > { %v5961_v25 = vor.u32 %v6907_v14, %v5958_v13  ;;  %v5822_v11 = vld [vmem:[%s7483_s6 + $0xa70] sm:$0xf0]  ;;  %v5828_v14 = vld [vmem:[%s7483_s6 + $0xa58] sm:$0xf] }
 0x2d9   : > { %v6879_v13 = vld [vmem:[%s7483_s6 + $0xa74] sm:$0xf0]  ;;  %v5825_v34 = vor.u32 %v6874_v12, %v5822_v11 }
 0x2da   : > { %v5829_v27 = vor.u32 %v6879_v13, %v5828_v14 }
 0x2dd   : > { %3909 = vmatpush.bf16.xpose.msra.mxu0 %v5805_v29  ;;  %3922 = vmatpush.bf16.xpose.msra.mxu1 %v5809_v33  ;;  %v5924_v29 = vld [vmem:[%s7483_s6 + $0xb18] sm:$0xf] }
 0x2de   : > { %3935 = vmatpush.bf16.xpose.msra.mxu2 %v5813_v30  ;;  %v6903_v33 = vld [vmem:[%s7483_s6 + $0xb34] sm:$0xf0]  ;;  %v6899_v30 = vld [vmem:[%s7483_s6 + $0xb1c] sm:$0xf] }
 0x2df   : > { %3948 = vmatpush.bf16.xpose.msra.mxu3 %v5817_v35  ;;  %v5926_v35 = vld [vmem:[%s7483_s6 + $0xb38] sm:$0xf0]  ;;  %v5925_v41 = vor.u32 %v6903_v33, %v5924_v29  ;;  %v6870_v29 = vld [vmem:[%s7483_s6 + $0xa2c] sm:$0xf0]  ;;  %v6866_v33 = vld [vmem:[%s7483_s6 + $0xa14] sm:$0xf] }
 0x2e0   : > { %v5929_v44 = vor.u32 %v6899_v30, %v5926_v35  ;;  %v5790_v30 = vld [vmem:[%s7483_s6 + $0xa30] sm:$0xf0]  ;;  %v5796_v35 = vld [vmem:[%s7483_s6 + $0xa18] sm:$0xf] }
 0x2e5   : > { %3910 = vmatpush.bf16.xpose.msra.mxu0 %v5773_v52  ;;  %3923 = vmatpush.bf16.xpose.msra.mxu1 %v5777_v57  ;;  %v5894_v52 = vld [vmem:[%s7483_s6 + $0xaf8] sm:$0xf0]  ;;  %v5889_v57 = vor.u32 %v6890_v43, %v5886_v45  ;;  %v5789_v43 = vor.u32 %v6870_v29, %v5788_v37  ;;  %v6254_v45 = vld [vmem:[%s7483_s6 + $0xde0] sm:$0xf0]  ;;  %v6166_v37 = vld [vmem:[%s7483_s6 + $0xd28] sm:$0xf0] }
 0x2e6   : > { %3936 = vmatpush.bf16.xpose.msra.mxu2 %v5781_v60  ;;  %v5893_v60 = vor.u32 %v6895_v50, %v5892_v26  ;;  %v5897_v46 = vor.u32 %v6891_v51, %v5894_v52  ;;  %v6260_v26 = vld [vmem:[%s7483_s6 + $0xdc8] sm:$0xf]  ;;  %v5793_v51 = vor.u32 %v6866_v33, %v5790_v30 }
 0x2e7   : > { %3949 = vmatpush.bf16.xpose.msra.mxu3 %v5785_v63  ;;  %v6989_v50 = vld [vmem:[%s7483_s6 + $0xde4] sm:$0xf0] }
 0x2e9   : > { %v3808_v54 = vpop.f32.mrf.mxu0  ;;  %v3821_v55 = vpop.f32.mrf.mxu1 }
 0x2ea   : > { %v3822_v61 = vadd.f32 %v3821_v55, %v3808_v54  ;;  %v6262_v54 = vld [vmem:[%s7483_s6 + $0xde8] sm:$0xf0] }
 0x2ec   : > { %3911 = vmatmul.bf16.vlgmr.msra.gmra.mxu0 %v8162_v3  ;;  %3924 = vmatmul.bf16.vlgmr.msra.gmra.mxu1 %v8168_v5 }
 0x2ed   : > { %3955 = vmatpush.bf16.xpose.msrb.mxu0 %v6013_v1  ;;  %3968 = vmatpush.bf16.xpose.msrb.mxu1 %v6017_v2  ;;  %v5852_v1 = vld [vmem:[%s7483_s6 + $0xa90] sm:$0xf] }
 0x2ee   : > { %3981 = vmatpush.bf16.xpose.msrb.mxu2 %v6021_v21  ;;  %3950 = vmatmul.bf16.vlgmr.msra.gmra.mxu3 %v8171_v22  ;;  %v6886_v2 = vld [vmem:[%s7483_s6 + $0xaac] sm:$0xf0]  ;;  %v6882_v21 = vld [vmem:[%s7483_s6 + $0xa94] sm:$0xf] }
 0x2ef   : > { %3994 = vmatpush.bf16.xpose.msrb.mxu3 %v6025_v40  ;;  %3937 = vmatmul.bf16.vlgmr.msra.gmra.mxu2 %v8165_v4  ;;  %v5853_v8 = vor.u32 %v6886_v2, %v5852_v1  ;;  %v6980_v1 = vld [vmem:[%s7483_s6 + $0xd9c] sm:$0xf0]  ;;  %v6976_v2 = vld [vmem:[%s7483_s6 + $0xd84] sm:$0xf] }
 0x2f1   : > { %v3847_v9 = vpop.f32.mrf.mxu3  ;;  %v3810_v10 = vpop.f32.mrf.mxu0 }
 0x2f2   : > { %v3834_v63 = vpop.f32.mrf.mxu2  ;;  %v6188_v10 = vld [vmem:[%s7483_s6 + $0xd40] sm:$0xf] }
 0x2f3   : > { %v3835_v40 = vadd.f32 %v3834_v63, %v3822_v61  ;;  %v6261_v61 = vor.u32 %v6989_v50, %v6260_v26  ;;  %v6220_v63 = vld [vmem:[%s7483_s6 + $0xd80] sm:$0xf]  ;;  %v6126_v26 = vld [vmem:[%s7483_s6 + $0xce0] sm:$0xf0]  ;;  %v6132_v50 = vld [vmem:[%s7483_s6 + $0xcc8] sm:$0xf] }
 0x2f4   : > { %v6221_v32 = vor.u32 %v6980_v1, %v6220_v63  ;;  %v6092_v63 = vld [vmem:[%s7483_s6 + $0xc80] sm:$0xf] }
 0x2f5   : > { %3956 = vmatpush.bf16.xpose.msrb.mxu0 %v5981_v15  ;;  %3969 = vmatpush.bf16.xpose.msrb.mxu1 %v5985_v16  ;;  %v5857_v15 = vor.u32 %v6882_v21, %v5854_v6  ;;  %v5861_v16 = vor.u32 %v6887_v31, %v5860_v56  ;;  %v6222_v21 = vld [vmem:[%s7483_s6 + $0xda0] sm:$0xf0]  ;;  %v6981_v6 = vld [vmem:[%s7483_s6 + $0xda4] sm:$0xf0]  ;;  %v6977_v56 = vld [vmem:[%s7483_s6 + $0xd8c] sm:$0xf] }
 0x2f6   : > { %3982 = vmatpush.bf16.xpose.msrb.mxu2 %v5989_v17  ;;  %v8375_v17 = vadd.f32 %v3847_v9, %v3835_v40  ;;  %v6228_v40 = vld [vmem:[%s7483_s6 + $0xd88] sm:$0xf]  ;;  %v6230_v31 = vld [vmem:[%s7483_s6 + $0xda8] sm:$0xf0]  ;;  %v6225_v49 = vor.u32 %v6976_v2, %v6222_v21  ;;  %v6948_v1 = vld [vmem:[%s7483_s6 + $0xc9c] sm:$0xf0] }
 0x2f7   : > { %3995 = vmatpush.bf16.xpose.msrb.mxu3 %v5993_v23  ;;  %v3823_v23 = vpop.f32.mrf.mxu1  ;;  %v6233_v9 = vor.u32 %v6977_v56, %v6230_v31  ;;  %v6944_v2 = vld [vmem:[%s7483_s6 + $0xc84] sm:$0xf]  ;;  %v6945_v56 = vld [vmem:[%s7483_s6 + $0xc8c] sm:$0xf] }
 0x2f8   : > { %v6196_v23 = vld [vmem:[%s7483_s6 + $0xd48] sm:$0xf]  ;;  %v6094_v21 = vld [vmem:[%s7483_s6 + $0xca0] sm:$0xf0]  ;;  %v6102_v31 = vld [vmem:[%s7483_s6 + $0xca8] sm:$0xf0] }
 0x2fa   : > { %v3836_v19 = vpop.f32.mrf.mxu2 }
 0x2fb   : > { %v6969_v19 = vld [vmem:[%s7483_s6 + $0xd4c] sm:$0xf] }
 0x2fd   : > { %3957 = vmatpush.bf16.xpose.msrb.mxu0 %v5949_v28  ;;  %3970 = vmatpush.bf16.xpose.msrb.mxu1 %v5953_v24  ;;  %v6875_v28 = vld [vmem:[%s7483_s6 + $0xa5c] sm:$0xf] }
 0x2fe   : > { %3983 = vmatpush.bf16.xpose.msrb.mxu2 %v5957_v7  ;;  %v5830_v24 = vld [vmem:[%s7483_s6 + $0xa78] sm:$0xf0]  ;;  %v5821_v7 = vor.u32 %v6878_v59, %v5820_v20 }
 0x2ff   : > { %3996 = vmatpush.bf16.xpose.msrb.mxu3 %v5961_v25  ;;  %v3849_v25 = vpop.f32.mrf.mxu3  ;;  %v5833_v36 = vor.u32 %v6875_v28, %v5830_v24  ;;  %v6156_v28 = vld [vmem:[%s7483_s6 + $0xd00] sm:$0xf] }
 0x300   : > { %v6964_v24 = vld [vmem:[%s7483_s6 + $0xd1c] sm:$0xf0]  ;;  %v6158_v25 = vld [vmem:[%s7483_s6 + $0xd20] sm:$0xf0] }
 0x301   : > { %v6157_v29 = vor.u32 %v6964_v24, %v6156_v28  ;;  %v6036_v28 = vld [vmem:[%s7483_s6 + $0xc08] sm:$0xf] }
 0x302   : > { %v6933_v24 = vld [vmem:[%s7483_s6 + $0xc24] sm:$0xf0] }
 0x305   : > { %3958 = vmatpush.bf16.xpose.msrb.mxu0 %v5917_v38  ;;  %3971 = vmatpush.bf16.xpose.msrb.mxu1 %v5921_v39  ;;  %v6871_v38 = vld [vmem:[%s7483_s6 + $0xa34] sm:$0xf0]  ;;  %v6867_v39 = vld [vmem:[%s7483_s6 + $0xa1c] sm:$0xf] }
 0x306   : > { %3984 = vmatpush.bf16.xpose.msrb.mxu2 %v5925_v41  ;;  %v5798_v41 = vld [vmem:[%s7483_s6 + $0xa38] sm:$0xf0]  ;;  %v5797_v52 = vor.u32 %v6871_v38, %v5796_v35 }
 0x307   : > { %3997 = vmatpush.bf16.xpose.msrb.mxu3 %v5929_v44  ;;  %v6252_v44 = vld [vmem:[%s7483_s6 + $0xdc0] sm:$0xf]  ;;  %v5801_v55 = vor.u32 %v6867_v39, %v5798_v41 }
 0x30d   : > { %3959 = vmatpush.bf16.xpose.msrb.mxu0 %v5885_v53  ;;  %3972 = vmatpush.bf16.xpose.msrb.mxu1 %v5889_v57  ;;  %v6985_v53 = vld [vmem:[%s7483_s6 + $0xdcc] sm:$0xf]  ;;  %v6253_v57 = vor.u32 %v6988_v42, %v6252_v44 }
 0x30e   : > { %3985 = vmatpush.bf16.xpose.msrb.mxu2 %v5893_v60  ;;  %v6257_v60 = vor.u32 %v6984_v48, %v6254_v45  ;;  %v6124_v48 = vld [vmem:[%s7483_s6 + $0xcc0] sm:$0xf]  ;;  %v6952_v45 = vld [vmem:[%s7483_s6 + $0xcc4] sm:$0xf] }
 0x30f   : > { %3998 = vmatpush.bf16.xpose.msrb.mxu3 %v5897_v46  ;;  %v6265_v46 = vor.u32 %v6985_v53, %v6262_v54  ;;  %v6134_v53 = vld [vmem:[%s7483_s6 + $0xce8] sm:$0xf0] }
 0x315   : > { %3960 = vmatpush.bf16.xpose.msrb.mxu0 %v5853_v8  ;;  %3973 = vmatpush.bf16.xpose.msrb.mxu1 %v5857_v15  ;;  %v6229_v8 = vor.u32 %v6981_v6, %v6228_v40  ;;  %v6972_v15 = vld [vmem:[%s7483_s6 + $0xd5c] sm:$0xf0]  ;;  %v6100_v40 = vld [vmem:[%s7483_s6 + $0xc88] sm:$0xf] }
 0x316   : > { %3986 = vmatpush.bf16.xpose.msrb.mxu2 %v5861_v16  ;;  %v6968_v16 = vld [vmem:[%s7483_s6 + $0xd44] sm:$0xf]  ;;  %v6189_v20 = vor.u32 %v6972_v15, %v6188_v10  ;;  %v6949_v6 = vld [vmem:[%s7483_s6 + $0xca4] sm:$0xf0]  ;;  %v6060_v10 = vld [vmem:[%s7483_s6 + $0xc40] sm:$0xf] }
 0x317   : > { %3999 = vmatpush.bf16.xpose.msrb.mxu3 %v5865_v18  ;;  %v6973_v18 = vld [vmem:[%s7483_s6 + $0xd64] sm:$0xf0]  ;;  %v6940_v15 = vld [vmem:[%s7483_s6 + $0xc5c] sm:$0xf0] }
 0x31d   : > { %3961 = vmatpush.bf16.xpose.msrb.mxu0 %v5821_v7  ;;  %3974 = vmatpush.bf16.xpose.msrb.mxu1 %v5825_v34  ;;  %v6960_v7 = vld [vmem:[%s7483_s6 + $0xd04] sm:$0xf]  ;;  %v6164_v34 = vld [vmem:[%s7483_s6 + $0xd08] sm:$0xf] }
 0x31e   : > { %3987 = vmatpush.bf16.xpose.msrb.mxu2 %v5829_v27  ;;  %v6965_v27 = vld [vmem:[%s7483_s6 + $0xd24] sm:$0xf0] }
 0x31f   : > { %4000 = vmatpush.bf16.xpose.msrb.mxu3 %v5833_v36  ;;  %v6961_v36 = vld [vmem:[%s7483_s6 + $0xd0c] sm:$0xf]  ;;  %v6165_v30 = vor.u32 %v6965_v27, %v6164_v34  ;;  %v6268_v34 = vld [vmem:[%s7483_s6 + $0xdd0] sm:$0xf] }
 0x320   : > { %v6169_v38 = vor.u32 %v6961_v36, %v6166_v37  ;;  %v6990_v27 = vld [vmem:[%s7483_s6 + $0xdec] sm:$0xf0]  ;;  %v6986_v36 = vld [vmem:[%s7483_s6 + $0xdd4] sm:$0xf] }
 0x325   : > { %3962 = vmatpush.bf16.xpose.msrb.mxu0 %v5789_v43  ;;  %3975 = vmatpush.bf16.xpose.msrb.mxu1 %v5793_v51  ;;  %v6956_v43 = vld [vmem:[%s7483_s6 + $0xcdc] sm:$0xf0]  ;;  %v6957_v51 = vld [vmem:[%s7483_s6 + $0xce4] sm:$0xf0] }
 0x326   : > { %3988 = vmatpush.bf16.xpose.msrb.mxu2 %v5797_v52  ;;  %v6953_v52 = vld [vmem:[%s7483_s6 + $0xccc] sm:$0xf]  ;;  %v6125_v54 = vor.u32 %v6956_v43, %v6124_v48 }
 0x327   : > { %4001 = vmatpush.bf16.xpose.msrb.mxu3 %v5801_v55  ;;  %v6129_v55 = vor.u32 %v6952_v45, %v6126_v26  ;;  %v6236_v26 = vld [vmem:[%s7483_s6 + $0xd90] sm:$0xf] }
 0x329   : > { %v3860_v12 = vpop.f32.mrf.mxu0  ;;  %v3873_v14 = vpop.f32.mrf.mxu1 }
 0x32a   : > { %v3861_v11 = vadd.f32 %v3860_v12, %v8375_v17  ;;  %v6161_v17 = vor.u32 %v6960_v7, %v6158_v25  ;;  %v6028_v12 = vld [vmem:[%s7483_s6 + $0xc00] sm:$0xf]  ;;  %v6929_v7 = vld [vmem:[%s7483_s6 + $0xc0c] sm:$0xf] }
 0x32b   : > { %v6038_v25 = vld [vmem:[%s7483_s6 + $0xc28] sm:$0xf0] }
 0x32c   : > { %3963 = vmatmul.bf16.vlgmr.msrb.gmra.mxu0 %v8248_v58  ;;  %3976 = vmatmul.bf16.vlgmr.msrb.gmra.mxu1 %v8255_v47  ;;  %v6190_v58 = vld [vmem:[%s7483_s6 + $0xd60] sm:$0xf0]  ;;  %v3874_v13 = vadd.f32 %v3873_v14, %v3861_v11  ;;  %v6932_v11 = vld [vmem:[%s7483_s6 + $0xc1c] sm:$0xf0] }
 0x32d   : > { %4007 = vmatpush.bf16.xpose.msra.mxu0 %v6253_v57  ;;  %4020 = vmatpush.bf16.xpose.msra.mxu1 %v6257_v60  ;;  %v6193_v47 = vor.u32 %v6968_v16, %v6190_v58  ;;  %v6133_v57 = vor.u32 %v6957_v51, %v6132_v50  ;;  %v6936_v16 = vld [vmem:[%s7483_s6 + $0xc44] sm:$0xf]  ;;  %v6029_v37 = vor.u32 %v6932_v11, %v6028_v12  ;;  %v6982_v50 = vld [vmem:[%s7483_s6 + $0xdac] sm:$0xf0]  ;;  %v6978_v51 = vld [vmem:[%s7483_s6 + $0xd94] sm:$0xf] }
 0x32e   : > { %4033 = vmatpush.bf16.xpose.msra.mxu2 %v6261_v61  ;;  %4002 = vmatmul.bf16.vlgmr.msrb.gmra.mxu3 %v8259_v0  ;;  %v6197_v0 = vor.u32 %v6973_v18, %v6196_v23  ;;  %v6137_v61 = vor.u32 %v6953_v52, %v6134_v53  ;;  %v6062_v58 = vld [vmem:[%s7483_s6 + $0xc60] sm:$0xf0]  ;;  %v6068_v23 = vld [vmem:[%s7483_s6 + $0xc48] sm:$0xf]  ;;  %v6238_v52 = vld [vmem:[%s7483_s6 + $0xdb0] sm:$0xf0] }
 0x32f   : > { %4046 = vmatpush.bf16.xpose.msra.mxu3 %v6265_v46  ;;  %3989 = vmatmul.bf16.vlgmr.msrb.gmra.mxu2 %v8252_v62  ;;  %v6198_v62 = vld [vmem:[%s7483_s6 + $0xd68] sm:$0xf0]  ;;  %v6941_v18 = vld [vmem:[%s7483_s6 + $0xc64] sm:$0xf0]  ;;  %v6928_v14 = vld [vmem:[%s7483_s6 + $0xc04] sm:$0xf] }
 0x330   : > { %v6201_v59 = vor.u32 %v6969_v19, %v6198_v62  ;;  %v6937_v19 = vld [vmem:[%s7483_s6 + $0xc4c] sm:$0xf]  ;;  %v6244_v53 = vld [vmem:[%s7483_s6 + $0xd98] sm:$0xf]  ;;  %v6140_v11 = vld [vmem:[%s7483_s6 + $0xcd0] sm:$0xf] }
 0x331   : > { %v3899_v39 = vpop.f32.mrf.mxu3  ;;  %v3862_v41 = vpop.f32.mrf.mxu0  ;;  %v6070_v62 = vld [vmem:[%s7483_s6 + $0xc68] sm:$0xf0] }
 0x332   : > { %v3886_v33 = vpop.f32.mrf.mxu2  ;;  %v3875_v44 = vpop.f32.mrf.mxu1  ;;  %v6041_v41 = vor.u32 %v6929_v7, %v6038_v25  ;;  %v6959_v7 = vld [vmem:[%s7483_s6 + $0xcf4] sm:$0xf0]  ;;  %v6955_v25 = vld [vmem:[%s7483_s6 + $0xcdc] sm:$0xf] }
 0x333   : > { %v3887_v35 = vadd.f32 %v3886_v33, %v3874_v13  ;;  %v6030_v13 = vld [vmem:[%s7483_s6 + $0xc20] sm:$0xf0]  ;;  %v6276_v33 = vld [vmem:[%s7483_s6 + $0xdd8] sm:$0xf]  ;;  %v6269_v44 = vor.u32 %v6990_v27, %v6268_v34  ;;  %v6150_v34 = vld [vmem:[%s7483_s6 + $0xcf8] sm:$0xf0] }
 0x335   : > { %4008 = vmatpush.bf16.xpose.msra.mxu0 %v6221_v32  ;;  %4021 = vmatpush.bf16.xpose.msra.mxu1 %v6225_v49  ;;  %v8430_v42 = vadd.f32 %v3899_v39, %v3887_v35  ;;  %v6093_v32 = vor.u32 %v6948_v1, %v6092_v63  ;;  %v6097_v49 = vor.u32 %v6944_v2, %v6094_v21  ;;  %v6278_v39 = vld [vmem:[%s7483_s6 + $0xdf8] sm:$0xf0]  ;;  %v6204_v1 = vld [vmem:[%s7483_s6 + $0xd50] sm:$0xf]  ;;  %v6970_v21 = vld [vmem:[%s7483_s6 + $0xd54] sm:$0xf] }
 0x336   : > { %4034 = vmatpush.bf16.xpose.msra.mxu2 %v6229_v8  ;;  %v6101_v8 = vor.u32 %v6949_v6, %v6100_v40  ;;  %v6037_v35 = vor.u32 %v6933_v24, %v6036_v28  ;;  %v6974_v2 = vld [vmem:[%s7483_s6 + $0xd6c] sm:$0xf0]  ;;  %v6206_v40 = vld [vmem:[%s7483_s6 + $0xd70] sm:$0xf0]  ;;  %v6212_v6 = vld [vmem:[%s7483_s6 + $0xd58] sm:$0xf] }
 0x337   : > { %4047 = vmatpush.bf16.xpose.msra.mxu3 %v6233_v9  ;;  %v6105_v9 = vor.u32 %v6945_v56, %v6102_v31  ;;  %v6975_v56 = vld [vmem:[%s7483_s6 + $0xd74] sm:$0xf0]  ;;  %v6971_v31 = vld [vmem:[%s7483_s6 + $0xd5c] sm:$0xf]  ;;  %v6142_v28 = vld [vmem:[%s7483_s6 + $0xcf0] sm:$0xf0] }
 0x338   : > { %v6148_v24 = vld [vmem:[%s7483_s6 + $0xcd8] sm:$0xf] }
 0x339   : > { %v3901_v46 = vpop.f32.mrf.mxu3 }
 0x33a   : > { %v3888_v60 = vpop.f32.mrf.mxu2 }
 0x33b   : > { %v6237_v60 = vor.u32 %v6982_v50, %v6236_v26  ;;  %v6947_v26 = vld [vmem:[%s7483_s6 + $0xc9c] sm:$0xf] }
 0x33c   : > { %v6118_v50 = vld [vmem:[%s7483_s6 + $0xcb8] sm:$0xf0] }
 0x33d   : > { %4009 = vmatpush.bf16.xpose.msra.mxu0 %v6189_v20  ;;  %4022 = vmatpush.bf16.xpose.msra.mxu1 %v6193_v47  ;;  %v6061_v20 = vor.u32 %v6940_v15, %v6060_v10  ;;  %v6065_v47 = vor.u32 %v6936_v16, %v6062_v58  ;;  %v6172_v15 = vld [vmem:[%s7483_s6 + $0xd10] sm:$0xf]  ;;  %v6962_v58 = vld [vmem:[%s7483_s6 + $0xd14] sm:$0xf] }
 0x33e   : > { %4035 = vmatpush.bf16.xpose.msra.mxu2 %v6197_v0  ;;  %v6069_v0 = vor.u32 %v6941_v18, %v6068_v23  ;;  %v6966_v16 = vld [vmem:[%s7483_s6 + $0xd2c] sm:$0xf0]  ;;  %v6174_v23 = vld [vmem:[%s7483_s6 + $0xd30] sm:$0xf0]  ;;  %v6180_v18 = vld [vmem:[%s7483_s6 + $0xd18] sm:$0xf] }
 0x33f   : > { %4048 = vmatpush.bf16.xpose.msra.mxu3 %v6201_v59  ;;  %v6073_v59 = vor.u32 %v6937_v19, %v6070_v62  ;;  %v6967_v19 = vld [vmem:[%s7483_s6 + $0xd34] sm:$0xf0]  ;;  %v6963_v62 = vld [vmem:[%s7483_s6 + $0xd1c] sm:$0xf] }
 0x345   : > { %4010 = vmatpush.bf16.xpose.msra.mxu0 %v6157_v29  ;;  %4023 = vmatpush.bf16.xpose.msra.mxu1 %v6161_v17  ;;  %v6270_v29 = vld [vmem:[%s7483_s6 + $0xdf0] sm:$0xf0]  ;;  %v6991_v17 = vld [vmem:[%s7483_s6 + $0xdf4] sm:$0xf0] }
 0x346   : > { %4036 = vmatpush.bf16.xpose.msra.mxu2 %v6165_v30  ;;  %v6033_v30 = vor.u32 %v6928_v14, %v6030_v13  ;;  %v6273_v48 = vor.u32 %v6986_v36, %v6270_v29  ;;  %v6277_v43 = vor.u32 %v6991_v17, %v6276_v33  ;;  %v6958_v14 = vld [vmem:[%s7483_s6 + $0xcec] sm:$0xf0]  ;;  %v6954_v13 = vld [vmem:[%s7483_s6 + $0xcd4] sm:$0xf]  ;;  %v6149_v33 = vor.u32 %v6959_v7, %v6148_v24  ;;  %v7049_v7 = vld [vmem:[%s7483_s6 + $0xfcc] sm:$0xf] }
 0x347   : > { %4049 = vmatpush.bf16.xpose.msra.mxu3 %v6169_v38  ;;  %v6987_v38 = vld [vmem:[%s7483_s6 + $0xddc] sm:$0xf]  ;;  %v6141_v27 = vor.u32 %v6958_v14, %v6140_v11  ;;  %v6145_v29 = vor.u32 %v6954_v13, %v6142_v28  ;;  %v6510_v11 = vld [vmem:[%s7483_s6 + $0xfe0] sm:$0xf0]  ;;  %v6516_v14 = vld [vmem:[%s7483_s6 + $0xfc8] sm:$0xf] }
 0x348   : > { %v6281_v45 = vor.u32 %v6987_v38, %v6278_v39  ;;  %v6108_v38 = vld [vmem:[%s7483_s6 + $0xc90] sm:$0xf]  ;;  %v7053_v13 = vld [vmem:[%s7483_s6 + $0xfe4] sm:$0xf0] }
 0x349   : > { %v6950_v39 = vld [vmem:[%s7483_s6 + $0xcac] sm:$0xf0] }
 0x34d   : > { %4011 = vmatpush.bf16.xpose.msra.mxu0 %v6125_v54  ;;  %4024 = vmatpush.bf16.xpose.msra.mxu1 %v6129_v55  ;;  %v6983_v54 = vld [vmem:[%s7483_s6 + $0xdb4] sm:$0xf0]  ;;  %v6979_v55 = vld [vmem:[%s7483_s6 + $0xd9c] sm:$0xf] }
 0x34e   : > { %4037 = vmatpush.bf16.xpose.msra.mxu2 %v6133_v57  ;;  %v6246_v57 = vld [vmem:[%s7483_s6 + $0xdb8] sm:$0xf0]  ;;  %v6245_v46 = vor.u32 %v6983_v54, %v6244_v53 }
 0x34f   : > { %4050 = vmatpush.bf16.xpose.msra.mxu3 %v6137_v61  ;;  %v6241_v61 = vor.u32 %v6978_v51, %v6238_v52  ;;  %v6249_v63 = vor.u32 %v6979_v55, %v6246_v57  ;;  %v6109_v51 = vor.u32 %v6950_v39, %v6108_v38  ;;  %v6484_v38 = vld [vmem:[%s7483_s6 + $0xf88] sm:$0xf] }
 0x350   : > { %v7045_v39 = vld [vmem:[%s7483_s6 + $0xfa4] sm:$0xf0] }
 0x355   : > { %4012 = vmatpush.bf16.xpose.msra.mxu0 %v6093_v32  ;;  %4025 = vmatpush.bf16.xpose.msra.mxu1 %v6097_v49  ;;  %v6214_v32 = vld [vmem:[%s7483_s6 + $0xd78] sm:$0xf0]  ;;  %v6205_v49 = vor.u32 %v6974_v2, %v6204_v1  ;;  %v6942_v1 = vld [vmem:[%s7483_s6 + $0xc6c] sm:$0xf0]  ;;  %v6938_v2 = vld [vmem:[%s7483_s6 + $0xc54] sm:$0xf] }
 0x356   : > { %4038 = vmatpush.bf16.xpose.msra.mxu2 %v6101_v8  ;;  %v6209_v8 = vor.u32 %v6970_v21, %v6206_v40  ;;  %v6217_v10 = vor.u32 %v6971_v31, %v6214_v32  ;;  %v6078_v21 = vld [vmem:[%s7483_s6 + $0xc70] sm:$0xf0]  ;;  %v6084_v40 = vld [vmem:[%s7483_s6 + $0xc58] sm:$0xf]  ;;  %v6086_v31 = vld [vmem:[%s7483_s6 + $0xc78] sm:$0xf0] }
 0x357   : > { %4051 = vmatpush.bf16.xpose.msra.mxu3 %v6105_v9  ;;  %v6213_v9 = vor.u32 %v6975_v56, %v6212_v6  ;;  %v6943_v6 = vld [vmem:[%s7483_s6 + $0xc74] sm:$0xf0]  ;;  %v6939_v56 = vld [vmem:[%s7483_s6 + $0xc5c] sm:$0xf] }
 0x35d   : > { %4013 = vmatpush.bf16.xpose.msra.mxu0 %v6061_v20  ;;  %4026 = vmatpush.bf16.xpose.msra.mxu1 %v6065_v47  ;;  %v6182_v20 = vld [vmem:[%s7483_s6 + $0xd38] sm:$0xf0]  ;;  %v6173_v47 = vor.u32 %v6966_v16, %v6172_v15  ;;  %v6044_v15 = vld [vmem:[%s7483_s6 + $0xc10] sm:$0xf] }
 0x35e   : > { %4039 = vmatpush.bf16.xpose.msra.mxu2 %v6069_v0  ;;  %v6177_v0 = vor.u32 %v6962_v58, %v6174_v23  ;;  %v6185_v12 = vor.u32 %v6963_v62, %v6182_v20  ;;  %v6934_v16 = vld [vmem:[%s7483_s6 + $0xc2c] sm:$0xf0]  ;;  %v6930_v58 = vld [vmem:[%s7483_s6 + $0xc14] sm:$0xf]  ;;  %v6931_v62 = vld [vmem:[%s7483_s6 + $0xc1c] sm:$0xf] }
 0x35f   : > { %4052 = vmatpush.bf16.xpose.msra.mxu3 %v6073_v59  ;;  %v6181_v59 = vor.u32 %v6967_v19, %v6180_v18  ;;  %v6046_v23 = vld [vmem:[%s7483_s6 + $0xc30] sm:$0xf0]  ;;  %v6052_v18 = vld [vmem:[%s7483_s6 + $0xc18] sm:$0xf]  ;;  %v6054_v20 = vld [vmem:[%s7483_s6 + $0xc38] sm:$0xf0] }
 0x360   : > { %v6935_v19 = vld [vmem:[%s7483_s6 + $0xc34] sm:$0xf0]  ;;  %v6049_v28 = vor.u32 %v6930_v58, %v6046_v23  ;;  %v6420_v58 = vld [vmem:[%s7483_s6 + $0xf08] sm:$0xf] }
 0x361   : > { %v6053_v24 = vor.u32 %v6935_v19, %v6052_v18  ;;  %v7029_v23 = vld [vmem:[%s7483_s6 + $0xf24] sm:$0xf0]  ;;  %v7025_v18 = vld [vmem:[%s7483_s6 + $0xf0c] sm:$0xf] }
 0x362   : > { %v6422_v19 = vld [vmem:[%s7483_s6 + $0xf28] sm:$0xf0] }
 0x365   : > { %4014 = vmatpush.bf16.xpose.msra.mxu0 %v6029_v37  ;;  %4027 = vmatpush.bf16.xpose.msra.mxu1 %v6033_v30  ;;  %v6153_v30 = vor.u32 %v6955_v25, %v6150_v34  ;;  %v6518_v25 = vld [vmem:[%s7483_s6 + $0xfe8] sm:$0xf0]  ;;  %v6057_v34 = vor.u32 %v6931_v62, %v6054_v20 }
 0x366   : > { %4040 = vmatpush.bf16.xpose.msra.mxu2 %v6037_v35 }
 0x367   : > { %4053 = vmatpush.bf16.xpose.msra.mxu3 %v6041_v41  ;;  %v6946_v41 = vld [vmem:[%s7483_s6 + $0xc94] sm:$0xf] }
 0x369   : > { %v3912_v36 = vpop.f32.mrf.mxu0  ;;  %v3925_v37 = vpop.f32.mrf.mxu1 }
 0x36a   : > { %v3926_v17 = vadd.f32 %v3925_v37, %v3912_v36  ;;  %v6517_v37 = vor.u32 %v7053_v13, %v6516_v14 }
 0x36c   : > { %4015 = vmatmul.bf16.vlgmr.msra.gmra.mxu0 %v8162_v3  ;;  %4028 = vmatmul.bf16.vlgmr.msra.gmra.mxu1 %v8168_v5 }
 0x36d   : > { %4059 = vmatpush.bf16.xpose.msrb.mxu0 %v6269_v44  ;;  %4072 = vmatpush.bf16.xpose.msrb.mxu1 %v6273_v48  ;;  %v6110_v48 = vld [vmem:[%s7483_s6 + $0xcb0] sm:$0xf0] }
 0x36e   : > { %4085 = vmatpush.bf16.xpose.msrb.mxu2 %v6277_v43  ;;  %4054 = vmatmul.bf16.vlgmr.msra.gmra.mxu3 %v8171_v22  ;;  %v6116_v43 = vld [vmem:[%s7483_s6 + $0xc98] sm:$0xf]  ;;  %v6113_v54 = vor.u32 %v6946_v41, %v6110_v48  ;;  %v7041_v41 = vld [vmem:[%s7483_s6 + $0xf8c] sm:$0xf] }
 0x36f   : > { %4098 = vmatpush.bf16.xpose.msrb.mxu3 %v6281_v45  ;;  %4041 = vmatmul.bf16.vlgmr.msra.gmra.mxu2 %v8165_v4  ;;  %v6951_v45 = vld [vmem:[%s7483_s6 + $0xcb4] sm:$0xf0] }
 0x370   : > { %v6117_v55 = vor.u32 %v6951_v45, %v6116_v43  ;;  %v8550_v43 = vld [vmem:[#allocation1 + $0x24] sm:$0xff] }
 0x371   : > { %v3951_v52 = vpop.f32.mrf.mxu3  ;;  %v3914_v53 = vpop.f32.mrf.mxu0 }
 0x372   : > { %v3938_v35 = vpop.f32.mrf.mxu2  ;;  %v8559_v53 = vld [vmem:[#allocation1 + $0x3f] sm:$0xff] }
 0x373   : > { %v3939_v44 = vadd.f32 %v3938_v35, %v3926_v17  ;;  %v7044_v17 = vld [vmem:[%s7483_s6 + $0xf9c] sm:$0xf0]  ;;  %v6478_v35 = vld [vmem:[%s7483_s6 + $0xfa0] sm:$0xf0] }
 0x375   : > { %4060 = vmatpush.bf16.xpose.msrb.mxu0 %v6237_v60  ;;  %4073 = vmatpush.bf16.xpose.msrb.mxu1 %v6241_v61  ;;  %v8516_v57 = vadd.f32 %v3951_v52, %v3939_v44  ;;  %v3927_v60 = vpop.f32.mrf.mxu1  ;;  %v6121_v61 = vor.u32 %v6947_v26, %v6118_v50  ;;  %v6486_v44 = vld [vmem:[%s7483_s6 + $0xfa8] sm:$0xf0]  ;;  %v6485_v26 = vor.u32 %v7045_v39, %v6484_v38  ;;  %v8556_v52 = vld [vmem:[#allocation1 + $0x2d] sm:$0xff] }
 0x376   : > { %4086 = vmatpush.bf16.xpose.msrb.mxu2 %v6245_v46  ;;  %v8553_v50 = vld [vmem:[#allocation1 + $0x36] sm:$0xff] }
 0x377   : > { %4099 = vmatpush.bf16.xpose.msrb.mxu3 %v6249_v63  ;;  %v6076_v63 = vld [vmem:[%s7483_s6 + $0xc50] sm:$0xf]  ;;  %v7032_v60 = vld [vmem:[%s7483_s6 + $0xf44] sm:$0xf] }
 0x378   : > { %v6077_v32 = vor.u32 %v6942_v1, %v6076_v63  ;;  %v7037_v63 = vld [vmem:[%s7483_s6 + $0xf64] sm:$0xf0]  ;;  %v7033_v1 = vld [vmem:[%s7483_s6 + $0xf4c] sm:$0xf] }
 0x37a   : > { %v3940_v46 = vpop.f32.mrf.mxu2 }
 0x37b   : > { %v6452_v46 = vld [vmem:[%s7483_s6 + $0xf48] sm:$0xf] }
 0x37d   : > { %4061 = vmatpush.bf16.xpose.msrb.mxu0 %v6205_v49  ;;  %4074 = vmatpush.bf16.xpose.msrb.mxu1 %v6209_v8  ;;  %v3953_v49 = vpop.f32.mrf.mxu3  ;;  %v6081_v8 = vor.u32 %v6938_v2, %v6078_v21  ;;  %v6454_v2 = vld [vmem:[%s7483_s6 + $0xf68] sm:$0xf0] }
 0x37e   : > { %4087 = vmatpush.bf16.xpose.msrb.mxu2 %v6213_v9  ;;  %v6085_v9 = vor.u32 %v6943_v6, %v6084_v40  ;;  %v6453_v6 = vor.u32 %v7037_v63, %v6452_v46 }
 0x37f   : > { %4100 = vmatpush.bf16.xpose.msrb.mxu3 %v6217_v10  ;;  %v6089_v10 = vor.u32 %v6939_v56, %v6086_v31  ;;  %v6457_v56 = vor.u32 %v7033_v1, %v6454_v2  ;;  %v6316_v1 = vld [vmem:[%s7483_s6 + $0xe40] sm:$0xf] }
 0x380   : > { %v7004_v2 = vld [vmem:[%s7483_s6 + $0xe5c] sm:$0xf0] }
 0x385   : > { %4062 = vmatpush.bf16.xpose.msrb.mxu0 %v6173_v47  ;;  %4075 = vmatpush.bf16.xpose.msrb.mxu1 %v6177_v0  ;;  %v6508_v47 = vld [vmem:[%s7483_s6 + $0xfc0] sm:$0xf] }
 0x386   : > { %4088 = vmatpush.bf16.xpose.msrb.mxu2 %v6181_v59  ;;  %v7052_v0 = vld [vmem:[%s7483_s6 + $0xfdc] sm:$0xf0]  ;;  %v7048_v59 = vld [vmem:[%s7483_s6 + $0xfc4] sm:$0xf] }
 0x387   : > { %4101 = vmatpush.bf16.xpose.msrb.mxu3 %v6185_v12  ;;  %v6045_v12 = vor.u32 %v6934_v16, %v6044_v15  ;;  %v6513_v36 = vor.u32 %v7048_v59, %v6510_v11  ;;  %v7024_v15 = vld [vmem:[%s7483_s6 + $0xf04] sm:$0xf]  ;;  %v6425_v59 = vor.u32 %v7025_v18, %v6422_v19  ;;  %v6292_v18 = vld [vmem:[%s7483_s6 + $0xe08] sm:$0xf] }
 0x388   : > { %v6414_v16 = vld [vmem:[%s7483_s6 + $0xf20] sm:$0xf0]  ;;  %v6997_v19 = vld [vmem:[%s7483_s6 + $0xe24] sm:$0xf0] }
 0x389   : > { %v6417_v20 = vor.u32 %v7024_v15, %v6414_v16  ;;  %v6284_v15 = vld [vmem:[%s7483_s6 + $0xe00] sm:$0xf] }
 0x38a   : > { %v6996_v16 = vld [vmem:[%s7483_s6 + $0xe1c] sm:$0xf0] }
 0x38d   : > { %4063 = vmatpush.bf16.xpose.msrb.mxu0 %v6141_v27  ;;  %4076 = vmatpush.bf16.xpose.msrb.mxu1 %v6145_v29  ;;  %v6509_v27 = vor.u32 %v7052_v0, %v6508_v47  ;;  %v6521_v29 = vor.u32 %v7049_v7, %v6518_v25  ;;  %v6421_v47 = vor.u32 %v7029_v23, %v6420_v58  ;;  %v7016_v7 = vld [vmem:[%s7483_s6 + $0xec4] sm:$0xf] }
 0x38e   : > { %4089 = vmatpush.bf16.xpose.msrb.mxu2 %v6149_v33  ;;  %v6476_v33 = vld [vmem:[%s7483_s6 + $0xf80] sm:$0xf]  ;;  %v6382_v25 = vld [vmem:[%s7483_s6 + $0xee0] sm:$0xf0] }
 0x38f   : > { %4102 = vmatpush.bf16.xpose.msrb.mxu3 %v6153_v30  ;;  %v7040_v30 = vld [vmem:[%s7483_s6 + $0xf84] sm:$0xf]  ;;  %v6477_v48 = vor.u32 %v7044_v17, %v6476_v33 }
 0x390   : > { %v6481_v45 = vor.u32 %v7040_v30, %v6478_v35  ;;  %v6385_v30 = vor.u32 %v7016_v7, %v6382_v25  ;;  %v6992_v58 = vld [vmem:[%s7483_s6 + $0xe04] sm:$0xf]  ;;  %v6534_v7 = vld [vmem:[%s7483_s6 + $0xff8] sm:$0xf0] }
 0x391   : > { %v6286_v23 = vld [vmem:[%s7483_s6 + $0xe20] sm:$0xf0] }
 0x395   : > { %4064 = vmatpush.bf16.xpose.msrb.mxu0 %v6109_v51  ;;  %4077 = vmatpush.bf16.xpose.msrb.mxu1 %v6113_v54  ;;  %v6489_v51 = vor.u32 %v7041_v41, %v6486_v44  ;;  %v6444_v54 = vld [vmem:[%s7483_s6 + $0xf40] sm:$0xf] }
 0x396   : > { %4090 = vmatpush.bf16.xpose.msrb.mxu2 %v6117_v55  ;;  %v7036_v55 = vld [vmem:[%s7483_s6 + $0xf5c] sm:$0xf0] }
 0x397   : > { %4103 = vmatpush.bf16.xpose.msrb.mxu3 %v6121_v61  ;;  %v6446_v61 = vld [vmem:[%s7483_s6 + $0xf60] sm:$0xf0]  ;;  %v6445_v21 = vor.u32 %v7036_v55, %v6444_v54  ;;  %v6348_v44 = vld [vmem:[%s7483_s6 + $0xe80] sm:$0xf]  ;;  %v7009_v54 = vld [vmem:[%s7483_s6 + $0xe8c] sm:$0xf] }
 0x398   : > { %v6449_v40 = vor.u32 %v7032_v60, %v6446_v61  ;;  %v6358_v55 = vld [vmem:[%s7483_s6 + $0xea8] sm:$0xf0] }
 0x399   : > { %v6361_v63 = vor.u32 %v7009_v54, %v6358_v55  ;;  %v7038_v54 = vld [vmem:[%s7483_s6 + $0xf6c] sm:$0xf0]  ;;  %v7034_v55 = vld [vmem:[%s7483_s6 + $0xf54] sm:$0xf] }
 0x39d   : > { %4065 = vmatpush.bf16.xpose.msrb.mxu0 %v6077_v32  ;;  %4078 = vmatpush.bf16.xpose.msrb.mxu1 %v6081_v8 }
 0x39e   : > { %4091 = vmatpush.bf16.xpose.msrb.mxu2 %v6085_v9  ;;  %v6412_v9 = vld [vmem:[%s7483_s6 + $0xf00] sm:$0xf] }
 0x39f   : > { %4104 = vmatpush.bf16.xpose.msrb.mxu3 %v6089_v10  ;;  %v7028_v10 = vld [vmem:[%s7483_s6 + $0xf1c] sm:$0xf0] }
 0x3a0   : > { %v6413_v62 = vor.u32 %v7028_v10, %v6412_v9 }
 0x3a5   : > { %4066 = vmatpush.bf16.xpose.msrb.mxu0 %v6045_v12  ;;  %4079 = vmatpush.bf16.xpose.msrb.mxu1 %v6049_v28  ;;  %v6380_v28 = vld [vmem:[%s7483_s6 + $0xec0] sm:$0xf] }
 0x3a6   : > { %4092 = vmatpush.bf16.xpose.msrb.mxu2 %v6053_v24  ;;  %v7020_v24 = vld [vmem:[%s7483_s6 + $0xedc] sm:$0xf0] }
 0x3a7   : > { %4105 = vmatpush.bf16.xpose.msrb.mxu3 %v6057_v34  ;;  %v6381_v17 = vor.u32 %v7020_v24, %v6380_v28  ;;  %v6293_v28 = vor.u32 %v6997_v19, %v6292_v18  ;;  %v7051_v24 = vld [vmem:[%s7483_s6 + $0xfdc] sm:$0xf]  ;;  %v6398_v18 = vld [vmem:[%s7483_s6 + $0xef0] sm:$0xf0]  ;;  %v6404_v19 = vld [vmem:[%s7483_s6 + $0xed8] sm:$0xf] }
 0x3a9   : > { %v3964_v31 = vpop.f32.mrf.mxu0  ;;  %v3977_v49 = vpop.f32.mrf.mxu1 }
 0x3aa   : > { %v3965_v32 = vadd.f32 %v3964_v31, %v8516_v57  ;;  %v7001_v31 = vld [vmem:[%s7483_s6 + $0xe4c] sm:$0xf] }
 0x3ac   : > { %4067 = vmatmul.bf16.vlgmr.msrb.gmra.mxu0 %v8550_v43  ;;  %4080 = vmatmul.bf16.vlgmr.msrb.gmra.mxu1 %v8556_v52  ;;  %v3978_v8 = vadd.f32 %v3977_v49, %v3965_v32  ;;  %v6326_v32 = vld [vmem:[%s7483_s6 + $0xe68] sm:$0xf0]  ;;  %v6317_v49 = vor.u32 %v7004_v2, %v6316_v1  ;;  %v6428_v2 = vld [vmem:[%s7483_s6 + $0xf10] sm:$0xf] }
 0x3ad   : > { %4111 = vmatpush.bf16.xpose.msra.mxu0 %v6509_v27  ;;  %4124 = vmatpush.bf16.xpose.msra.mxu1 %v6513_v36  ;;  %v6388_v27 = vld [vmem:[%s7483_s6 + $0xec8] sm:$0xf]  ;;  %v6329_v10 = vor.u32 %v7001_v31, %v6326_v32  ;;  %v7031_v31 = vld [vmem:[%s7483_s6 + $0xf34] sm:$0xf0]  ;;  %v7027_v32 = vld [vmem:[%s7483_s6 + $0xf1c] sm:$0xf] }
 0x3ae   : > { %4137 = vmatpush.bf16.xpose.msra.mxu2 %v6517_v37  ;;  %4106 = vmatmul.bf16.vlgmr.msrb.gmra.mxu3 %v8559_v53  ;;  %v7021_v36 = vld [vmem:[%s7483_s6 + $0xee4] sm:$0xf0]  ;;  %v7017_v37 = vld [vmem:[%s7483_s6 + $0xecc] sm:$0xf] }
 0x3af   : > { %4150 = vmatpush.bf16.xpose.msra.mxu3 %v6521_v29  ;;  %4093 = vmatmul.bf16.vlgmr.msrb.gmra.mxu2 %v8553_v50  ;;  %v6390_v29 = vld [vmem:[%s7483_s6 + $0xee8] sm:$0xf0]  ;;  %v6389_v35 = vor.u32 %v7021_v36, %v6388_v27 }
 0x3b0   : > { %v6393_v39 = vor.u32 %v7017_v37, %v6390_v29  ;;  %v6537_v37 = vor.u32 %v7051_v24, %v6534_v7  ;;  %v6492_v29 = vld [vmem:[%s7483_s6 + $0xf90] sm:$0xf]  ;;  %v7010_v7 = vld [vmem:[%s7483_s6 + $0xe94] sm:$0xf] }
 0x3b1   : > { %v4003_v12 = vpop.f32.mrf.mxu3  ;;  %v3966_v11 = vpop.f32.mrf.mxu0  ;;  %v7014_v24 = vld [vmem:[%s7483_s6 + $0xeac] sm:$0xf0] }
 0x3b2   : > { %v3990_v57 = vpop.f32.mrf.mxu2  ;;  %v3979_v14 = vpop.f32.mrf.mxu1  ;;  %v6532_v11 = vld [vmem:[%s7483_s6 + $0xfd8] sm:$0xf] }
 0x3b3   : > { %v3991_v0 = vadd.f32 %v3990_v57, %v3978_v8  ;;  %v6294_v57 = vld [vmem:[%s7483_s6 + $0xe28] sm:$0xf0]  ;;  %v7055_v14 = vld [vmem:[%s7483_s6 + $0xff4] sm:$0xf0] }
 0x3b4   : > { %v6533_v36 = vor.u32 %v7055_v14, %v6532_v11 }
 0x3b5   : > { %4112 = vmatpush.bf16.xpose.msra.mxu0 %v6477_v48  ;;  %4125 = vmatpush.bf16.xpose.msra.mxu1 %v6481_v45  ;;  %v4004_v13 = vadd.f32 %v4003_v12, %v3991_v0  ;;  %v7012_v48 = vld [vmem:[%s7483_s6 + $0xe9c] sm:$0xf0]  ;;  %v7008_v45 = vld [vmem:[%s7483_s6 + $0xe84] sm:$0xf]  ;;  %v7050_v0 = vld [vmem:[%s7483_s6 + $0xfd4] sm:$0xf] }
 0x3b6   : > { %4138 = vmatpush.bf16.xpose.msra.mxu2 %v6485_v26  ;;  %v6356_v26 = vld [vmem:[%s7483_s6 + $0xe88] sm:$0xf]  ;;  %v6349_v60 = vor.u32 %v7012_v48, %v6348_v44  ;;  %v6526_v12 = vld [vmem:[%s7483_s6 + $0xff0] sm:$0xf0]  ;;  %v6502_v44 = vld [vmem:[%s7483_s6 + $0xfb8] sm:$0xf0] }
 0x3b7   : > { %4151 = vmatpush.bf16.xpose.msra.mxu3 %v6489_v51  ;;  %v4226_v34 = vrot.slane %v4004_v13, 6  ;;  %v7013_v51 = vld [vmem:[%s7483_s6 + $0xea4] sm:$0xf0]  ;;  %v6289_v13 = vor.u32 %v6992_v58, %v6286_v23  ;;  %v6529_v27 = vor.u32 %v7050_v0, %v6526_v12  ;;  %v7022_v58 = vld [vmem:[%s7483_s6 + $0xeec] sm:$0xf0] }
 0x3b8   : > { %v6357_v46 = vor.u32 %v7013_v51, %v6356_v26  ;;  %v6460_v51 = vld [vmem:[%s7483_s6 + $0xf50] sm:$0xf]  ;;  %v7018_v23 = vld [vmem:[%s7483_s6 + $0xed4] sm:$0xf]  ;;  %v6406_v0 = vld [vmem:[%s7483_s6 + $0xef8] sm:$0xf0] }
 0x3b9   : > { %v8589_v33 = vsel %vm4229_vm0, %v8430_v42, %v4226_v34  ;;  %v4005_v41 = vpop.f32.mrf.mxu3  ;;  %v6350_v42 = vld [vmem:[%s7483_s6 + $0xea0] sm:$0xf0]  ;;  %v6401_v11 = vor.u32 %v7018_v23, %v6398_v18 }
 0x3ba   : > { %v3992_v38 = vpop.f32.mrf.mxu2  ;;  %v6353_v61 = vor.u32 %v7008_v45, %v6350_v42  ;;  %v7043_v41 = vld [vmem:[%s7483_s6 + $0xf9c] sm:$0xf] }
 0x3bb   : > { %v6500_v38 = vld [vmem:[%s7483_s6 + $0xf98] sm:$0xf]  ;;  %v6505_v26 = vor.u32 %v7043_v41, %v6502_v44 }
 0x3bd   : > { %4113 = vmatpush.bf16.xpose.msra.mxu0 %v6445_v21  ;;  %4126 = vmatpush.bf16.xpose.msra.mxu1 %v6449_v40  ;;  %v7000_v21 = vld [vmem:[%s7483_s6 + $0xe44] sm:$0xf] }
 0x3be   : > { %4139 = vmatpush.bf16.xpose.msra.mxu2 %v6453_v6  ;;  %v6318_v40 = vld [vmem:[%s7483_s6 + $0xe60] sm:$0xf0]  ;;  %v6324_v6 = vld [vmem:[%s7483_s6 + $0xe48] sm:$0xf] }
 0x3bf   : > { %4152 = vmatpush.bf16.xpose.msra.mxu3 %v6457_v56  ;;  %v7005_v56 = vld [vmem:[%s7483_s6 + $0xe64] sm:$0xf0]  ;;  %v6321_v8 = vor.u32 %v7000_v21, %v6318_v40  ;;  %v7030_v21 = vld [vmem:[%s7483_s6 + $0xf2c] sm:$0xf0]  ;;  %v7026_v40 = vld [vmem:[%s7483_s6 + $0xf14] sm:$0xf] }
 0x3c0   : > { %v6325_v9 = vor.u32 %v7005_v56, %v6324_v6  ;;  %v6430_v6 = vld [vmem:[%s7483_s6 + $0xf30] sm:$0xf0]  ;;  %v6436_v56 = vld [vmem:[%s7483_s6 + $0xf18] sm:$0xf] }
 0x3c5   : > { %4114 = vmatpush.bf16.xpose.msra.mxu0 %v6413_v62  ;;  %4127 = vmatpush.bf16.xpose.msra.mxu1 %v6417_v20  ;;  %v6993_v62 = vld [vmem:[%s7483_s6 + $0xe0c] sm:$0xf]  ;;  %v6524_v20 = vld [vmem:[%s7483_s6 + $0xfd0] sm:$0xf] }
 0x3c6   : > { %4140 = vmatpush.bf16.xpose.msra.mxu2 %v6421_v47  ;;  %v7054_v47 = vld [vmem:[%s7483_s6 + $0xfec] sm:$0xf0]  ;;  %v6297_v25 = vor.u32 %v6993_v62, %v6294_v57  ;;  %v7023_v62 = vld [vmem:[%s7483_s6 + $0xef4] sm:$0xf0] }
 0x3c7   : > { %4153 = vmatpush.bf16.xpose.msra.mxu3 %v6425_v59  ;;  %v6285_v59 = vor.u32 %v6996_v16, %v6284_v15  ;;  %v6525_v34 = vor.u32 %v7054_v47, %v6524_v20  ;;  %v6396_v16 = vld [vmem:[%s7483_s6 + $0xed0] sm:$0xf]  ;;  %v7019_v47 = vld [vmem:[%s7483_s6 + $0xedc] sm:$0xf]  ;;  %v6405_v14 = vor.u32 %v7023_v62, %v6404_v19 }
 0x3c8   : > { %v6397_v12 = vor.u32 %v7022_v58, %v6396_v16 }
 0x3cd   : > { %4115 = vmatpush.bf16.xpose.msra.mxu0 %v6381_v17  ;;  %4128 = vmatpush.bf16.xpose.msra.mxu1 %v6385_v30  ;;  %v7046_v17 = vld [vmem:[%s7483_s6 + $0xfac] sm:$0xf0]  ;;  %v7042_v30 = vld [vmem:[%s7483_s6 + $0xf94] sm:$0xf] }
 0x3ce   : > { %4141 = vmatpush.bf16.xpose.msra.mxu2 %v6389_v35  ;;  %v6494_v35 = vld [vmem:[%s7483_s6 + $0xfb0] sm:$0xf0]  ;;  %v6493_v48 = vor.u32 %v7046_v17, %v6492_v29 }
 0x3cf   : > { %4154 = vmatpush.bf16.xpose.msra.mxu3 %v6393_v39  ;;  %v7047_v39 = vld [vmem:[%s7483_s6 + $0xfb4] sm:$0xf0]  ;;  %v6497_v45 = vor.u32 %v7042_v30, %v6494_v35  ;;  %v7011_v35 = vld [vmem:[%s7483_s6 + $0xe9c] sm:$0xf] }
 0x3d0   : > { %v6501_v42 = vor.u32 %v7047_v39, %v6500_v38  ;;  %v6374_v38 = vld [vmem:[%s7483_s6 + $0xeb8] sm:$0xf0] }
 0x3d5   : > { %4116 = vmatpush.bf16.xpose.msra.mxu0 %v6349_v60  ;;  %4129 = vmatpush.bf16.xpose.msra.mxu1 %v6353_v61  ;;  %v6462_v60 = vld [vmem:[%s7483_s6 + $0xf70] sm:$0xf0]  ;;  %v7039_v61 = vld [vmem:[%s7483_s6 + $0xf74] sm:$0xf0] }
 0x3d6   : > { %4142 = vmatpush.bf16.xpose.msra.mxu2 %v6357_v46  ;;  %v6465_v46 = vor.u32 %v7034_v55, %v6462_v60  ;;  %v6334_v60 = vld [vmem:[%s7483_s6 + $0xe70] sm:$0xf0] }
 0x3d7   : > { %4155 = vmatpush.bf16.xpose.msra.mxu3 %v6361_v63 }
 0x3dd   : > { %4117 = vmatpush.bf16.xpose.msra.mxu0 %v6317_v49  ;;  %4130 = vmatpush.bf16.xpose.msra.mxu1 %v6321_v8  ;;  %v6438_v49 = vld [vmem:[%s7483_s6 + $0xf38] sm:$0xf0]  ;;  %v6429_v8 = vor.u32 %v7030_v21, %v6428_v2  ;;  %v6300_v2 = vld [vmem:[%s7483_s6 + $0xe10] sm:$0xf] }
 0x3de   : > { %4143 = vmatpush.bf16.xpose.msra.mxu2 %v6325_v9  ;;  %v6433_v9 = vor.u32 %v7026_v40, %v6430_v6  ;;  %v6441_v15 = vor.u32 %v7027_v32, %v6438_v49  ;;  %v6998_v21 = vld [vmem:[%s7483_s6 + $0xe2c] sm:$0xf0]  ;;  %v6994_v40 = vld [vmem:[%s7483_s6 + $0xe14] sm:$0xf]  ;;  %v6995_v32 = vld [vmem:[%s7483_s6 + $0xe1c] sm:$0xf] }
 0x3df   : > { %4156 = vmatpush.bf16.xpose.msra.mxu3 %v6329_v10  ;;  %v6437_v10 = vor.u32 %v7031_v31, %v6436_v56  ;;  %v6302_v6 = vld [vmem:[%s7483_s6 + $0xe30] sm:$0xf0]  ;;  %v6308_v56 = vld [vmem:[%s7483_s6 + $0xe18] sm:$0xf]  ;;  %v6310_v49 = vld [vmem:[%s7483_s6 + $0xe38] sm:$0xf0] }
 0x3e0   : > { %v6999_v31 = vld [vmem:[%s7483_s6 + $0xe34] sm:$0xf0] }
 0x3e5   : > { %4118 = vmatpush.bf16.xpose.msra.mxu0 %v6285_v59  ;;  %4131 = vmatpush.bf16.xpose.msra.mxu1 %v6289_v13  ;;  %v6409_v13 = vor.u32 %v7019_v47, %v6406_v0 }
 0x3e6   : > { %4144 = vmatpush.bf16.xpose.msra.mxu2 %v6293_v28  ;;  %v6364_v28 = vld [vmem:[%s7483_s6 + $0xe90] sm:$0xf] }
 0x3e7   : > { %4157 = vmatpush.bf16.xpose.msra.mxu3 %v6297_v25  ;;  %v6365_v39 = vor.u32 %v7014_v24, %v6364_v28 }
 0x3e9   : > { %v4016_v57 = vpop.f32.mrf.mxu0  ;;  %v4029_v20 = vpop.f32.mrf.mxu1 }
 0x3ea   : > { %v4030_v59 = vadd.f32 %v4029_v20, %v4016_v57 }
 0x3ec   : > { %4119 = vmatmul.bf16.vlgmr.msra.gmra.mxu0 %v8162_v3  ;;  %4132 = vmatmul.bf16.vlgmr.msra.gmra.mxu1 %v8168_v5  ;;  %v6468_v3 = vld [vmem:[%s7483_s6 + $0xf58] sm:$0xf]  ;;  %v6470_v5 = vld [vmem:[%s7483_s6 + $0xf78] sm:$0xf0] }
 0x3ed   : > { %4163 = vmatpush.bf16.xpose.msrb.mxu0 %v6525_v34  ;;  %4176 = vmatpush.bf16.xpose.msrb.mxu1 %v6529_v27  ;;  %v6469_v63 = vor.u32 %v7039_v61, %v6468_v3  ;;  %v6366_v27 = vld [vmem:[%s7483_s6 + $0xeb0] sm:$0xf0]  ;;  %v6340_v3 = vld [vmem:[%s7483_s6 + $0xe58] sm:$0xf] }
 0x3ee   : > { %4189 = vmatpush.bf16.xpose.msrb.mxu2 %v6533_v36  ;;  %4158 = vmatmul.bf16.vlgmr.msra.gmra.mxu3 %v8171_v22  ;;  %v6461_v22 = vor.u32 %v7038_v54, %v6460_v51  ;;  %v6372_v36 = vld [vmem:[%s7483_s6 + $0xe98] sm:$0xf]  ;;  %v6369_v44 = vor.u32 %v7010_v7, %v6366_v27  ;;  %v7002_v51 = vld [vmem:[%s7483_s6 + $0xe54] sm:$0xf] }
 0x3ef   : > { %4202 = vmatpush.bf16.xpose.msrb.mxu3 %v6537_v37  ;;  %4145 = vmatmul.bf16.vlgmr.msra.gmra.mxu2 %v8165_v4  ;;  %v7035_v4 = vld [vmem:[%s7483_s6 + $0xf5c] sm:$0xf]  ;;  %v7015_v37 = vld [vmem:[%s7483_s6 + $0xeb4] sm:$0xf0] }
 0x3f0   : > { %v6473_v1 = vor.u32 %v7035_v4, %v6470_v5  ;;  %v7007_v61 = vld [vmem:[%s7483_s6 + $0xe74] sm:$0xf0]  ;;  %v7003_v4 = vld [vmem:[%s7483_s6 + $0xe5c] sm:$0xf] }
 0x3f1   : > { %v4055_v34 = vpop.f32.mrf.mxu3  ;;  %v4018_v17 = vpop.f32.mrf.mxu0  ;;  %v6342_v5 = vld [vmem:[%s7483_s6 + $0xe78] sm:$0xf0] }
 0x3f2   : > { %v4042_v25 = vpop.f32.mrf.mxu2  ;;  %v4031_v30 = vpop.f32.mrf.mxu1 }
 0x3f3   : > { %v4043_v29 = vadd.f32 %v4042_v25, %v4030_v59 }
 0x3f5   : > { %4164 = vmatpush.bf16.xpose.msrb.mxu0 %v6493_v48  ;;  %4177 = vmatpush.bf16.xpose.msrb.mxu1 %v6497_v45  ;;  %v4056_v41 = vadd.f32 %v4055_v34, %v4043_v29  ;;  %v6373_v48 = vor.u32 %v7015_v37, %v6372_v36  ;;  %v6377_v45 = vor.u32 %v7011_v35, %v6374_v38  ;;  %v7156_v37 = vld [vmem:[%s8273_s10] sm:$0xff] }
 0x3f6   : > { %4190 = vmatpush.bf16.xpose.msrb.mxu2 %v6501_v42  ;;  %v6332_v42 = vld [vmem:[%s7483_s6 + $0xe50] sm:$0xf]  ;;  %v4256_v29 = vperm.slane %v7156_v37, 5  ;;  %v4257_v17 = vperm.slane %v7156_v37, 6  ;;  %v4258_v30 = vperm.slane %v7156_v37, 7  ;;  %v4255_v35 = vperm.slane %v7156_v37, 4 }
 0x3f7   : > { %4203 = vmatpush.bf16.xpose.msrb.mxu3 %v6505_v26  ;;  %v7006_v26 = vld [vmem:[%s7483_s6 + $0xe6c] sm:$0xf0] }
 0x3f9   : > { %v4057_v55 = vpop.f32.mrf.mxu3 }
 0x3fa   : > { %v4044_v54 = vpop.f32.mrf.mxu2 }
 0x3fd   : > { %4165 = vmatpush.bf16.xpose.msrb.mxu0 %v6461_v22  ;;  %4178 = vmatpush.bf16.xpose.msrb.mxu1 %v6465_v46  ;;  %v6333_v22 = vor.u32 %v7006_v26, %v6332_v42  ;;  %v6337_v46 = vor.u32 %v7002_v51, %v6334_v60 }
 0x3fe   : > { %4191 = vmatpush.bf16.xpose.msrb.mxu2 %v6469_v63  ;;  %v6341_v63 = vor.u32 %v7007_v61, %v6340_v3 }
 0x3ff   : > { %4204 = vmatpush.bf16.xpose.msrb.mxu3 %v6473_v1  ;;  %v6345_v1 = vor.u32 %v7003_v4, %v6342_v5 }
 0x405   : > { %4166 = vmatpush.bf16.xpose.msrb.mxu0 %v6429_v8  ;;  %4179 = vmatpush.bf16.xpose.msrb.mxu1 %v6433_v9  ;;  %v6301_v8 = vor.u32 %v6998_v21, %v6300_v2  ;;  %v6305_v9 = vor.u32 %v6994_v40, %v6302_v6  ;;  %v4282_v2 = vld.sshfl [vmem:[#allocation1] sm:$0xff pattern:$0x73625140]  ;;  %v4283_v40 = vld.sshfl [vmem:[#allocation1 + $0x8] sm:$0xff pattern:$0x73625140] }
 0x406   : > { %4192 = vmatpush.bf16.xpose.msrb.mxu2 %v6437_v10  ;;  %v6309_v10 = vor.u32 %v6999_v31, %v6308_v56  ;;  %v4284_v6 = vld.sshfl [vmem:[#allocation1 + $0x10] sm:$0xff pattern:$0x73625140]  ;;  %v4285_v56 = vld.sshfl [vmem:[#allocation1 + $0x18] sm:$0xff pattern:$0x73625140]  ;;  %v4298_v31 = vpack.c.bf16 %v4283_v40, %v4282_v2 }
 0x407   : > { %4205 = vmatpush.bf16.xpose.msrb.mxu3 %v6441_v15  ;;  %v6313_v15 = vor.u32 %v6995_v32, %v6310_v49  ;;  %v4299_v32 = vpack.c.bf16 %v4285_v56, %v4284_v6 }
 0x408   : > { %v4306_v49 = vrot.slane %v4298_v31, 3 }
 0x40d   : > { %4167 = vmatpush.bf16.xpose.msrb.mxu0 %v6397_v12  ;;  %4180 = vmatpush.bf16.xpose.msrb.mxu1 %v6401_v11 }
 0x40e   : > { %4193 = vmatpush.bf16.xpose.msrb.mxu2 %v6405_v14 }
 0x40f   : > { %4206 = vmatpush.bf16.xpose.msrb.mxu3 %v6409_v13 }
 0x415   : > { %4168 = vmatpush.bf16.xpose.msrb.mxu0 %v6365_v39  ;;  %4181 = vmatpush.bf16.xpose.msrb.mxu1 %v6369_v44  ;;  %v4262_v39 = vrot.slane %v4256_v29, 6  ;;  %v4264_v44 = vrot.slane %v4258_v30, 2 }
 0x416   : > { %4194 = vmatpush.bf16.xpose.msrb.mxu2 %v6373_v48 }
 0x417   : > { %4207 = vmatpush.bf16.xpose.msrb.mxu3 %v6377_v45  ;;  %v4268_v55 = vsel %vm4229_vm0, %v4255_v35, %v4262_v39 }
 0x41d   : > { %4169 = vmatpush.bf16.xpose.msrb.mxu0 %v6333_v22  ;;  %4182 = vmatpush.bf16.xpose.msrb.mxu1 %v6337_v46 }
 0x41e   : > { %4195 = vmatpush.bf16.xpose.msrb.mxu2 %v6341_v63 }
 0x41f   : > { %4208 = vmatpush.bf16.xpose.msrb.mxu3 %v6345_v1 }
 0x425   : > { %4170 = vmatpush.bf16.xpose.msrb.mxu0 %v6301_v8  ;;  %4183 = vmatpush.bf16.xpose.msrb.mxu1 %v6305_v9  ;;  %v4307_v8 = vrot.slane %v4299_v32, 6  ;;  %v4308_v9 = vrot.slane %v4299_v32, 1 }
 0x426   : > { %4196 = vmatpush.bf16.xpose.msrb.mxu2 %v6309_v10 }
 0x427   : > { %4209 = vmatpush.bf16.xpose.msrb.mxu3 %v6313_v15 }
 0x429   : > { %v4068_v16 = vpop.f32.mrf.mxu0  ;;  %v4081_v23 = vpop.f32.mrf.mxu1 }
 0x42a   : > { %v4069_v58 = vadd.f32 %v4068_v16, %v4056_v41  ;;  %v4263_v41 = vrot.slane %v4257_v17, 4 }
 0x42c   : > { %4171 = vmatmul.bf16.vlgmr.msrb.gmra.mxu0 %v8550_v43  ;;  %4184 = vmatmul.bf16.vlgmr.msrb.gmra.mxu1 %v8556_v52  ;;  %v4082_v18 = vadd.f32 %v4081_v23, %v4069_v58  ;;  %v4269_v60 = vsel %vm4231_vm1, %v4263_v41, %v4264_v44 }
 0x42d   : > { %4197 = vmatmul.bf16.vlgmr.msrb.gmra.mxu2 %v8553_v50  ;;  %v4270_v4 = vsel %vm4233_vm2, %v4268_v55, %v4269_v60 }
 0x42e   : > { %4210 = vmatmul.bf16.vlgmr.msrb.gmra.mxu3 %v8559_v53 }
 0x431   : > { %v4107_v57 = vpop.f32.mrf.mxu3  ;;  %v4070_v20 = vpop.f32.mrf.mxu0 }
 0x432   : > { %v4094_v19 = vpop.f32.mrf.mxu2  ;;  %v4083_v47 = vpop.f32.mrf.mxu1  ;;  %v4316_v20 = vsel %vm4313_vm3, %v4298_v31, %v4306_v49 }
 0x433   : > { %v4095_v62 = vadd.f32 %v4094_v19, %v4082_v18  ;;  %v4320_v47 = vsel %vm4317_vm4, %v4307_v8, %v4308_v9 }
 0x435   : > { %v4108_v0 = vadd.f32 %v4107_v57, %v4095_v62 }
 0x437   : > { %v4227_v3 = vrot.slane %v4108_v0, 4 }
 0x439   : > { %v4109_v12 = vpop.f32.mrf.mxu3 }
 0x43a   : > { %v4096_v59 = vpop.f32.mrf.mxu2  ;;  %v4321_v12 = vsel %vm4229_vm0, %v4316_v20, %v4320_v47 }
 0x469   : > { %v4120_v43 = vpop.f32.mrf.mxu0  ;;  %v4133_v11 = vpop.f32.mrf.mxu1 }
 0x46a   : > { %v4134_v24 = vadd.f32 %v4133_v11, %v4120_v43 }
 0x471   : > { %v4159_v14 = vpop.f32.mrf.mxu3  ;;  %v4122_v50 = vpop.f32.mrf.mxu0 }
 0x472   : > { %v4146_v52 = vpop.f32.mrf.mxu2  ;;  %v4135_v13 = vpop.f32.mrf.mxu1 }
 0x473   : > { %v4147_v7 = vadd.f32 %v4146_v52, %v4134_v24 }
 0x475   : > { %v4160_v25 = vadd.f32 %v4159_v14, %v4147_v7 }
 0x479   : > { %v4161_v28 = vpop.f32.mrf.mxu3 }
 0x47a   : > { %v4148_v53 = vpop.f32.mrf.mxu2 }
 0x4a9   : > { %v4172_v34 = vpop.f32.mrf.mxu0  ;;  %v4185_v27 = vpop.f32.mrf.mxu1 }
 0x4aa   : > { %v4173_v36 = vadd.f32 %v4172_v34, %v4160_v25 }
 0x4ac   : > { %v4186_v38 = vadd.f32 %v4185_v27, %v4173_v36 }
 0x4b0   : > { %v4198_v48 = vpop.f32.mrf.mxu2 }
 0x4b1   : > { %v4199_v45 = vadd.f32 %v4198_v48, %v4186_v38  ;;  %v4211_v42 = vpop.f32.mrf.mxu3  ;;  %v4174_v26 = vpop.f32.mrf.mxu0 }
 0x4b2   : > { %v4187_v51 = vpop.f32.mrf.mxu1 }
 0x4b3   : > { %v4212_v54 = vadd.f32 %v4211_v42, %v4199_v45 }
 0x4b5   : > { %v4228_v61 = vrot.slane %v4212_v54, 2 }
 0x4b7   : > { %v4236_v5 = vsel %vm4231_vm1, %v4227_v3, %v4228_v61 }
 0x4b8   : > { %v4237_v22 = vsel %vm4233_vm2, %v8589_v33, %v4236_v5  ;;  %v4200_v46 = vpop.f32.mrf.mxu2 }
 0x4b9   : > { %v4213_v63 = vpop.f32.mrf.mxu3  ;;  %v4274_v1 = vadd.f32 %v4270_v4, %v4237_v22 }
 0x4bb   : > { %v4276_v21 = vmax.f32 %v4274_v1, 0.0 }
 0x4bd   : > { %4281 = vst [vmem:[#allocation1 + $0x20] ss:$4 sm:$0xff] %v4276_v21 }
 0x4c4   : > { %v4286_v10 = vld.sshfl [vmem:[#allocation1 + $0x20] sm:$0xff pattern:$0x73625140]  ;;  %v4287_v33 = vld.sshfl [vmem:[#allocation1 + $0x28] sm:$0xff pattern:$0x73625140] }
 0x4c5   : > { %v4288_v15 = vld.sshfl [vmem:[#allocation1 + $0x30] sm:$0xff pattern:$0x73625140]  ;;  %v4289_v16 = vld.sshfl [vmem:[#allocation1 + $0x38] sm:$0xff pattern:$0x73625140]  ;;  %v4300_v58 = vpack.c.bf16 %v4287_v33, %v4286_v10 }
 0x4c6   : > { %v4301_v23 = vpack.c.bf16 %v4289_v16, %v4288_v15 }
 0x4c7   : > { %v4309_v18 = vrot.slane %v4300_v58, 4  ;;  %v4310_v19 = vrot.slane %v4300_v58, 7 }
 0x4c8   : > { %v4311_v62 = vrot.slane %v4301_v23, 2  ;;  %v4312_v57 = vrot.slane %v4301_v23, 5 }
 0x4c9   : > { %v4325_v0 = vsel %vm4322_vm5, %v4309_v18, %v4310_v19 }
 0x4ca   : > { %v4329_v59 = vsel %vm4326_vm6, %v4311_v62, %v4312_v57 }
 0x4cb   : > { %v4330_v43 = vsel %vm4231_vm1, %v4325_v0, %v4329_v59 }
 0x4cc   : > { %v4331_v11 = vsel %vm4233_vm2, %v4321_v12, %v4330_v43 }
 0x4cd   : > { %4333 = vst [vmem:[%s278_s15] sm:$0xff] %v4331_v11 }
 0x4ce   : > { %7274 = shalt.err (!%p7271_p11)
}
 0x4cf   : > { %7064 = dma.vmem_to_hbm [thread:$0]  (%p7445_p13), %s4350_s5, 128, %s4352_s8, %s4335_s9  }
 0x4d0 PF: > { %p7084_p12 = scmp.ge.s32.totalorder %s7333_s17, 2  ;;  %s4363_s28 = sand.u32 1, %s7313_s12  }
 0x4d1   : > { %s4364_s7 = scalar_lea.sflag [#allocation5], %s4363_s28 }
 0x4d2   : > { %p7078_p2 = pnand %p7084_p12, %p7449_p0 }
 0x4d4   : > { %p7079_p3 = pneg %p7078_p2 }
 0x4d6   : > { %7308 = dma.done.wait (%p7079_p3), %s4364_s7, 128  }
 0x4d7   : > { %7310 = vsyncadd (%p7079_p3), %s4364_s7, 4294967168  ;;  %s20_s17 = sadd.s32 1, %s7333_s17   ;;  %s8747_s12 = smov %s7317_s13 }
 0x4d8   : > { %p17_p1 = scmp.ge.s32.totalorder %s20_s17, 6   ;;  %s8748_s13 = smov %s7321_s14 }
 0x4d9   : > { %s8749_s14 = smov %s7409_s25  ;;  %s8750_s15 = smov %s7329_s16 }
 0x4da   : > { %s8751_s16 = smov %s8753_s18  ;;  %19 = sbr.rel (!%p17_p1) target bundleno = 7 (0x7), region = 103 }
 0x4df   :  { %4370 = vsyncpa [#allocation4], 1 }
 0x4e0   :  { %4372 = vsyncpa [#allocation4 + $0x1], 1 }
 0x4e1   :  { %4373 = vsyncpa [#allocation7], 1 }
 0x4e2   :  { %4375 = vsyncpa [#allocation7 + $0x1], 1 }
 0x4e3   :  { %4376 = vsyncpa [#allocation5], 1 }
 0x4e4   :  { %4378 = vsyncpa [#allocation5 + $0x1], 1 }

</bundles_post_ra>
